<compile_context>
chip_gen: v5e
topology: v5e:2x2
jax: 0.10.0
libtpu: 0.0.40
codegen_flags: <defaults>
</compile_context>

<pallas_src>
import numpy as np
import jax
import jax.numpy as jnp
from jax.experimental import pallas as pl
from jax.experimental.pallas import tpu as pltpu

# ---- problem sizes (small, consistent with the module) ----------------------
B = 2            # batch
L = 16           # sequence length
CS = 32          # num_in_seq_channel == key/value/output dim
CP = 16          # num_in_pair_channel
H = 4            # config.num_head
DH = CS // H     # per-head dim
KERNELS = (1, 3)                     # config.inp_kernels (H % len(KERNELS) == 0)
KMAX = max(KERNELS)
PAD = KMAX // 2
EPS = 1e-5
MASK_VALUE = float(np.finfo(np.float32).min) / 1e4
SCALE = DH ** -0.5

BL = B * L          # 32  (stacked (b, i) rows / (b', j) key lanes)
R = B * H * L       # 128 (stacked (b, h, i) attention rows)
PCOLS = 4 * CS      # 128 (fused q|k|v|gate lane width)

# ---- packed-slab row offsets (all multiples of 8 for the big blocks) ---------
_PA_W = 0                      # (CS, 128)  fused projection, seq-LN gamma folded
_PA_MSUM = CS                  # (BL, 128)  head-merge matrix (= RepQ^T)
_PA_PROJB = CS + BL            # (1, 128)   fused projection bias (seq-LN beta folded)
_PA_TAPS = _PA_PROJB + 1       # (KMAX,128) conv taps (prev / center / next)
_PA_CBIAS = _PA_TAPS + KMAX    # (1, 128)   conv bias (gate bias folded)
PA_ROWS = _PA_CBIAS + 1        # 69

_PB_SM1 = 0                    # (BL, BL)   shift by -1 (batch edges zeroed)
_PB_SP1 = BL                   # (BL, BL)   shift by +1
_PB_REPQ = 2 * BL              # (R, BL)    row replication (b,i) -> (b,h,i)
_PB_QSEL = _PB_REPQ + R        # (R, CS)    head-channel select mask
_PB_OFFB = _PB_QSEL + R        # (R, BL)    pair-LN-beta offset / 2*MASK cross-batch
_PB_MASKB = _PB_OFFB + R       # (R, BL)    MASK_VALUE / 2*MASK cross-batch
_PB_PLACE = _PB_MASKB + R      # (L, BL)    [I_L | I_L] lane placement
_PB_WO = _PB_PLACE + L         # (CS, CS)   output projection
_PB_BO = _PB_WO + CS           # (1, CS)
PB_ROWS = _PB_BO + 1           # 625

_PC_A = 0                      # (R, BL*CP) batch-block-diag pair-bias contraction
_PC_POOL = R                   # (BL, BL*CP) per-(b,i) channel-mean pooling
PC_ROWS = R + BL               # 160


# ---- the Pallas kernel (single invocation, no grid) --------------------------
def seq_attn_pair_bias_kernel(seq_ref, pt_ref, pm_ref, km_ref,
                              pa_ref, pb_ref, pc_ref, out_ref):
    f32 = jnp.float32

    # constant slabs (static sublane slices of resident VMEM refs)
    w_fused = pa_ref[_PA_W:_PA_W + CS, :]                 # (32, 128)
    msum    = pa_ref[_PA_MSUM:_PA_MSUM + BL, :]           # (32, 128)
    projb   = pa_ref[_PA_PROJB:_PA_PROJB + 1, :]          # (1, 128)
    tap_p   = pa_ref[_PA_TAPS + 0:_PA_TAPS + 1, :]        # (1, 128)
    tap_c   = pa_ref[_PA_TAPS + 1:_PA_TAPS + 2, :]
    tap_n   = pa_ref[_PA_TAPS + 2:_PA_TAPS + 3, :]
    cbias   = pa_ref[_PA_CBIAS:_PA_CBIAS + 1, :]

    sm1   = pb_ref[_PB_SM1:_PB_SM1 + BL, :]               # (32, 32)
    sp1   = pb_ref[_PB_SP1:_PB_SP1 + BL, :]
    repq  = pb_ref[_PB_REPQ:_PB_REPQ + R, :]              # (128, 32)
    qsel  = pb_ref[_PB_QSEL:_PB_QSEL + R, :]              # (128, 32)
    offb  = pb_ref[_PB_OFFB:_PB_OFFB + R, :]              # (128, 32)
    maskb = pb_ref[_PB_MASKB:_PB_MASKB + R, :]            # (128, 32)
    place = pb_ref[_PB_PLACE:_PB_PLACE + L, :]            # (16, 32)
    wo    = pb_ref[_PB_WO:_PB_WO + CS, :]                 # (32, 32)
    bo    = pb_ref[_PB_BO:_PB_BO + 1, :]                  # (1, 32)

    abig  = pc_ref[_PC_A:_PC_A + R, :]                    # (128, 512)
    poolc = pc_ref[_PC_POOL:_PC_POOL + BL, :]             # (32, 512)

    # ---- seq LayerNorm (gamma/beta folded into the fused projection) --------
    x = seq_ref[...]                                      # (32, 32)
    mu = jnp.mean(x, axis=-1, keepdims=True)
    var = jnp.mean((x - mu) ** 2, axis=-1, keepdims=True)
    z = (x - mu) * jax.lax.rsqrt(var + EPS)

    # ---- fused q|k|v|gate projection: one lane-dense (32,32)@(32,128) -------
    proj = jnp.dot(z, w_fused, preferred_element_type=f32) + projb   # (32, 128)

    # ---- depthwise inception via constant boundary-aware shift matmuls ------
    prevp = jnp.dot(sm1, proj, preferred_element_type=f32)           # proj[i-1]
    nextp = jnp.dot(sp1, proj, preferred_element_type=f32)           # proj[i+1]
    slab = proj * tap_c + prevp * tap_p + nextp * tap_n + cbias      # (32, 128)

    qa   = slab[:, 0:CS]                                  # q-scale already folded
    ka   = slab[:, CS:2 * CS]
    va   = slab[:, 2 * CS:3 * CS]
    gate = jax.nn.sigmoid(slab[:, 3 * CS:4 * CS])         # gate bias folded

    # ---- stacked all-batch all-head logits: rows (b,h,i), keys (b',j) -------
    qbig = qsel * jnp.dot(repq, qa, preferred_element_type=f32)      # (128, 32)
    logits = jax.lax.dot_general(qbig, ka, (((1,), (1,)), ((), ())),
                                 preferred_element_type=f32)          # (128, 32)

    # ---- pair bias: pair-LN gamma + centering folded into abig; inv-std via
    #      constant block-pooling matmuls; no reshape / sublane reduction ------
    pt = pt_ref[...]                                                  # (512, 16)
    cb = jnp.dot(abig, pt, preferred_element_type=f32)                # (128, 16)
    m1 = jnp.dot(poolc, pt, preferred_element_type=f32)               # (32, 16)
    m2 = jnp.dot(poolc, pt * pt, preferred_element_type=f32)          # (32, 16)
    inv = jax.lax.rsqrt(m2 - m1 * m1 + EPS)                           # (32, 16)
    inv_r = jnp.dot(repq, inv, preferred_element_type=f32)            # (128, 16)
    bias = jnp.dot(inv_r * cb, place, preferred_element_type=f32)     # (128, 32)

    # ---- key mask AND pair mask, hard masked_fill semantics ------------------
    pm_r = jnp.dot(repq, pm_ref[...], preferred_element_type=f32)     # (128, 16)
    pm_w = jnp.dot(pm_r, place, preferred_element_type=f32)           # (128, 32)
    sel = (pm_w * km_ref[...]) > 0.5                                  # (128, 32)
    logits = jnp.where(sel, logits + bias + offb, maskb)

    # ---- one batched softmax across all batches and heads --------------------
    m = jnp.max(logits, axis=-1, keepdims=True)
    e = jnp.exp(logits - m)
    denom = jnp.sum(e, axis=-1, keepdims=True)
    probs = e * pl.reciprocal(denom, approx=False)

    ctx = jnp.dot(probs, va, preferred_element_type=f32)              # (128, 32)

    # ---- merge heads (MXU), gate, output projection, ONE full-tile store -----
    wa = jnp.dot(msum, qsel * ctx, preferred_element_type=f32)        # (32, 32)
    og = wa * gate
    out_ref[...] = jnp.dot(og, wo, preferred_element_type=f32) + bo


# ---- one-time parameter packing (host numpy, hoisted out of the call path) ---
def pack_params(p):
    f32 = np.float32
    wq, wk, wv, wg = (np.asarray(p[k], f32) for k in ('wq', 'wk', 'wv', 'wg'))
    W = np.concatenate([wq, wk, wv, wg], axis=1)                      # (CS, 4CS)
    gs = np.asarray(p['gs'], f32).reshape(CS, 1)
    bs = np.asarray(p['bs'], f32).reshape(1, CS)
    Wg = gs * W                                                       # seq-LN gamma folded
    projb = bs @ W                                                    # seq-LN beta folded

    gate_taps = np.zeros((KMAX, CS), f32)
    gate_taps[PAD, :] = 1.0
    taps = np.concatenate([np.asarray(p['qcw'], f32) * SCALE,
                           np.asarray(p['kcw'], f32),
                           np.asarray(p['vcw'], f32),
                           gate_taps], axis=1)                        # (KMAX, 4CS)
    cbias = np.concatenate([np.asarray(p['qcb'], f32) * SCALE,
                            np.asarray(p['kcb'], f32),
                            np.asarray(p['vcb'], f32),
                            np.asarray(p['bg'], f32)], axis=1)        # (1, 4CS)

    # replication / head-select / merge / offset / mask constants
    repq = np.zeros((R, BL), f32)
    msum = np.zeros((BL, R), f32)
    qsel = np.zeros((R, CS), f32)
    offb = np.full((R, BL), 2.0 * MASK_VALUE, f32)
    maskb = np.full((R, BL), 2.0 * MASK_VALUE, f32)
    off = np.asarray(p['bp'], f32).reshape(-1) @ np.asarray(p['wpair'], f32)   # (H,)
    for b in range(B):
        for h in range(H):
            for i in range(L):
                r = b * H * L + h * L + i
                repq[r, b * L + i] = 1.0
                msum[b * L + i, r] = 1.0
                qsel[r, h * DH:(h + 1) * DH] = 1.0
                offb[r, b * L:(b + 1) * L] = off[h]
                maskb[r, b * L:(b + 1) * L] = MASK_VALUE

    # boundary-aware residue-shift operators (batch edges zeroed)
    sm1 = np.zeros((BL, BL), f32)
    sp1 = np.zeros((BL, BL), f32)
    for r in range(BL):
        if r % L != 0:
            sm1[r, r - 1] = 1.0
        if r % L != L - 1:
            sp1[r, r + 1] = 1.0

    place = np.concatenate([np.eye(L, dtype=f32), np.eye(L, dtype=f32)], axis=1)  # (L, BL)
    wo = np.asarray(p['wo'], f32)
    bo = np.asarray(p['bo'], f32).reshape(1, CS)

    # batch-block-diagonal pair-bias contraction (pair-LN gamma + centering folded)
    gpw = np.asarray(p['gp'], f32).reshape(CP, 1) * np.asarray(p['wpair'], f32)   # (CP, H)
    gpw_c = gpw - gpw.mean(axis=0, keepdims=True)
    abig = np.zeros((R, BL * CP), f32)
    poolc = np.zeros((BL, BL * CP), f32)
    for b in range(B):
        for i in range(L):
            ri = b * L + i
            poolc[ri, ri * CP:(ri + 1) * CP] = 1.0 / CP
            for h in range(H):
                abig[b * H * L + h * L + i, ri * CP:(ri + 1) * CP] = gpw_c[:, h]

    PA = np.concatenate([Wg, msum, projb, taps, cbias], axis=0)
    PB = np.concatenate([sm1, sp1, repq, qsel, offb, maskb, place, wo, bo], axis=0)
    PC = np.concatenate([abig, poolc], axis=0)
    assert PA.shape == (PA_ROWS, PCOLS)
    assert PB.shape == (PB_ROWS, BL)
    assert PC.shape == (PC_ROWS, BL * CP)
    return jnp.asarray(PA), jnp.asarray(PB), jnp.asarray(PC)


def make_seq_attention_with_pair_bias(params):
    """Pack constants once per weight set; return a jitted forward closure."""
    PA, PB, PC = pack_params(params)
    vmem = pl.BlockSpec(memory_space=pltpu.MemorySpace.VMEM)
    call = pl.pallas_call(
        seq_attn_pair_bias_kernel,
        out_shape=jax.ShapeDtypeStruct((BL, CS), jnp.float32),
        in_specs=[vmem] * 7,
        out_specs=vmem,
    )

    @jax.jit
    def fwd(seq_act, pair_act, mask, pair_mask):
        seq_flat = seq_act.reshape(BL, CS).astype(jnp.float32)
        pt = jnp.transpose(pair_act, (0, 1, 3, 2)).reshape(BL * CP, L).astype(jnp.float32)
        pm = pair_mask.reshape(BL, L).astype(jnp.float32)
        km = mask.reshape(1, BL).astype(jnp.float32)
        out = call(seq_flat, pt, pm, km, PA, PB, PC)
        return out.reshape(B, L, CS)

    return fwd


# ---- deterministic parameter construction (synthetic, no checkpoint) ---------
def expand_inception(convs):
    """Fold per-group Conv1d params into a (KMAX, CS) tap table + (1, CS) bias."""
    Wf = np.zeros((KMAX, CS), np.float32)
    bf = np.zeros((1, CS), np.float32)
    gsize = H // len(KERNELS)
    for h in range(H):
        g = h // gsize
        for d in range(DH):
            c = h * DH + d
            if g == 0:                       # identity group (kernel size 1)
                Wf[PAD, c] = 1.0
            else:
                w, bb = convs[g - 1]
                w = np.asarray(w); bb = np.asarray(bb)
                kk = w.shape[1]
                off = PAD - kk // 2
                Wf[off:off + kk, c] = w[d]
                bf[0, c] = bb[d]
    return jnp.asarray(Wf), jnp.asarray(bf)


def make_params(key):
    it = iter(jax.random.split(key, 32))
    nx = lambda shape, sc: jax.random.normal(next(it), shape, jnp.float32) * sc
    p = {}
    p['gs'] = 1.0 + nx((1, CS), 0.1)
    p['bs'] = nx((1, CS), 0.1)
    p['gp'] = 1.0 + nx((1, CP), 0.1)
    p['bp'] = nx((1, CP), 0.1)
    p['wpair'] = nx((CP, H), CP ** -0.5)
    p['wq'] = nx((CS, CS), CS ** -0.5)
    p['wk'] = nx((CS, CS), CS ** -0.5)
    p['wv'] = nx((CS, CS), CS ** -0.5)
    p['wg'] = nx((CS, CS), CS ** -0.5)
    p['bg'] = nx((1, CS), 0.1)
    p['wo'] = nx((CS, CS), CS ** -0.5)
    p['bo'] = nx((1, CS), 0.1)
    conv_raw = {}
    for name in ('q', 'k', 'v'):
        convs = [(nx((DH, kk), 0.4), nx((DH,), 0.1)) for kk in KERNELS[1:]]
        conv_raw[name] = convs
        w_full, b_full = expand_inception(convs)
        p[f'{name}cw'] = w_full
        p[f'{name}cb'] = b_full
    return p, conv_raw


# ---- pure-JAX reference mirroring the PyTorch forward ------------------------
def reference(seq_act, pair_act, mask, pair_mask, p, conv_raw):
    def ln(x, g, b):
        g, b = g.reshape(-1), b.reshape(-1)
        mu = jnp.mean(x, -1, keepdims=True)
        var = jnp.mean((x - mu) ** 2, -1, keepdims=True)
        return (x - mu) * jax.lax.rsqrt(var + EPS) * g + b

    s = ln(seq_act, p['gs'], p['bs'])
    pn = ln(pair_act, p['gp'], p['bp'])
    bias = jnp.einsum('bijc,ch->bhij', pn, p['wpair'])
    q, k, v = s @ p['wq'], s @ p['wk'], s @ p['wv']

    def split(x):
        return x.reshape(B, L, H, DH).transpose(0, 2, 1, 3)   # (B,H,L,DH)

    q, k, v = split(q), split(k), split(v)

    def incep(x, convs):
        gnum = H // len(KERNELS)
        outs = [x[:, :gnum]]
        for i, (w, bb) in enumerate(convs):
            xg = x[:, gnum * (i + 1):gnum * (i + 2)]
            kk = w.shape[1]
            pd = kk // 2
            xp = jnp.pad(xg, ((0, 0), (0, 0), (pd, pd), (0, 0)))
            y = jnp.zeros_like(xg) + bb
            for j in range(kk):
                y = y + w[:, j] * xp[:, :, j:j + L, :]
            outs.append(y)
        return jnp.concatenate(outs, axis=1)

    q = incep(q, conv_raw['q']) * SCALE
    k = incep(k, conv_raw['k'])
    v = incep(v, conv_raw['v'])

    logits = jnp.einsum('bhqd,bhkd->bhqk', q, k) + bias
    kmask = (mask[:, None, None, :] > 0.5) & (pair_mask[:, None] > 0.5)  # (B,1,L,L)
    logits = jnp.where(kmask, logits, MASK_VALUE)
    w = jax.nn.softmax(logits, axis=-1)
    wa = jnp.einsum('bhqk,bhkd->bhqd', w, v)
    wa = wa.transpose(0, 2, 1, 3).reshape(B, L, CS)
    gate = jax.nn.sigmoid(s @ p['wg'] + p['bg'].reshape(-1))
    return (wa * gate) @ p['wo'] + p['bo'].reshape(-1)


if __name__ == "__main__":
    key = jax.random.PRNGKey(0)
    kp, k1, k2, k3 = jax.random.split(key, 4)
    params, conv_raw = make_params(kp)

    seq_act = jax.random.normal(k1, (B, L, CS), jnp.float32)
    pair_act = jax.random.normal(k2, (B, L, L, CP), jnp.float32)
    mask = jnp.ones((B, L), jnp.float32).at[1, -3:].set(0.0)
    pair_mask = (jax.random.uniform(k3, (B, L, L)) > 0.1).astype(jnp.float32)

    fwd = make_seq_attention_with_pair_bias(params)          # packs constants once
    out = jax.block_until_ready(fwd(seq_act, pair_act, mask, pair_mask))

    ref = reference(seq_act, pair_act, mask, pair_mask, params, conv_raw)
    err = float(jnp.max(jnp.abs(out - ref)))
    assert np.isfinite(err) and err < 2e-2, f"max abs err {err}"
    print("KERNEL_OK")
</pallas_src>

<mosaic_0001>
module attributes {stable_mosaic.version = 11 : i64} {
  func.func @seq_attn_pair_bias_kernel(%arg0: memref<32x32xf32, #tpu.memory_space<vmem>>, %arg1: memref<512x16xf32, #tpu.memory_space<vmem>>, %arg2: memref<32x16xf32, #tpu.memory_space<vmem>>, %arg3: memref<1x32xf32, #tpu.memory_space<vmem>>, %arg4: memref<69x128xf32, #tpu.memory_space<vmem>>, %arg5: memref<625x32xf32, #tpu.memory_space<vmem>>, %arg6: memref<160x512xf32, #tpu.memory_space<vmem>>, %arg7: memref<32x32xf32, #tpu.memory_space<vmem>>) attributes {dimension_semantics = [], scalar_prefetch = 0 : i64, scratch_operands = 0 : i64, tpu.core_type = #tpu.core_type<tc>} {
    %c0 = arith.constant 0 : index
    %c0_0 = arith.constant 0 : index
    %0 = vector.load %arg4[%c0, %c0_0] : memref<69x128xf32, #tpu.memory_space<vmem>>, vector<32x128xf32>
    %c32 = arith.constant 32 : index
    %c0_1 = arith.constant 0 : index
    %1 = vector.load %arg4[%c32, %c0_1] : memref<69x128xf32, #tpu.memory_space<vmem>>, vector<32x128xf32>
    %c64 = arith.constant 64 : index
    %c0_2 = arith.constant 0 : index
    %2 = vector.load %arg4[%c64, %c0_2] : memref<69x128xf32, #tpu.memory_space<vmem>>, vector<1x128xf32>
    %c65 = arith.constant 65 : index
    %c0_3 = arith.constant 0 : index
    %3 = vector.load %arg4[%c65, %c0_3] : memref<69x128xf32, #tpu.memory_space<vmem>>, vector<1x128xf32>
    %c66 = arith.constant 66 : index
    %c0_4 = arith.constant 0 : index
    %4 = vector.load %arg4[%c66, %c0_4] : memref<69x128xf32, #tpu.memory_space<vmem>>, vector<1x128xf32>
    %c67 = arith.constant 67 : index
    %c0_5 = arith.constant 0 : index
    %5 = vector.load %arg4[%c67, %c0_5] : memref<69x128xf32, #tpu.memory_space<vmem>>, vector<1x128xf32>
    %c68 = arith.constant 68 : index
    %c0_6 = arith.constant 0 : index
    %6 = vector.load %arg4[%c68, %c0_6] : memref<69x128xf32, #tpu.memory_space<vmem>>, vector<1x128xf32>
    %c0_7 = arith.constant 0 : index
    %c0_8 = arith.constant 0 : index
    %7 = vector.load %arg5[%c0_7, %c0_8] : memref<625x32xf32, #tpu.memory_space<vmem>>, vector<32x32xf32>
    %c32_9 = arith.constant 32 : index
    %c0_10 = arith.constant 0 : index
    %8 = vector.load %arg5[%c32_9, %c0_10] : memref<625x32xf32, #tpu.memory_space<vmem>>, vector<32x32xf32>
    %c64_11 = arith.constant 64 : index
    %c0_12 = arith.constant 0 : index
    %9 = vector.load %arg5[%c64_11, %c0_12] : memref<625x32xf32, #tpu.memory_space<vmem>>, vector<128x32xf32>
    %c192 = arith.constant 192 : index
    %c0_13 = arith.constant 0 : index
    %10 = vector.load %arg5[%c192, %c0_13] : memref<625x32xf32, #tpu.memory_space<vmem>>, vector<128x32xf32>
    %c320 = arith.constant 320 : index
    %c0_14 = arith.constant 0 : index
    %11 = vector.load %arg5[%c320, %c0_14] : memref<625x32xf32, #tpu.memory_space<vmem>>, vector<128x32xf32>
    %c448 = arith.constant 448 : index
    %c0_15 = arith.constant 0 : index
    %12 = vector.load %arg5[%c448, %c0_15] : memref<625x32xf32, #tpu.memory_space<vmem>>, vector<128x32xf32>
    %c576 = arith.constant 576 : index
    %c0_16 = arith.constant 0 : index
    %13 = vector.load %arg5[%c576, %c0_16] : memref<625x32xf32, #tpu.memory_space<vmem>>, vector<16x32xf32>
    %c592 = arith.constant 592 : index
    %c0_17 = arith.constant 0 : index
    %14 = vector.load %arg5[%c592, %c0_17] : memref<625x32xf32, #tpu.memory_space<vmem>>, vector<32x32xf32>
    %c624 = arith.constant 624 : index
    %c0_18 = arith.constant 0 : index
    %15 = vector.load %arg5[%c624, %c0_18] : memref<625x32xf32, #tpu.memory_space<vmem>>, vector<1x32xf32>
    %c0_19 = arith.constant 0 : index
    %c0_20 = arith.constant 0 : index
    %16 = vector.load %arg6[%c0_19, %c0_20] : memref<160x512xf32, #tpu.memory_space<vmem>>, vector<128x512xf32>
    %c128 = arith.constant 128 : index
    %c0_21 = arith.constant 0 : index
    %17 = vector.load %arg6[%c128, %c0_21] : memref<160x512xf32, #tpu.memory_space<vmem>>, vector<32x512xf32>
    %c0_22 = arith.constant 0 : index
    %c0_23 = arith.constant 0 : index
    %18 = vector.load %arg0[%c0_22, %c0_23] : memref<32x32xf32, #tpu.memory_space<vmem>>, vector<32x32xf32>
    %cst = arith.constant dense<0.000000e+00> : vector<32xf32>
    %19 = vector.multi_reduction <add>, %18, %cst [1] : vector<32x32xf32> to vector<32xf32>
    %20 = vector.shape_cast %19 : vector<32xf32> to vector<32x1xf32>
    %cst_24 = arith.constant 3.200000e+01 : f32
    %21 = vector.broadcast %cst_24 : f32 to vector<32x1xf32>
    %22 = arith.divf %20, %21 : vector<32x1xf32>
    %23 = vector.broadcast %22 : vector<32x1xf32> to vector<32x32xf32>
    %24 = arith.subf %18, %23 : vector<32x32xf32>
    %25 = arith.mulf %24, %24 : vector<32x32xf32>
    %cst_25 = arith.constant dense<0.000000e+00> : vector<32xf32>
    %26 = vector.multi_reduction <add>, %25, %cst_25 [1] : vector<32x32xf32> to vector<32xf32>
    %27 = vector.shape_cast %26 : vector<32xf32> to vector<32x1xf32>
    %cst_26 = arith.constant 3.200000e+01 : f32
    %28 = vector.broadcast %cst_26 : f32 to vector<32x1xf32>
    %29 = arith.divf %27, %28 : vector<32x1xf32>
    %30 = vector.broadcast %22 : vector<32x1xf32> to vector<32x32xf32>
    %31 = arith.subf %18, %30 : vector<32x32xf32>
    %cst_27 = arith.constant 9.99999974E-6 : f32
    %32 = vector.broadcast %cst_27 : f32 to vector<32x1xf32>
    %33 = arith.addf %29, %32 : vector<32x1xf32>
    %34 = math.rsqrt %33 : vector<32x1xf32>
    %35 = vector.broadcast %34 : vector<32x1xf32> to vector<32x32xf32>
    %36 = arith.mulf %31, %35 : vector<32x32xf32>
    %cst_28 = arith.constant dense<0.000000e+00> : vector<32x128xf32>
    %37 = tpu.matmul %36, %0, %cst_28 {dimension_numbers = #tpu.dot_dimension_numbers<[1], [0], [0], [1], [0, 0, 1, 1], [], []>} : vector<32x32xf32>, vector<32x128xf32>, vector<32x128xf32> -> vector<32x128xf32>
    %38 = vector.broadcast %2 : vector<1x128xf32> to vector<32x128xf32>
    %39 = arith.addf %37, %38 : vector<32x128xf32>
    %cst_29 = arith.constant dense<0.000000e+00> : vector<32x128xf32>
    %40 = tpu.matmul %7, %39, %cst_29 {dimension_numbers = #tpu.dot_dimension_numbers<[1], [0], [0], [1], [0, 0, 1, 1], [], []>} : vector<32x32xf32>, vector<32x128xf32>, vector<32x128xf32> -> vector<32x128xf32>
    %cst_30 = arith.constant dense<0.000000e+00> : vector<32x128xf32>
    %41 = tpu.matmul %8, %39, %cst_30 {dimension_numbers = #tpu.dot_dimension_numbers<[1], [0], [0], [1], [0, 0, 1, 1], [], []>} : vector<32x32xf32>, vector<32x128xf32>, vector<32x128xf32> -> vector<32x128xf32>
    %42 = vector.broadcast %4 : vector<1x128xf32> to vector<32x128xf32>
    %43 = arith.mulf %39, %42 : vector<32x128xf32>
    %44 = vector.broadcast %3 : vector<1x128xf32> to vector<32x128xf32>
    %45 = arith.mulf %40, %44 : vector<32x128xf32>
    %46 = arith.addf %43, %45 : vector<32x128xf32>
    %47 = vector.broadcast %5 : vector<1x128xf32> to vector<32x128xf32>
    %48 = arith.mulf %41, %47 : vector<32x128xf32>
    %49 = arith.addf %46, %48 : vector<32x128xf32>
    %50 = vector.broadcast %6 : vector<1x128xf32> to vector<32x128xf32>
    %51 = arith.addf %49, %50 : vector<32x128xf32>
    %52 = vector.extract_strided_slice %51 {offsets = [0, 0], sizes = [32, 32], strides = [1, 1]} : vector<32x128xf32> to vector<32x32xf32>
    %53 = vector.extract_strided_slice %51 {offsets = [0, 32], sizes = [32, 32], strides = [1, 1]} : vector<32x128xf32> to vector<32x32xf32>
    %54 = vector.extract_strided_slice %51 {offsets = [0, 64], sizes = [32, 32], strides = [1, 1]} : vector<32x128xf32> to vector<32x32xf32>
    %55 = vector.extract_strided_slice %51 {offsets = [0, 96], sizes = [32, 32], strides = [1, 1]} : vector<32x128xf32> to vector<32x32xf32>
    %56 = arith.negf %55 : vector<32x32xf32>
    %57 = math.exp %56 : vector<32x32xf32>
    %cst_31 = arith.constant 1.000000e+00 : f32
    %58 = vector.broadcast %cst_31 : f32 to vector<32x32xf32>
    %59 = arith.addf %58, %57 : vector<32x32xf32>
    %60 = arith.divf %58, %59 : vector<32x32xf32>
    %cst_32 = arith.constant dense<0.000000e+00> : vector<128x32xf32>
    %61 = tpu.matmul %9, %52, %cst_32 {dimension_numbers = #tpu.dot_dimension_numbers<[1], [0], [0], [1], [0, 0, 1, 1], [], []>} : vector<128x32xf32>, vector<32x32xf32>, vector<128x32xf32> -> vector<128x32xf32>
    %62 = arith.mulf %10, %61 : vector<128x32xf32>
    %cst_33 = arith.constant dense<0.000000e+00> : vector<128x32xf32>
    %63 = tpu.matmul %62, %53, %cst_33 {dimension_numbers = #tpu.dot_dimension_numbers<[1], [1], [0], [0], [0, 0, 1, 0], [], []>} : vector<128x32xf32>, vector<32x32xf32>, vector<128x32xf32> -> vector<128x32xf32>
    %c0_34 = arith.constant 0 : index
    %c0_35 = arith.constant 0 : index
    %64 = vector.load %arg1[%c0_34, %c0_35] : memref<512x16xf32, #tpu.memory_space<vmem>>, vector<512x16xf32>
    %cst_36 = arith.constant dense<0.000000e+00> : vector<128x16xf32>
    %65 = tpu.matmul %16, %64, %cst_36 {dimension_numbers = #tpu.dot_dimension_numbers<[1], [0], [0], [1], [0, 0, 1, 1], [], []>} : vector<128x512xf32>, vector<512x16xf32>, vector<128x16xf32> -> vector<128x16xf32>
    %cst_37 = arith.constant dense<0.000000e+00> : vector<32x16xf32>
    %66 = tpu.matmul %17, %64, %cst_37 {dimension_numbers = #tpu.dot_dimension_numbers<[1], [0], [0], [1], [0, 0, 1, 1], [], []>} : vector<32x512xf32>, vector<512x16xf32>, vector<32x16xf32> -> vector<32x16xf32>
    %67 = arith.mulf %64, %64 : vector<512x16xf32>
    %cst_38 = arith.constant dense<0.000000e+00> : vector<32x16xf32>
    %68 = tpu.matmul %17, %67, %cst_38 {dimension_numbers = #tpu.dot_dimension_numbers<[1], [0], [0], [1], [0, 0, 1, 1], [], []>} : vector<32x512xf32>, vector<512x16xf32>, vector<32x16xf32> -> vector<32x16xf32>
    %69 = arith.mulf %66, %66 : vector<32x16xf32>
    %70 = arith.subf %68, %69 : vector<32x16xf32>
    %cst_39 = arith.constant 9.99999974E-6 : f32
    %71 = vector.broadcast %cst_39 : f32 to vector<32x16xf32>
    %72 = arith.addf %70, %71 : vector<32x16xf32>
    %73 = math.rsqrt %72 : vector<32x16xf32>
    %cst_40 = arith.constant dense<0.000000e+00> : vector<128x16xf32>
    %74 = tpu.matmul %9, %73, %cst_40 {dimension_numbers = #tpu.dot_dimension_numbers<[1], [0], [0], [1], [0, 0, 1, 1], [], []>} : vector<128x32xf32>, vector<32x16xf32>, vector<128x16xf32> -> vector<128x16xf32>
    %75 = arith.mulf %74, %65 : vector<128x16xf32>
    %cst_41 = arith.constant dense<0.000000e+00> : vector<128x32xf32>
    %76 = tpu.matmul %75, %13, %cst_41 {dimension_numbers = #tpu.dot_dimension_numbers<[1], [0], [0], [1], [0, 0, 1, 1], [], []>} : vector<128x16xf32>, vector<16x32xf32>, vector<128x32xf32> -> vector<128x32xf32>
    %c0_42 = arith.constant 0 : index
    %c0_43 = arith.constant 0 : index
    %77 = vector.load %arg2[%c0_42, %c0_43] : memref<32x16xf32, #tpu.memory_space<vmem>>, vector<32x16xf32>
    %cst_44 = arith.constant dense<0.000000e+00> : vector<128x16xf32>
    %78 = tpu.matmul %9, %77, %cst_44 {dimension_numbers = #tpu.dot_dimension_numbers<[1], [0], [0], [1], [0, 0, 1, 1], [], []>} : vector<128x32xf32>, vector<32x16xf32>, vector<128x16xf32> -> vector<128x16xf32>
    %cst_45 = arith.constant dense<0.000000e+00> : vector<128x32xf32>
    %79 = tpu.matmul %78, %13, %cst_45 {dimension_numbers = #tpu.dot_dimension_numbers<[1], [0], [0], [1], [0, 0, 1, 1], [], []>} : vector<128x16xf32>, vector<16x32xf32>, vector<128x32xf32> -> vector<128x32xf32>
    %c0_46 = arith.constant 0 : index
    %c0_47 = arith.constant 0 : index
    %80 = vector.load %arg3[%c0_46, %c0_47] : memref<1x32xf32, #tpu.memory_space<vmem>>, vector<1x32xf32>
    %81 = vector.broadcast %80 : vector<1x32xf32> to vector<128x32xf32>
    %82 = arith.mulf %79, %81 : vector<128x32xf32>
    %cst_48 = arith.constant 5.000000e-01 : f32
    %83 = vector.broadcast %cst_48 : f32 to vector<128x32xf32>
    %84 = arith.cmpf ogt, %82, %83 : vector<128x32xf32>
    %85 = arith.addf %63, %76 : vector<128x32xf32>
    %86 = arith.addf %85, %11 : vector<128x32xf32>
    %87 = arith.select %84, %86, %12 : vector<128x32xi1>, vector<128x32xf32>
    %cst_49 = arith.constant dense<0xFF800000> : vector<128xf32>
    %88 = vector.multi_reduction <maximumf>, %87, %cst_49 [1] : vector<128x32xf32> to vector<128xf32>
    %89 = vector.shape_cast %88 : vector<128xf32> to vector<128x1xf32>
    %90 = vector.broadcast %89 : vector<128x1xf32> to vector<128x32xf32>
    %91 = arith.subf %87, %90 : vector<128x32xf32>
    %92 = math.exp %91 : vector<128x32xf32>
    %cst_50 = arith.constant dense<0.000000e+00> : vector<128xf32>
    %93 = vector.multi_reduction <add>, %92, %cst_50 [1] : vector<128x32xf32> to vector<128xf32>
    %94 = vector.shape_cast %93 : vector<128xf32> to vector<128x1xf32>
    %95 = tpu.reciprocal %94 : vector<128x1xf32> -> vector<128x1xf32>
    %96 = vector.broadcast %95 : vector<128x1xf32> to vector<128x32xf32>
    %97 = arith.mulf %92, %96 : vector<128x32xf32>
    %cst_51 = arith.constant dense<0.000000e+00> : vector<128x32xf32>
    %98 = tpu.matmul %97, %54, %cst_51 {dimension_numbers = #tpu.dot_dimension_numbers<[1], [0], [0], [1], [0, 0, 1, 1], [], []>} : vector<128x32xf32>, vector<32x32xf32>, vector<128x32xf32> -> vector<128x32xf32>
    %99 = arith.mulf %10, %98 : vector<128x32xf32>
    %cst_52 = arith.constant dense<0.000000e+00> : vector<32x32xf32>
    %100 = tpu.matmul %1, %99, %cst_52 {dimension_numbers = #tpu.dot_dimension_numbers<[1], [0], [0], [1], [0, 0, 1, 1], [], []>} : vector<32x128xf32>, vector<128x32xf32>, vector<32x32xf32> -> vector<32x32xf32>
    %101 = arith.mulf %100, %60 : vector<32x32xf32>
    %cst_53 = arith.constant dense<0.000000e+00> : vector<32x32xf32>
    %102 = tpu.matmul %101, %14, %cst_53 {dimension_numbers = #tpu.dot_dimension_numbers<[1], [0], [0], [1], [0, 0, 1, 1], [], []>} : vector<32x32xf32>, vector<32x32xf32>, vector<32x32xf32> -> vector<32x32xf32>
    %103 = vector.broadcast %15 : vector<1x32xf32> to vector<32x32xf32>
    %104 = arith.addf %102, %103 : vector<32x32xf32>
    %c0_54 = arith.constant 0 : index
    %c0_55 = arith.constant 0 : index
    %105 = vector.load %arg7[%c0_54, %c0_55] : memref<32x32xf32, #tpu.memory_space<vmem>>, vector<32x32xf32>
    tpu.vector_store %arg7[%c0_54, %c0_55], %104 {strides = array<i32>} : memref<32x32xf32, #tpu.memory_space<vmem>>, vector<32x32xf32>,
    return
  }
}

</mosaic_0001>

<bundles_post_ra>
// kernel: fwd.1
= control target key start
LH: loop header
LB: loop body
LE: loop exit
PB: predicated region body
PF: predicated region fallthrough
CT: control target
= control target key end

     0   :  { %12 = vsyncpa [#allocation3], 0  ;;  %s4702_s0 = inlined_call_operand.vmem [shape: f32[32,32], index: 0, kind: input, shape index: {}]   ;;  %s4703_s1 = inlined_call_operand.vmem [shape: f32[512,16], index: 1, kind: input, shape index: {}]   ;;  %s4704_s2 = inlined_call_operand.vmem [shape: f32[32,16], index: 2, kind: input, shape index: {}]   ;;  %s4705_s3 = inlined_call_operand.vmem [shape: f32[1,32], index: 3, kind: input, shape index: {}]   ;;  %s4706_s4 = inlined_call_operand.vmem [shape: f32[69,128], index: 4, kind: input, shape index: {}]   ;;  %s4707_s5 = inlined_call_operand.hbm [shape: f32[625,32], index: 5, kind: input, shape index: {}]   ;;  %s4708_s6 = inlined_call_operand.vmem [shape: f32[160,512], index: 6, kind: input, shape index: {}]   ;;  %s4709_s7 = inlined_call_operand.hbm [shape: f32[32,32], index: 7, kind: output, shape index: {}]  }
   0x1   :  { %13 = vsyncpa [#allocation4], 0  ;;  %s28_s26 = sshll.u32 %s4707_s5, 4  ;;  %s2950_s27 = smov [#allocation2]   ;;  %s29_s26 = int_to_ptr.hbm [resolvable:$true] %s28_s26 }
   0x2   :  { %s30_s28 = sshll.u32 %s2950_s27, 4  ;;  %s2951_s29 = smov 128   ;;  %s31_s28 = int_to_ptr.vmem [resolvable:$true] %s30_s28 }
   0x3   :  { %s2952_s30 = smov 8  }
   0x4   :  { %36 = dma.hbm_to_vmem [thread:$0]  %s29_s26, 10112, %s31_s28, [#allocation3], %s2951_s29, %s2951_s29, %s2952_s30  }
   0x5   :  { %2946 = dma.done.wait [#allocation3], 10112  }
   0x6   :  { %2947 = vsyncadd [#allocation3], 4294957184  ;;  %vm219_vm0 = vcmask 261120   ;;  %v217_v0 = vld [vmem:[%s4702_s0 + $0x10] sm:$0xff]  ;;  %v215_v1 = vld [vmem:[%s4702_s0] sm:$0xff]  ;;  %v2953_v8 = vmov 32.0  }
   0x7   :  { %v226_v2 = vsel %vm219_vm0, %v217_v0, 0.0  ;;  %v220_v3 = vsel %vm219_vm0, %v215_v1, 0.0  ;;  %v218_v4 = vld [vmem:[%s4702_s0 + $0x18] sm:$0xff]  ;;  %v216_v5 = vld [vmem:[%s4702_s0 + $0x8] sm:$0xff]  ;;  %2770 = vrcp.f32 %v2953_v8  ;;  %v45_v36 = vld [vmem:[%s4706_s4 + $0x10] sm:$0xff]  ;;  %s2954_s28 = smov 96  }
   0x8   :  { %227 = vadd.xlane.f32.xlu1 %v226_v2  ;;  %221 = vadd.xlane.f32.xlu0 %v220_v3  ;;  %v229_v6 = vsel %vm219_vm0, %v218_v4, 0.0  ;;  %v223_v7 = vsel %vm219_vm0, %v216_v5, 0.0  ;;  %v46_v35 = vld [vmem:[%s4706_s4 + $0x18] sm:$0xff]  ;;  %v44_v37 = vld [vmem:[%s4706_s4 + $0x8] sm:$0xff]  ;;  %v43_v38 = vld [vmem:[%s4706_s4] sm:$0xff]  ;;  %s2956_s26 = smov 32  }
   0x9   :  { %340 = vmatpush.msra.mxu0 %v46_v35  ;;  %v3111_v35 = vld [vmem:[%s4703_s1 + $0x50] sm:$0xff]  ;;  %s2548_s15 = sshll.u32 %s4709_s7, 4  ;;  %s2549_s15 = int_to_ptr.hbm [resolvable:$true] %s2548_s15 }
   0xb   :  { %341 = vmatpush.msra.mxu0 %v45_v36  ;;  %v57_v36 = vld [vmem:[#allocation2 + $0x8] sm:$0xff] }
   0xd   :  { %v2771_v9 = vpop.eup %2770  ;;  %342 = vmatpush.msra.mxu0 %v44_v37  ;;  %v61_v37 = vld [vmem:[#allocation2 + $0x28] sm:$0xff] }
   0xe   :  { %v233_v10 = vmul.f32 32.0, %v2771_v9  ;;  %vm237_vm1 = vweird.f32 %v2771_v9 }
   0xf   :  { %343 = vmatpush.msra.mxu0 %v43_v38  ;;  %v3118_v38 = vld [vmem:[%s4703_s1 + $0x48] sm:$0xff] }
  0x10   :  { %230 = vadd.xlane.f32.xlu1 %v229_v6  ;;  %224 = vadd.xlane.f32.xlu0 %v223_v7  ;;  %v234_v11 = vsub.f32 1.0, %v233_v10 }
  0x12   :  { %v235_v12 = vmul.f32 %v2771_v9, %v234_v11 }
  0x14   :  { %v236_v13 = vadd.f32 %v2771_v9, %v235_v12 }
  0x16   :  { %v238_v14 = vsel %vm237_vm1, %v2771_v9, %v236_v13 }
  0x7b   :  { %v228_v15 = vpop.xlane.xlu1 %227  ;;  %v222_v16 = vpop.xlane.xlu0 %221 }
  0x7c   :  { %v241_v17 = vmul.f32 %v238_v14, %v228_v15  ;;  %v239_v18 = vmul.f32 %v238_v14, %v222_v16 }
  0x7e   :  { %v3020_v19 = vsub.f32 %v217_v0, %v241_v17  ;;  %v243_v20 = vsub.f32 %v215_v1, %v239_v18 }
  0x80   :  { %v249_v21 = vmul.f32 %v3020_v19, %v3020_v19  ;;  %v247_v22 = vmul.f32 %v243_v20, %v243_v20 }
  0x82   :  { %v257_v23 = vsel %vm219_vm0, %v249_v21, 0.0  ;;  %v251_v24 = vsel %vm219_vm0, %v247_v22, 0.0 }
  0x83   :  { %v231_v25 = vpop.xlane.xlu1 %230  ;;  %258 = vadd.xlane.f32.xlu0 %v257_v23  ;;  %252 = vadd.xlane.f32.xlu2 %v251_v24  ;;  %v225_v26 = vpop.xlane.xlu0 %224  ;;  %v2763_v23 = vld [vmem:[%s4706_s4 + $0x40] ss:$0 sm:$0xff] }
  0x84   :  { %v242_v27 = vmul.f32 %v238_v14, %v231_v25  ;;  %v240_v28 = vmul.f32 %v238_v14, %v225_v26  ;;  %v3067_v26 = vld [vmem:[%s4703_s1 + $0x78] sm:$0xff] }
  0x85   :  { %736 = vmatpush.msrb.mxu0 %v3067_v26 }
  0x86   :  { %v3026_v29 = vsub.f32 %v218_v4, %v242_v27  ;;  %v3028_v30 = vsub.f32 %v216_v5, %v240_v28  ;;  %v3077_v28 = vld [vmem:[%s4703_s1 + $0x70] sm:$0xff] }
  0x87   :  { %737 = vmatpush.msrb.mxu0 %v3077_v28 }
  0x88   :  { %v250_v31 = vmul.f32 %v3026_v29, %v3026_v29  ;;  %v248_v32 = vmul.f32 %v3028_v30, %v3028_v30 }
  0x8a   :  { %v260_v33 = vsel %vm219_vm0, %v250_v31, 0.0  ;;  %v254_v34 = vsel %vm219_vm0, %v248_v32, 0.0  ;;  %v60_v31 = vld [vmem:[#allocation2 + $0x20] sm:$0xff]  ;;  %v3087_v32 = vld [vmem:[%s4703_s1 + $0x68] sm:$0xff] }
  0x8b   :  { %261 = vadd.xlane.f32.xlu1 %v260_v33  ;;  %255 = vadd.xlane.f32.xlu2 %v254_v34  ;;  %v3097_v33 = vld [vmem:[%s4703_s1 + $0x60] sm:$0xff]  ;;  %v3104_v34 = vld [vmem:[%s4703_s1 + $0x58] sm:$0xff] }
  0x8c   :  { %738 = vmatpush.msrb.mxu0 %v3087_v32 }
  0x8e   :  { %739 = vmatpush.msrb.mxu0 %v3097_v33 }
  0x90   :  { %740 = vmatpush.msrb.mxu0 %v3104_v34 }
  0x92   :  { %741 = vmatpush.msrb.mxu0 %v3111_v35 }
  0x94   :  { %742 = vmatpush.msrb.mxu0 %v3118_v38 }
  0xf6   :  { %v253_v39 = vpop.xlane.xlu2 %252  ;;  %v259_v40 = vpop.xlane.xlu0 %258 }
  0xf7   :  { %v263_v41 = vmul.f32 %v253_v39, %v238_v14  ;;  %v265_v42 = vmul.f32 %v259_v40, %v238_v14  ;;  %v3127_v39 = vld [vmem:[%s4703_s1 + $0x40] sm:$0xff]  ;;  %v3134_v40 = vld [vmem:[%s4703_s1 + $0x38] sm:$0xff] }
  0xf8   :  { %743 = vmatpush.msrb.mxu0 %v3127_v39 }
  0xf9   :  { %v267_v43 = vadd.f32 1e-05, %v263_v41  ;;  %v269_v44 = vadd.f32 1e-05, %v265_v42  ;;  %v3141_v41 = vld [vmem:[%s4703_s1 + $0x30] sm:$0xff] }
  0xfa   :  { %744 = vmatpush.msrb.mxu0 %v3134_v40  ;;  %v58_v42 = vld [vmem:[#allocation2 + $0x10] sm:$0xff] }
  0xfb   :  { %2772 = vrsqrt.f32 %v267_v43  ;;  %vm277_vm3 = vweird.f32 %v267_v43  ;;  %vm297_vm8 = vweird.f32 %v269_v44 }
  0xfc   :  { %2774 = vrsqrt.f32 %v269_v44  ;;  %745 = vmatpush.msrb.mxu0 %v3141_v41 }
  0xfe   :  { %v262_v45 = vpop.xlane.xlu1 %261  ;;  %v256_v46 = vpop.xlane.xlu2 %255 }
  0xff   :  { %v266_v47 = vmul.f32 %v262_v45, %v238_v14  ;;  %v264_v48 = vmul.f32 %v256_v46, %v238_v14  ;;  %v3157_v45 = vld [vmem:[%s4703_s1 + $0x178] sm:$0xff]  ;;  %v3162_v46 = vld [vmem:[%s4703_s1 + $0x170] sm:$0xff] }
 0x101   :  { %v2773_v49 = vpop.eup %2772  ;;  %v268_v50 = vadd.f32 1e-05, %v264_v48  ;;  %v270_v52 = vadd.f32 1e-05, %v266_v47  ;;  %v3168_v47 = vld [vmem:[%s4703_s1 + $0x20] sm:$0xff]  ;;  %v3176_v48 = vld [vmem:[%s4703_s1 + $0x18] sm:$0xff] }
 0x102   :  { %v272_v51 = vmul.f32 %v2773_v49, %v267_v43  ;;  %v2775_v53 = vpop.eup %2774  ;;  %vm278_vm2 = vweird.f32 %v2773_v49  ;;  %v62_v43 = vld [vmem:[#allocation2 + $0x30] sm:$0xff] }
 0x103   :  { %2776 = vrsqrt.f32 %v268_v50  ;;  %v292_v56 = vmul.f32 %v2775_v53, %v269_v44  ;;  %vm279_vm4 = vmor %vm277_vm3, %vm278_vm2  ;;  %vm287_vm6 = vweird.f32 %v268_v50  ;;  %vm298_vm9 = vweird.f32 %v2775_v53  ;;  %v3148_v44 = vld [vmem:[%s4703_s1 + $0x28] sm:$0xff] }
 0x104   :  { %v273_v54 = vmul.f32 %v2773_v49, %v272_v51  ;;  %2778 = vrsqrt.f32 %v270_v52  ;;  %vm299_vm10 = vmor %vm297_vm8, %vm298_vm9  ;;  %vm307_vm11 = vweird.f32 %v270_v52  ;;  %746 = vmatpush.msrb.mxu0 %v3148_v44  ;;  %v3184_v51 = vld [vmem:[%s4703_s1 + $0x10] sm:$0xff] }
 0x105   :  { %v293_v60 = vmul.f32 %v2775_v53, %v292_v56  ;;  %v3217_v56 = vld [vmem:[%s4703_s1] sm:$0xff] }
 0x106   :  { %v274_v55 = vmul.f32 0.5, %v273_v54  ;;  %747 = vmatpush.msrb.mxu0 %v3168_v47  ;;  %v3205_v54 = vld [vmem:[%s4703_s1 + $0x160] sm:$0xff] }
 0x107   :  { %v294_v2 = vmul.f32 0.5, %v293_v60  ;;  %v3242_v60 = vld [vmem:[%s4703_s1 + $0xf0] sm:$0xff] }
 0x108   :  { %v275_v57 = vsub.f32 1.5, %v274_v55  ;;  %748 = vmatpush.msrb.mxu0 %v3176_v48  ;;  %v3210_v55 = vld [vmem:[%s4703_s1 + $0x158] sm:$0xff] }
 0x109   :  { %v2777_v58 = vpop.eup %2776  ;;  %v295_v6 = vsub.f32 1.5, %v294_v2  ;;  %v3278_v2 = vld [vmem:[%s4703_s1 + $0x130] sm:$0xff] }
 0x10a   :  { %v276_v59 = vmul.f32 %v2773_v49, %v275_v57  ;;  %v282_v61 = vmul.f32 %v2777_v58, %v268_v50  ;;  %v2779_v62 = vpop.eup %2778  ;;  %vm288_vm5 = vweird.f32 %v2777_v58  ;;  %v63_v50 = vld [vmem:[#allocation2 + $0x38] sm:$0xff]  ;;  %749 = vmatpush.msrb.mxu0 %v3184_v51  ;;  %v3223_v57 = vld [vmem:[%s4703_s1 + $0x150] sm:$0xff] }
 0x10b   :  { %v302_v3 = vmul.f32 %v2779_v62, %v270_v52  ;;  %vm289_vm7 = vmor %vm287_vm6, %vm288_vm5  ;;  %v296_v12 = vmul.f32 %v2775_v53, %v295_v6  ;;  %vm308_vm12 = vweird.f32 %v2779_v62  ;;  %v3193_v52 = vld [vmem:[%s4703_s1 + $0x168] sm:$0xff] }
 0x10c   :  { %v280_v63 = vsel %vm279_vm4, %v2773_v49, %v276_v59  ;;  %v283_v0 = vmul.f32 %v2777_v58, %v282_v61  ;;  %vm309_vm13 = vmor %vm307_vm11, %vm308_vm12  ;;  %v59_v49 = vld [vmem:[#allocation2 + $0x18] sm:$0xff]  ;;  %v3247_v61 = vld [vmem:[%s4703_s1 + $0x148] sm:$0xff]  ;;  %vm1425_vm11 = vcmask 130048  }
 0x10d   :  { %v311_v1 = vmul.f32 %v280_v63, %v243_v20  ;;  %v303_v7 = vmul.f32 %v2779_v62, %v302_v3  ;;  %v300_v14 = vsel %vm299_vm10, %v2775_v53, %v296_v12  ;;  %v3199_v53 = vld [vmem:[%s4703_s1 + $0x8] sm:$0xff]  ;;  %v3234_v59 = vld [vmem:[%s4703_s1 + $0xf8] sm:$0xff]  ;;  %v175_v3 = vld [vmem:[%s4708_s6 + $0x140] sm:$0xff] }
 0x10e   :  { %v284_v4 = vmul.f32 0.5, %v283_v0  ;;  %v313_v15 = vmul.f32 %v300_v14, %v3020_v19  ;;  %750 = vmatpush.msrb.mxu0 %v3199_v53  ;;  %v3260_v63 = vld [vmem:[%s4703_s1 + $0xe8] sm:$0xff]  ;;  %v3265_v0 = vld [vmem:[%s4703_s1 + $0x138] sm:$0xff]  ;;  %v187_v12 = vld [vmem:[%s4708_s6 + $0x1a0] sm:$0xff] }
 0x10f   :  { %2561 = vmatmul.msk.f32.vlgmr.msra.gmra.mxu0 %vm219_vm0, %v311_v1  ;;  %v304_v11 = vmul.f32 0.5, %v303_v7  ;;  %v3273_v1 = vld [vmem:[%s4703_s1 + $0xe0] sm:$0xff]  ;;  %v3302_v6 = vld [vmem:[%s4703_s1 + $0x128] sm:$0xff]  ;;  %v3351_v14 = vld [vmem:[%s4703_s1 + $0xb0] sm:$0xff] }
 0x110   :  { %v285_v5 = vsub.f32 1.5, %v284_v4  ;;  %751 = vmatpush.msrb.mxu0 %v3217_v56  ;;  %v3289_v4 = vld [vmem:[%s4703_s1 + $0xd8] sm:$0xff]  ;;  %v3310_v7 = vld [vmem:[%s4703_s1 + $0xc8] sm:$0xff] }
 0x111   :  { %v305_v13 = vsub.f32 1.5, %v304_v11  ;;  %v183_v11 = vld [vmem:[%s4708_s6 + $0x180] sm:$0xff] }
 0x112   :  { %v286_v8 = vmul.f32 %v2777_v58, %v285_v5  ;;  %996 = vmatpush.msra.mxu0 %v3067_v26  ;;  %v3297_v5 = vld [vmem:[%s4703_s1 + $0xd0] sm:$0xff] }
 0x113   :  { %v306_v16 = vmul.f32 %v2779_v62, %v305_v13  ;;  %v191_v13 = vld [vmem:[%s4708_s6 + $0x1c0] sm:$0xff] }
 0x114   :  { %v290_v9 = vsel %vm289_vm7, %v2777_v58, %v286_v8  ;;  %v171_v58 = vld [vmem:[%s4708_s6 + $0x120] sm:$0xff]  ;;  %997 = vmatpush.msra.mxu0 %v3077_v28 }
 0x115   :  { %v312_v10 = vmul.f32 %v290_v9, %v3028_v30  ;;  %v310_v17 = vsel %vm309_vm13, %v2779_v62, %v306_v16  ;;  %v56_v30 = vld [vmem:[#allocation2] sm:$0xff]  ;;  %v3363_v16 = vld [vmem:[%s4703_s1 + $0xa8] sm:$0xff] }
 0x116   :  { %v314_v18 = vmul.f32 %v310_v17, %v3026_v29  ;;  %v3255_v62 = vld [vmem:[%s4703_s1 + $0x140] sm:$0xff]  ;;  %998 = vmatpush.msra.mxu0 %v3087_v32  ;;  %v3368_v17 = vld [vmem:[%s4703_s1 + $0x118] sm:$0xff] }
 0x117   :  { %2562 = vmatmul.msk.f32.gmra.mxu0 %vm219_vm0, %v312_v10  ;;  %v3317_v8 = vld [vmem:[%s4703_s1 + $0xc0] sm:$0xff]  ;;  %v3327_v10 = vld [vmem:[%s4703_s1 + $0xb8] sm:$0xff] }
 0x118   :  { %999 = vmatpush.msra.mxu0 %v3097_v33  ;;  %v179_v9 = vld [vmem:[%s4708_s6 + $0x160] sm:$0xff] }
 0x11a   :  { %1000 = vmatpush.msra.mxu0 %v3104_v34 }
 0x11c   :  { %1001 = vmatpush.msra.mxu0 %v3111_v35 }
 0x11e   :  { %1002 = vmatpush.msra.mxu0 %v3118_v38 }
 0x11f   :  { %2563 = vmatmul.msk.f32.gmra.mxu0 %vm219_vm0, %v313_v15  ;;  %v3356_v15 = vld [vmem:[%s4703_s1 + $0x120] sm:$0xff] }
 0x120   :  { %1003 = vmatpush.msra.mxu0 %v3127_v39 }
 0x122   :  { %1004 = vmatpush.msra.mxu0 %v3134_v40 }
 0x124   :  { %1005 = vmatpush.msra.mxu0 %v3141_v41 }
 0x126   :  { %1006 = vmatpush.msra.mxu0 %v3148_v44 }
 0x127   :  { %2564 = vmatmul.msk.f32.gmra.mxu0 %vm219_vm0, %v314_v18  ;;  %v3375_v18 = vld [vmem:[%s4703_s1 + $0xa0] sm:$0xff] }
 0x128   :  { %1007 = vmatpush.msra.mxu0 %v3168_v47  ;;  %4731 = vst [vmem:[#allocation8_spill] sm:$0xff] %v3375_v18 }
 0x12a   :  { %1008 = vmatpush.msra.mxu0 %v3176_v48 }
 0x12c   :  { %1009 = vmatpush.msra.mxu0 %v3184_v51 }
 0x12e   :  { %1010 = vmatpush.msra.mxu0 %v3199_v53 }
 0x130   :  { %1011 = vmatpush.msra.mxu0 %v3217_v56 }
 0x18c   :  { %v345_v20 = vpop.f32.mrf.mxu0 }
 0x18d   :  { %v3080_v29 = vadd.f32 %v2763_v23, %v345_v20  ;;  %v3380_v20 = vld [vmem:[%s4703_s1 + $0x110] sm:$0xff] }
 0x194   :  { %v348_v21 = vpop.f32.mrf.mxu0 }
 0x195   :  { %v3070_v27 = vadd.f32 %v2763_v23, %v348_v21  ;;  %v195_v21 = vld [vmem:[%s4708_s6 + $0x1e0] sm:$0xff] }
 0x19c   :  { %v351_v22 = vpop.f32.mrf.mxu0 }
 0x19d   :  { %v3060_v19 = vadd.f32 %v2763_v23, %v351_v22  ;;  %v3390_v22 = vld [vmem:[%s4703_s1 + $0x98] sm:$0xff] }
 0x19e   :  { %4732 = vst [vmem:[#allocation9_spill] sm:$0xff] %v3390_v22 }
 0x1a4   :  { %v354_v24 = vpop.f32.mrf.mxu0 }
 0x1a5   :  { %v3058_v25 = vadd.f32 %v2763_v23, %v354_v24  ;;  %v3395_v23 = vld [vmem:[%s4703_s1 + $0x108] sm:$0xff]  ;;  %v1143_v24 = vmul.f32 %v3234_v59, %v3234_v59 }
 0x1a7   :  { %381 = vmatpush.msra.mxu1 %v3058_v25  ;;  %422 = vmatpush.msra.mxu2 %v3058_v25 }
 0x1a9   :  { %382 = vmatpush.msra.mxu1 %v3060_v19  ;;  %423 = vmatpush.msra.mxu2 %v3060_v19 }
 0x1ab   :  { %383 = vmatpush.msra.mxu1 %v3070_v27  ;;  %424 = vmatpush.msra.mxu2 %v3070_v27 }
 0x1ad   :  { %384 = vmatpush.msra.mxu1 %v3080_v29  ;;  %425 = vmatpush.msra.mxu2 %v3080_v29 }
 0x1ae   :  { %2565 = vmatmul.msk.f32.vlgmr.msra.gmra.mxu1 %vm219_vm0, %v56_v30  ;;  %2569 = vmatmul.msk.f32.vlgmr.msra.gmra.mxu2 %vm219_vm0, %v60_v31  ;;  %v3404_v30 = vld [vmem:[%s4703_s1 + $0x90] sm:$0xff]  ;;  %v3409_v31 = vld [vmem:[%s4703_s1 + $0x100] sm:$0xff] }
 0x1af   :  { %2697 = vmatpush.msrb.mxu1 %v3067_v26  ;;  %866 = vmatpush.msrb.mxu2 %v3157_v45  ;;  %4733 = vst [vmem:[#allocation10_spill] sm:$0xff] %v3409_v31 }
 0x1b1   :  { %2698 = vmatpush.msrb.mxu1 %v3077_v28  ;;  %867 = vmatpush.msrb.mxu2 %v3162_v46 }
 0x1b3   :  { %2699 = vmatpush.msrb.mxu1 %v3087_v32  ;;  %868 = vmatpush.msrb.mxu2 %v3193_v52 }
 0x1b5   :  { %2700 = vmatpush.msrb.mxu1 %v3097_v33  ;;  %869 = vmatpush.msrb.mxu2 %v3205_v54 }
 0x1b6   :  { %2566 = vmatmul.msk.f32.gmra.mxu1 %vm219_vm0, %v57_v36  ;;  %2570 = vmatmul.msk.f32.gmra.mxu2 %vm219_vm0, %v61_v37  ;;  %v137_v36 = vld [vmem:[%s4708_s6 + $0x10] sm:$0xff]  ;;  %v3419_v37 = vld [vmem:[%s4703_s1 + $0x88] sm:$0xff] }
 0x1b7   :  { %2701 = vmatpush.msrb.mxu1 %v3104_v34  ;;  %870 = vmatpush.msrb.mxu2 %v3210_v55  ;;  %4734 = vst [vmem:[#allocation11_spill] sm:$0xff] %v3419_v37 }
 0x1b9   :  { %2702 = vmatpush.msrb.mxu1 %v3111_v35  ;;  %871 = vmatpush.msrb.mxu2 %v3223_v57 }
 0x1bb   :  { %2703 = vmatpush.msrb.mxu1 %v3118_v38  ;;  %872 = vmatpush.msrb.mxu2 %v3247_v61 }
 0x1bd   :  { %2704 = vmatpush.msrb.mxu1 %v3127_v39  ;;  %873 = vmatpush.msrb.mxu2 %v3255_v62 }
 0x1be   :  { %2567 = vmatmul.msk.f32.gmra.mxu1 %vm219_vm0, %v58_v42  ;;  %2571 = vmatmul.msk.f32.gmra.mxu2 %vm219_vm0, %v62_v43  ;;  %v3425_v42 = vld [vmem:[%s4703_s1 + $0x80] sm:$0xff]  ;;  %v136_v43 = vld [vmem:[%s4708_s6 + $0x8] sm:$0xff] }
 0x1bf   :  { %2705 = vmatpush.msrb.mxu1 %v3134_v40  ;;  %874 = vmatpush.msrb.mxu2 %v3265_v0  ;;  %4735 = vst [vmem:[#allocation12_spill] sm:$0xff] %v3425_v42 }
 0x1c1   :  { %2706 = vmatpush.msrb.mxu1 %v3141_v41  ;;  %875 = vmatpush.msrb.mxu2 %v3278_v2 }
 0x1c3   :  { %2707 = vmatpush.msrb.mxu1 %v3148_v44  ;;  %876 = vmatpush.msrb.mxu2 %v3302_v6 }
 0x1c5   :  { %2708 = vmatpush.msrb.mxu1 %v3168_v47  ;;  %877 = vmatpush.msrb.mxu2 %v3356_v15 }
 0x1c6   :  { %2568 = vmatmul.msk.f32.gmra.mxu1 %vm219_vm0, %v59_v49  ;;  %2572 = vmatmul.msk.f32.gmra.mxu2 %vm219_vm0, %v63_v50  ;;  %v141_v49 = vld [vmem:[%s4708_s6 + $0x30] sm:$0xff]  ;;  %v140_v50 = vld [vmem:[%s4708_s6 + $0x28] sm:$0xff] }
 0x1c7   :  { %2709 = vmatpush.msrb.mxu1 %v3176_v48  ;;  %878 = vmatpush.msrb.mxu2 %v3368_v17 }
 0x1c9   :  { %2710 = vmatpush.msrb.mxu1 %v3184_v51  ;;  %879 = vmatpush.msrb.mxu2 %v3380_v20 }
 0x1cb   :  { %2711 = vmatpush.msrb.mxu1 %v3199_v53  ;;  %880 = vmatpush.msrb.mxu2 %v3395_v23 }
 0x1cd   :  { %2712 = vmatpush.msrb.mxu1 %v3217_v56  ;;  %881 = vmatpush.msrb.mxu2 %v3409_v31 }
 0x1ce   :  { %779 = vmatmul.f32.vlgmr.msrb.gmra.mxu1 %v171_v58  ;;  %882 = vmatmul.f32.vlgmr.msrb.gmra.mxu2 %v137_v36  ;;  %v145_v58 = vld [vmem:[%s4708_s6 + $0x50] sm:$0xff] }
 0x1cf   :  { %801 = vmatpush.msra.mxu1 %v3234_v59  ;;  %1205 = vmatpush.msra.mxu2 %v1143_v24  ;;  %v2766_v24 = vld [vmem:[%s4706_s4 + $0x43] ss:$0 sm:$0xff] }
 0x1d1   :  { %802 = vmatpush.msra.mxu1 %v3242_v60 }
 0x1d3   :  { %803 = vmatpush.msra.mxu1 %v3260_v63 }
 0x1d5   :  { %804 = vmatpush.msra.mxu1 %v3273_v1 }
 0x1d6   :  { %782 = vmatmul.f32.gmra.mxu1 %v175_v3  ;;  %885 = vmatmul.f32.gmra.mxu2 %v141_v49  ;;  %v153_v49 = vld [vmem:[%s4708_s6 + $0x90] sm:$0xff] }
 0x1d7   :  { %805 = vmatpush.msra.mxu1 %v3289_v4 }
 0x1d9   :  { %806 = vmatpush.msra.mxu1 %v3297_v5 }
 0x1db   :  { %807 = vmatpush.msra.mxu1 %v3310_v7 }
 0x1dd   :  { %808 = vmatpush.msra.mxu1 %v3317_v8 }
 0x1de   :  { %785 = vmatmul.f32.gmra.mxu1 %v179_v9  ;;  %888 = vmatmul.f32.gmra.mxu2 %v145_v58  ;;  %v149_v9 = vld [vmem:[%s4708_s6 + $0x70] sm:$0xff] }
 0x1df   :  { %809 = vmatpush.msra.mxu1 %v3327_v10 }
 0x1e1   :  { %810 = vmatpush.msra.mxu1 %v3351_v14 }
 0x1e3   :  { %811 = vmatpush.msra.mxu1 %v3363_v16 }
 0x1e5   :  { %812 = vmatpush.msra.mxu1 %v3375_v18 }
 0x1e6   :  { %788 = vmatmul.f32.gmra.mxu1 %v183_v11  ;;  %891 = vmatmul.f32.gmra.mxu2 %v149_v9  ;;  %v2765_v11 = vld [vmem:[%s4706_s4 + $0x41] ss:$0 sm:$0xff] }
 0x1e7   :  { %813 = vmatpush.msra.mxu1 %v3390_v22 }
 0x1e9   :  { %814 = vmatpush.msra.mxu1 %v3404_v30 }
 0x1eb   :  { %815 = vmatpush.msra.mxu1 %v3419_v37 }
 0x1ed   :  { %816 = vmatpush.msra.mxu1 %v3425_v42 }
 0x1ee   :  { %791 = vmatmul.f32.gmra.mxu1 %v187_v12  ;;  %v148_v12 = vld [vmem:[%s4708_s6 + $0x68] sm:$0xff]  ;;  %894 = vmatmul.f32.gmra.mxu2 %v153_v49 }
 0x1ef   :  { %1025 = vmatpush.msrb.mxu1 %v3234_v59  ;;  %v144_v59 = vld [vmem:[%s4708_s6 + $0x48] sm:$0xff] }
 0x1f1   :  { %1026 = vmatpush.msrb.mxu1 %v3242_v60 }
 0x1f3   :  { %1027 = vmatpush.msrb.mxu1 %v3260_v63 }
 0x1f5   :  { %1028 = vmatpush.msrb.mxu1 %v3273_v1 }
 0x1f6   :  { %794 = vmatmul.f32.gmra.mxu1 %v191_v13 }
 0x1f7   :  { %1029 = vmatpush.msrb.mxu1 %v3289_v4 }
 0x1f9   :  { %1030 = vmatpush.msrb.mxu1 %v3297_v5 }
 0x1fb   :  { %1031 = vmatpush.msrb.mxu1 %v3310_v7 }
 0x1fd   :  { %1032 = vmatpush.msrb.mxu1 %v3317_v8 }
 0x1fe   :  { %797 = vmatmul.f32.gmra.mxu1 %v195_v21  ;;  %v2764_v21 = vld [vmem:[%s4706_s4 + $0x42] ss:$0 sm:$0xff] }
 0x1ff   :  { %1033 = vmatpush.msrb.mxu1 %v3327_v10 }
 0x201   :  { %1034 = vmatpush.msrb.mxu1 %v3351_v14 }
 0x203   :  { %1035 = vmatpush.msrb.mxu1 %v3363_v16 }
 0x205   :  { %1036 = vmatpush.msrb.mxu1 %v3375_v18 }
 0x206   :  { %817 = vmatmul.f32.vlgmr.msra.gmra.mxu1 %v136_v43 }
 0x207   :  { %1037 = vmatpush.msrb.mxu1 %v3390_v22 }
 0x209   :  { %1038 = vmatpush.msrb.mxu1 %v3404_v30 }
 0x20b   :  { %1039 = vmatpush.msrb.mxu1 %v3419_v37 }
 0x20d   :  { %1040 = vmatpush.msrb.mxu1 %v3425_v42 }
 0x20e   :  { %820 = vmatmul.f32.gmra.mxu1 %v140_v50  ;;  %v440_v50 = vmul.f32 %v2764_v21, %v3080_v29  ;;  %v2767_v29 = vld [vmem:[%s4706_s4 + $0x44] ss:$0 sm:$0xff] }
 0x216   :  { %823 = vmatmul.f32.gmra.mxu1 %v144_v59 }
 0x21e   :  { %826 = vmatmul.f32.gmra.mxu1 %v148_v12  ;;  %v441_v12 = vmul.f32 %v2764_v21, %v3070_v27  ;;  %v157_v27 = vld [vmem:[%s4708_s6 + $0xb0] sm:$0xff] }
 0x21f   :  { %897 = vmatmul.f32.gmra.mxu2 %v157_v27  ;;  %v160_v27 = vld [vmem:[%s4708_s6 + $0xc8] sm:$0xff] }
 0x22b   :  { %v386_v3 = vpop.f32.mrf.mxu1 }
 0x22c   :  { %v445_v43 = vmul.f32 %v2765_v11, %v386_v3  ;;  %v152_v3 = vld [vmem:[%s4708_s6 + $0x88] sm:$0xff] }
 0x22d   :  { %829 = vmatmul.f32.gmra.mxu1 %v152_v3  ;;  %v161_v3 = vld [vmem:[%s4708_s6 + $0xd0] sm:$0xff] }
 0x22e   :  { %v449_v9 = vadd.f32 %v445_v43, %v440_v50  ;;  %900 = vmatmul.f32.gmra.mxu2 %v161_v3  ;;  %v173_v3 = vld [vmem:[%s4708_s6 + $0x130] sm:$0xff] }
 0x231   :  { %v427_v13 = vpop.f32.mrf.mxu2 }
 0x232   :  { %v454_v58 = vmul.f32 %v2766_v24, %v427_v13 }
 0x233   :  { %v389_v36 = vpop.f32.mrf.mxu1 }
 0x234   :  { %v446_v59 = vmul.f32 %v2765_v11, %v389_v36  ;;  %v458_v18 = vadd.f32 %v454_v58, %v449_v9  ;;  %v156_v58 = vld [vmem:[%s4708_s6 + $0xa8] sm:$0xff]  ;;  %v442_v9 = vmul.f32 %v2764_v21, %v3060_v19 }
 0x235   :  { %832 = vmatmul.f32.gmra.mxu1 %v156_v58 }
 0x236   :  { %v450_v13 = vadd.f32 %v446_v59, %v441_v12  ;;  %v3488_v50 = vadd.f32 %v2767_v29, %v458_v18 }
 0x238   :  { %4736 = vst [vmem:[#allocation13_spill] sm:$0xff] %v3488_v50 }
 0x239   :  { %v430_v22 = vpop.f32.mrf.mxu2 }
 0x23a   :  { %v455_v36 = vmul.f32 %v2766_v24, %v430_v22  ;;  %v147_v22 = vld [vmem:[%s4708_s6 + $0x60] sm:$0xff] }
 0x23b   :  { %v392_v49 = vpop.f32.mrf.mxu1 }
 0x23c   :  { %v459_v43 = vadd.f32 %v455_v36, %v450_v13  ;;  %v447_v42 = vmul.f32 %v2765_v11, %v392_v49 }
 0x23d   :  { %835 = vmatmul.f32.gmra.mxu1 %v160_v27  ;;  %v66_v27 = vld [vmem:[#allocation2 + $0x50] sm:$0xff] }
 0x23e   :  { %v3490_v37 = vadd.f32 %v2767_v29, %v459_v43  ;;  %v451_v18 = vadd.f32 %v447_v42, %v442_v9  ;;  %v443_v43 = vmul.f32 %v2764_v21, %v3058_v25  ;;  %v169_v21 = vld [vmem:[%s4708_s6 + $0x110] sm:$0xff] }
 0x23f   :  { %v3694_v25 = vld [vmem:[%s4703_s1 + $0x190] sm:$0xff] }
 0x240   :  { %4737 = vst [vmem:[#allocation14_spill] sm:$0xff] %v3490_v37  ;;  %1763 = vrot.lane.b32.xlu1 %v3490_v37, %s2954_s28 }
 0x241   :  { %v433_v59 = vpop.f32.mrf.mxu2 }
 0x242   :  { %v456_v12 = vmul.f32 %v2766_v24, %v433_v59  ;;  %v165_v59 = vld [vmem:[%s4708_s6 + $0xf0] sm:$0xff] }
 0x243   :  { %v395_v13 = vpop.f32.mrf.mxu1  ;;  %903 = vmatmul.f32.gmra.mxu2 %v165_v59  ;;  %v185_v59 = vld [vmem:[%s4708_s6 + $0x190] sm:$0xff] }
 0x244   :  { %v460_v36 = vadd.f32 %v456_v12, %v451_v18  ;;  %v448_v19 = vmul.f32 %v2765_v11, %v395_v13  ;;  %v164_v12 = vld [vmem:[%s4708_s6 + $0xe8] sm:$0xff] }
 0x245   :  { %838 = vmatmul.f32.gmra.mxu1 %v164_v12  ;;  %v65_v13 = vld [vmem:[#allocation2 + $0x48] sm:$0xff] }
 0x246   :  { %v3503_v49 = vadd.f32 %v2767_v29, %v460_v36  ;;  %v452_v58 = vadd.f32 %v448_v19, %v443_v43  ;;  %v172_v36 = vld [vmem:[%s4708_s6 + $0x128] sm:$0xff]  ;;  %v177_v19 = vld [vmem:[%s4708_s6 + $0x150] sm:$0xff] }
 0x247   :  { %v176_v43 = vld [vmem:[%s4708_s6 + $0x148] sm:$0xff] }
 0x248   :  { %4738 = vst [vmem:[#allocation15_spill] sm:$0xff] %v3503_v49  ;;  %1765 = vrot.lane.b32.xlu0 %v3503_v49, %s2954_s28  ;;  %v184_v12 = vld [vmem:[%s4708_s6 + $0x188] sm:$0xff] }
 0x249   :  { %v436_v42 = vpop.f32.mrf.mxu2 }
 0x24a   :  { %v457_v9 = vmul.f32 %v2766_v24, %v436_v42  ;;  %v64_v24 = vld [vmem:[#allocation2 + $0x40] sm:$0xff]  ;;  %v181_v42 = vld [vmem:[%s4708_s6 + $0x170] sm:$0xff] }
 0x24b   :  { %906 = vmatmul.f32.gmra.mxu2 %v169_v21  ;;  %v189_v21 = vld [vmem:[%s4708_s6 + $0x1b0] sm:$0xff] }
 0x24c   :  { %v461_v18 = vadd.f32 %v457_v9, %v452_v58  ;;  %v67_v58 = vld [vmem:[#allocation2 + $0x58] sm:$0xff]  ;;  %v180_v9 = vld [vmem:[%s4708_s6 + $0x168] sm:$0xff] }
 0x24e   :  { %v3514_v11 = vadd.f32 %v2767_v29, %v461_v18  ;;  %v168_v29 = vld [vmem:[%s4708_s6 + $0x108] sm:$0xff]  ;;  %v68_v18 = vld [vmem:[#allocation2 + $0x60] sm:$0xff] }
 0x24f   :  { %841 = vmatmul.f32.gmra.mxu1 %v168_v29  ;;  %v188_v29 = vld [vmem:[%s4708_s6 + $0x1a8] sm:$0xff] }
 0x250   :  { %4739 = vst [vmem:[#allocation16_spill] sm:$0xff] %v3514_v11  ;;  %1767 = vrot.lane.b32.xlu2 %v3514_v11, %s2954_s28  ;;  %603 = vmatpush.msra.mxu3 %v3514_v11  ;;  %v151_v11 = vld [vmem:[%s4708_s6 + $0x80] sm:$0xff] }
 0x252   :  { %604 = vmatpush.msra.mxu3 %v3503_v49  ;;  %v3726_v49 = vld [vmem:[#allocation2 + $0xa8] sm:$0xff] }
 0x253   :  { %909 = vmatmul.f32.gmra.mxu2 %v173_v3  ;;  %v193_v3 = vld [vmem:[%s4708_s6 + $0x1d0] sm:$0xff]  ;;  %4745 = vst [vmem:[#allocation22_spill] sm:$0xff] %v3726_v49 }
 0x254   :  { %605 = vmatpush.msra.mxu3 %v3490_v37  ;;  %v3708_v37 = vld [vmem:[%s4703_s1 + $0x180] sm:$0xff] }
 0x255   :  { %4742 = vst [vmem:[#allocation19_spill] sm:$0xff] %v3708_v37 }
 0x256   :  { %606 = vmatpush.msra.mxu3 %v3488_v50 }
 0x257   :  { %2577 = vmatmul.msk.f32.vlgmr.msra.gmra.mxu3 %vm219_vm0, %v64_v24  ;;  %844 = vmatmul.f32.gmra.mxu1 %v172_v36  ;;  %v69_v24 = vld [vmem:[#allocation2 + $0x68] sm:$0xff] }
 0x258   :  { %1761 = vrot.lane.b32.xlu2 %v3488_v50, %s2954_s28  ;;  %v192_v36 = vld [vmem:[%s4708_s6 + $0x1c8] sm:$0xff]  ;;  %v3711_v50 = vld [vmem:[#allocation2 + $0xa0] sm:$0xff] }
 0x259   :  { %4743 = vst [vmem:[#allocation20_spill] sm:$0xff] %v3711_v50 }
 0x25b   :  { %912 = vmatmul.f32.gmra.mxu2 %v177_v19  ;;  %v197_v19 = vld [vmem:[%s4708_s6 + $0x1f0] sm:$0xff] }
 0x25f   :  { %2578 = vmatmul.msk.f32.gmra.mxu3 %vm219_vm0, %v65_v13  ;;  %847 = vmatmul.f32.gmra.mxu1 %v176_v43  ;;  %v70_v13 = vld [vmem:[#allocation2 + $0x70] sm:$0xff]  ;;  %v196_v43 = vld [vmem:[%s4708_s6 + $0x1e8] sm:$0xff] }
 0x263   :  { %915 = vmatmul.f32.gmra.mxu2 %v181_v42  ;;  %v72_v42 = vld [vmem:[#allocation2 + $0x80] sm:$0xff] }
 0x267   :  { %2579 = vmatmul.msk.f32.gmra.mxu3 %vm219_vm0, %v66_v27  ;;  %850 = vmatmul.f32.gmra.mxu1 %v180_v9  ;;  %v71_v27 = vld [vmem:[#allocation2 + $0x78] sm:$0xff]  ;;  %v135_v9 = vld [vmem:[%s4708_s6] sm:$0xff] }
 0x268   :  { %752 = vmatmul.f32.vlgmr.msrb.gmra.mxu0 %v135_v9  ;;  %v3667_v9 = vld [vmem:[%s4703_s1 + $0x1a8] sm:$0xff] }
 0x26b   :  { %918 = vmatmul.f32.gmra.mxu2 %v185_v59  ;;  %v3598_v59 = vld [vmem:[%s4703_s1 + $0x1f0] sm:$0xff] }
 0x26f   :  { %2580 = vmatmul.msk.f32.gmra.mxu3 %vm219_vm0, %v67_v58  ;;  %853 = vmatmul.f32.gmra.mxu1 %v184_v12  ;;  %v3589_v58 = vld [vmem:[%s4703_s1 + $0x1f8] sm:$0xff]  ;;  %v3610_v12 = vld [vmem:[%s4703_s1 + $0x1e0] sm:$0xff] }
 0x270   :  { %931 = vmatpush.msrb.mxu3 %v3589_v58  ;;  %1083 = vmatpush.msrb.mxu0 %v3589_v58 }
 0x272   :  { %932 = vmatpush.msrb.mxu3 %v3598_v59  ;;  %1084 = vmatpush.msrb.mxu0 %v3598_v59 }
 0x273   :  { %921 = vmatmul.f32.gmra.mxu2 %v189_v21  ;;  %v73_v21 = vld [vmem:[#allocation2 + $0x88] sm:$0xff] }
 0x277   :  { %2581 = vmatmul.msk.f32.gmra.mxu3 %vm219_vm0, %v68_v18  ;;  %856 = vmatmul.f32.gmra.mxu1 %v188_v29  ;;  %v3605_v18 = vld [vmem:[%s4703_s1 + $0x1e8] sm:$0xff]  ;;  %v139_v29 = vld [vmem:[%s4708_s6 + $0x20] sm:$0xff] }
 0x278   :  { %933 = vmatpush.msrb.mxu3 %v3605_v18  ;;  %1085 = vmatpush.msrb.mxu0 %v3605_v18 }
 0x279   :  { %755 = vmatmul.f32.gmra.mxu0 %v139_v29  ;;  %v75_v29 = vld [vmem:[#allocation2 + $0x98] sm:$0xff] }
 0x27a   :  { %934 = vmatpush.msrb.mxu3 %v3610_v12  ;;  %1086 = vmatpush.msrb.mxu0 %v3610_v12 }
 0x27b   :  { %924 = vmatmul.f32.gmra.mxu2 %v193_v3  ;;  %v3628_v3 = vld [vmem:[%s4703_s1 + $0x1d0] sm:$0xff] }
 0x27f   :  { %2582 = vmatmul.msk.f32.gmra.mxu3 %vm219_vm0, %v69_v24  ;;  %859 = vmatmul.f32.gmra.mxu1 %v192_v36  ;;  %v3620_v24 = vld [vmem:[%s4703_s1 + $0x1d8] sm:$0xff]  ;;  %v3642_v36 = vld [vmem:[%s4703_s1 + $0x1c0] sm:$0xff] }
 0x280   :  { %935 = vmatpush.msrb.mxu3 %v3620_v24  ;;  %1087 = vmatpush.msrb.mxu0 %v3620_v24 }
 0x282   :  { %936 = vmatpush.msrb.mxu3 %v3628_v3  ;;  %1088 = vmatpush.msrb.mxu0 %v3628_v3 }
 0x283   :  { %927 = vmatmul.f32.gmra.mxu2 %v197_v19  ;;  %v74_v19 = vld [vmem:[#allocation2 + $0x90] sm:$0xff] }
 0x287   :  { %2583 = vmatmul.msk.f32.gmra.mxu3 %vm219_vm0, %v70_v13  ;;  %862 = vmatmul.f32.gmra.mxu1 %v196_v43  ;;  %v3635_v13 = vld [vmem:[%s4703_s1 + $0x1c8] sm:$0xff]  ;;  %v143_v43 = vld [vmem:[%s4708_s6 + $0x40] sm:$0xff] }
 0x288   :  { %937 = vmatpush.msrb.mxu3 %v3635_v13  ;;  %1089 = vmatpush.msrb.mxu0 %v3635_v13 }
 0x289   :  { %758 = vmatmul.f32.gmra.mxu0 %v143_v43  ;;  %v3686_v43 = vld [vmem:[%s4703_s1 + $0x198] sm:$0xff] }
 0x28a   :  { %938 = vmatpush.msrb.mxu3 %v3642_v36  ;;  %1090 = vmatpush.msrb.mxu0 %v3642_v36 }
 0x28f   :  { %2584 = vmatmul.msk.f32.gmra.mxu3 %vm219_vm0, %v71_v27  ;;  %v3652_v27 = vld [vmem:[%s4703_s1 + $0x1b8] sm:$0xff] }
 0x290   :  { %939 = vmatpush.msrb.mxu3 %v3652_v27  ;;  %1091 = vmatpush.msrb.mxu0 %v3652_v27 }
 0x291   :  { %761 = vmatmul.f32.gmra.mxu0 %v147_v22 }
 0x297   :  { %2585 = vmatmul.msk.f32.gmra.mxu3 %vm219_vm0, %v72_v42  ;;  %v3660_v42 = vld [vmem:[%s4703_s1 + $0x1b0] sm:$0xff] }
 0x298   :  { %940 = vmatpush.msrb.mxu3 %v3660_v42  ;;  %1092 = vmatpush.msrb.mxu0 %v3660_v42 }
 0x299   :  { %764 = vmatmul.f32.gmra.mxu0 %v151_v11 }
 0x29a   :  { %941 = vmatpush.msrb.mxu3 %v3667_v9  ;;  %1093 = vmatpush.msrb.mxu0 %v3667_v9 }
 0x29f   :  { %2586 = vmatmul.msk.f32.gmra.mxu3 %vm219_vm0, %v73_v21  ;;  %v3674_v21 = vld [vmem:[%s4703_s1 + $0x1a0] sm:$0xff] }
 0x2a0   :  { %942 = vmatpush.msrb.mxu3 %v3674_v21  ;;  %1094 = vmatpush.msrb.mxu0 %v3674_v21 }
 0x2a2   :  { %943 = vmatpush.msrb.mxu3 %v3686_v43  ;;  %1095 = vmatpush.msrb.mxu0 %v3686_v43 }
 0x2a4   :  { %944 = vmatpush.msrb.mxu3 %v3694_v25  ;;  %1096 = vmatpush.msrb.mxu0 %v3694_v25 }
 0x2a7   :  { %2587 = vmatmul.msk.f32.gmra.mxu3 %vm219_vm0, %v74_v19  ;;  %v3678_v19 = vpop.f32.mrf.mxu1 }
 0x2a8   :  { %4740 = vst [vmem:[#allocation17_spill] sm:$0xff] %v3678_v19  ;;  %v3739_v19 = vld [vmem:[#allocation2 + $0xb0] sm:$0xff] }
 0x2a9   :  { %4747 = vst [vmem:[#allocation24_spill] sm:$0xff] %v3739_v19 }
 0x2af   :  { %2588 = vmatmul.msk.f32.gmra.mxu3 %vm219_vm0, %v75_v29  ;;  %v3701_v29 = vld [vmem:[%s4703_s1 + $0x188] sm:$0xff]  ;;  %v3716_v22 = vpop.f32.mrf.mxu1 }
 0x2b0   :  { %4741 = vst [vmem:[#allocation18_spill] sm:$0xff] %v3701_v29  ;;  %945 = vmatpush.msrb.mxu3 %v3701_v29  ;;  %1097 = vmatpush.msrb.mxu0 %v3701_v29 }
 0x2b1   :  { %4744 = vst [vmem:[#allocation21_spill] sm:$0xff] %v3716_v22  ;;  %v155_v22 = vld [vmem:[%s4708_s6 + $0xa0] sm:$0xff] }
 0x2b2   :  { %946 = vmatpush.msrb.mxu3 %v3708_v37  ;;  %1098 = vmatpush.msrb.mxu0 %v3708_v37 }
 0x2b3   :  { %767 = vmatmul.f32.gmra.mxu0 %v155_v22 }
 0x2b4   :  { %1054 = vmatpush.msra.mxu3 %v3157_v45 }
 0x2b6   :  { %1055 = vmatpush.msra.mxu3 %v3162_v46 }
 0x2b7   :  { %2589 = vmatmul.msk.f32.gmra.mxu3 %vm219_vm0, %v3711_v50  ;;  %v3736_v11 = vpop.f32.mrf.mxu1 }
 0x2b8   :  { %1056 = vmatpush.msra.mxu3 %v3193_v52  ;;  %4746 = vst [vmem:[#allocation23_spill] sm:$0xff] %v3736_v11  ;;  %v3752_v11 = vld [vmem:[#allocation2 + $0xb8] sm:$0xff] }
 0x2b9   :  { %4749 = vst [vmem:[#allocation26_spill] sm:$0xff] %v3752_v11 }
 0x2ba   :  { %1057 = vmatpush.msra.mxu3 %v3205_v54 }
 0x2bc   :  { %1058 = vmatpush.msra.mxu3 %v3210_v55 }
 0x2be   :  { %1059 = vmatpush.msra.mxu3 %v3223_v57 }
 0x2bf   :  { %2590 = vmatmul.msk.f32.gmra.mxu3 %vm219_vm0, %v3726_v49  ;;  %v159_v49 = vld [vmem:[%s4708_s6 + $0xc0] sm:$0xff]  ;;  %v3750_v22 = vpop.f32.mrf.mxu1 }
 0x2c0   :  { %1060 = vmatpush.msra.mxu3 %v3247_v61  ;;  %770 = vmatmul.f32.gmra.mxu0 %v159_v49  ;;  %4748 = vst [vmem:[#allocation25_spill] sm:$0xff] %v3750_v22  ;;  %v138_v49 = vld [vmem:[%s4708_s6 + $0x18] sm:$0xff] }
 0x2c2   :  { %1061 = vmatpush.msra.mxu3 %v3255_v62 }
 0x2c4   :  { %1062 = vmatpush.msra.mxu3 %v3265_v0 }
 0x2c6   :  { %1063 = vmatpush.msra.mxu3 %v3278_v2 }
 0x2c7   :  { %2591 = vmatmul.msk.f32.gmra.mxu3 %vm219_vm0, %v3739_v19  ;;  %v163_v19 = vld [vmem:[%s4708_s6 + $0xe0] sm:$0xff]  ;;  %v3767_v22 = vpop.f32.mrf.mxu1 }
 0x2c8   :  { %1064 = vmatpush.msra.mxu3 %v3302_v6  ;;  %773 = vmatmul.f32.gmra.mxu0 %v163_v19  ;;  %4750 = vst [vmem:[#allocation27_spill] sm:$0xff] %v3767_v22  ;;  %v167_v19 = vld [vmem:[%s4708_s6 + $0x100] sm:$0xff]  ;;  %v142_v22 = vld [vmem:[%s4708_s6 + $0x38] sm:$0xff] }
 0x2ca   :  { %1065 = vmatpush.msra.mxu3 %v3356_v15 }
 0x2cc   :  { %1066 = vmatpush.msra.mxu3 %v3368_v17 }
 0x2ce   :  { %1067 = vmatpush.msra.mxu3 %v3380_v20 }
 0x2cf   :  { %2592 = vmatmul.msk.f32.gmra.mxu3 %vm219_vm0, %v3752_v11  ;;  %v3771_v11 = vmul.f32 %v3589_v58, %v3589_v58  ;;  %v3783_v37 = vpop.f32.mrf.mxu1 }
 0x2d0   :  { %1068 = vmatpush.msra.mxu3 %v3395_v23  ;;  %776 = vmatmul.f32.gmra.mxu0 %v167_v19  ;;  %4752 = vst [vmem:[#allocation29_spill] sm:$0xff] %v3783_v37 }
 0x2d2   :  { %1069 = vmatpush.msra.mxu3 %v3409_v31 }
 0x2d7   :  { %947 = vmatmul.f32.vlgmr.msrb.gmra.mxu3 %v138_v49  ;;  %v146_v49 = vld [vmem:[%s4708_s6 + $0x58] sm:$0xff]  ;;  %v3790_v29 = vpop.f32.mrf.mxu1 }
 0x2d8   :  { %2714 = vmatpush.msrb.mxu3 %v3771_v11  ;;  %4754 = vst [vmem:[#allocation31_spill] sm:$0xff] %v3790_v29 }
 0x2da   :  { %v3778_v50 = vpop.f32.mrf.mxu3 }
 0x2db   :  { %4751 = vst [vmem:[#allocation28_spill] sm:$0xff] %v3778_v50  ;;  %v150_v50 = vld [vmem:[%s4708_s6 + $0x78] sm:$0xff] }
 0x2df   :  { %950 = vmatmul.f32.gmra.mxu3 %v142_v22  ;;  %v3799_v37 = vpop.f32.mrf.mxu1  ;;  %v154_v22 = vld [vmem:[%s4708_s6 + $0x98] sm:$0xff] }
 0x2e0   :  { %4757 = vst [vmem:[#allocation34_spill] sm:$0xff] %v3799_v37 }
 0x2e2   :  { %v3785_v58 = vpop.f32.mrf.mxu3 }
 0x2e3   :  { %4753 = vst [vmem:[#allocation30_spill] sm:$0xff] %v3785_v58  ;;  %v1125_v58 = vmul.f32 %v3087_v32, %v3087_v32  ;;  %v1123_v32 = vmul.f32 %v3104_v34, %v3104_v34  ;;  %v1142_v34 = vmul.f32 %v3242_v60, %v3242_v60  ;;  %v1119_v60 = vmul.f32 %v3134_v40, %v3134_v40 }
 0x2e4   :  { %v1117_v40 = vmul.f32 %v3148_v44, %v3148_v44  ;;  %v1137_v44 = vmul.f32 %v3310_v7, %v3310_v7  ;;  %v1114_v7 = vmul.f32 %v3184_v51, %v3184_v51  ;;  %v3933_v51 = vld [vmem:[%s4708_s6 + $0x218] sm:$0xff] }
 0x2e5   :  { %1206 = vmatpush.msra.mxu2 %v1142_v34 }
 0x2e7   :  { %953 = vmatmul.f32.gmra.mxu3 %v146_v49  ;;  %v1159_v49 = vmul.f32 %v3157_v45, %v3157_v45  ;;  %v158_v45 = vld [vmem:[%s4708_s6 + $0xb8] sm:$0xff] }
 0x2ea   :  { %v3792_v19 = vpop.f32.mrf.mxu3 }
 0x2eb   :  { %4755 = vst [vmem:[#allocation32_spill] sm:$0xff] %v3792_v19  ;;  %v3811_v19 = vld [vmem:[%s4708_s6 + $0x200] sm:$0xff] }
 0x2ec   :  { %1012 = vmatmul.f32.vlgmr.msra.gmra.mxu0 %v3811_v19 }
 0x2ed   :  { %1234 = vmatpush.msra.mxu0 %v1159_v49  ;;  %v1124_v49 = vmul.f32 %v3097_v33, %v3097_v33  ;;  %v1122_v33 = vmul.f32 %v3111_v35, %v3111_v35  ;;  %v1120_v35 = vmul.f32 %v3127_v39, %v3127_v39  ;;  %v166_v39 = vld [vmem:[%s4708_s6 + $0xf8] sm:$0xff] }
 0x2ef   :  { %956 = vmatmul.f32.gmra.mxu3 %v150_v50  ;;  %v3817_v50 = vld [vmem:[%s4708_s6 + $0x208] sm:$0xff] }
 0x2f0   :  { %1041 = vmatmul.f32.vlgmr.msrb.gmra.mxu1 %v3817_v50 }
 0x2f2   :  { %v3797_v31 = vpop.f32.mrf.mxu3 }
 0x2f3   :  { %4756 = vst [vmem:[#allocation33_spill] sm:$0xff] %v3797_v31  ;;  %v1126_v31 = vmul.f32 %v3077_v28, %v3077_v28  ;;  %v3844_v28 = vld [vmem:[%s4708_s6 + $0x228] sm:$0xff] }
 0x2f7   :  { %959 = vmatmul.f32.gmra.mxu3 %v154_v22  ;;  %v1127_v22 = vmul.f32 %v3067_v26, %v3067_v26  ;;  %v3836_v26 = vld [vmem:[%s4708_s6 + $0x220] sm:$0xff] }
 0x2f8   :  { %1015 = vmatmul.f32.gmra.mxu0 %v3836_v26  ;;  %1044 = vmatmul.f32.gmra.mxu1 %v3844_v28 }
 0x2f9   :  { %1176 = vmatpush.msra.mxu1 %v1127_v22  ;;  %v1121_v22 = vmul.f32 %v3118_v38, %v3118_v38  ;;  %v3875_v38 = vld [vmem:[%s4708_s6 + $0x248] sm:$0xff] }
 0x2fa   :  { %v3806_v29 = vpop.f32.mrf.mxu3 }
 0x2fb   :  { %4758 = vst [vmem:[#allocation35_spill] sm:$0xff] %v3806_v29  ;;  %v3825_v29 = vpop.f32.mrf.mxu1  ;;  %1177 = vmatpush.msra.mxu1 %v1126_v31  ;;  %v162_v31 = vld [vmem:[%s4708_s6 + $0xd8] sm:$0xff] }
 0x2fd   :  { %1178 = vmatpush.msra.mxu1 %v1125_v58 }
 0x2ff   :  { %962 = vmatmul.f32.gmra.mxu3 %v158_v45  ;;  %1179 = vmatpush.msra.mxu1 %v1124_v49  ;;  %v3865_v49 = vld [vmem:[%s4708_s6 + $0x240] sm:$0xff] }
 0x300   :  { %1018 = vmatmul.f32.gmra.mxu0 %v3865_v49  ;;  %1047 = vmatmul.f32.gmra.mxu1 %v3875_v38 }
 0x301   :  { %1180 = vmatpush.msra.mxu1 %v1123_v32  ;;  %v1141_v32 = vmul.f32 %v3260_v63, %v3260_v63  ;;  %v1118_v63 = vmul.f32 %v3141_v41, %v3141_v41  ;;  %v3900_v41 = vld [vmem:[%s4708_s6 + $0x260] sm:$0xff] }
 0x302   :  { %v3831_v37 = vpop.f32.mrf.mxu3 }
 0x303   :  { %4759 = vst [vmem:[#allocation36_spill] sm:$0xff] %v3831_v37  ;;  %v3854_v58 = vpop.f32.mrf.mxu1  ;;  %1181 = vmatpush.msra.mxu1 %v1122_v33  ;;  %1207 = vmatpush.msra.mxu2 %v1141_v32  ;;  %v1139_v33 = vmul.f32 %v3289_v4, %v3289_v4  ;;  %v1116_v4 = vmul.f32 %v3168_v47, %v3168_v47  ;;  %v170_v47 = vld [vmem:[%s4708_s6 + $0x118] sm:$0xff] }
 0x304   :  { %v1136_v32 = vmul.f32 %v3317_v8, %v3317_v8  ;;  %v1134_v8 = vmul.f32 %v3351_v14, %v3351_v14 }
 0x305   :  { %1182 = vmatpush.msra.mxu1 %v1121_v22 }
 0x307   :  { %965 = vmatmul.f32.gmra.mxu3 %v162_v31  ;;  %v1140_v31 = vmul.f32 %v3273_v1, %v3273_v1  ;;  %1183 = vmatpush.msra.mxu1 %v1120_v35  ;;  %v1138_v1 = vmul.f32 %v3297_v5, %v3297_v5  ;;  %v3910_v5 = vld [vmem:[%s4708_s6 + $0x268] sm:$0xff]  ;;  %v1115_v35 = vmul.f32 %v3176_v48, %v3176_v48 }
 0x308   :  { %1021 = vmatmul.f32.gmra.mxu0 %v3900_v41  ;;  %1050 = vmatmul.f32.gmra.mxu1 %v3910_v5  ;;  %v1113_v48 = vmul.f32 %v3199_v53, %v3199_v53  ;;  %v4763_v53 = vld [vmem:[#allocation8_spill] sm:$0xff] }
 0x309   :  { %1184 = vmatpush.msra.mxu1 %v1119_v60  ;;  %1208 = vmatpush.msra.mxu2 %v1140_v31  ;;  %v1135_v60 = vmul.f32 %v3327_v10, %v3327_v10  ;;  %v1112_v10 = vmul.f32 %v3217_v56, %v3217_v56  ;;  %v1132_v14 = vmul.f32 %v4763_v53, %v4763_v53  ;;  %v4764_v56 = vld [vmem:[#allocation9_spill] sm:$0xff] }
 0x30a   :  { %v3860_v45 = vpop.f32.mrf.mxu3  ;;  %v1166_v53 = vmul.f32 %v3660_v42, %v3660_v42  ;;  %v4047_v42 = vld [vmem:[%s4708_s6 + $0x278] sm:$0xff] }
 0x30b   :  { %4760 = vst [vmem:[#allocation37_spill] sm:$0xff] %v3860_v45  ;;  %1185 = vmatpush.msra.mxu1 %v1118_v63  ;;  %1209 = vmatpush.msra.mxu2 %v1139_v33  ;;  %v3893_v22 = vpop.f32.mrf.mxu1  ;;  %v1158_v33 = vmul.f32 %v3162_v46, %v3162_v46  ;;  %v1174_v46 = vmul.f32 %v3598_v59, %v3598_v59  ;;  %v4766_v59 = vld [vmem:[#allocation11_spill] sm:$0xff] }
 0x30d   :  { %1186 = vmatpush.msra.mxu1 %v1117_v40  ;;  %1210 = vmatpush.msra.mxu2 %v1138_v1  ;;  %v174_v40 = vld [vmem:[%s4708_s6 + $0x138] sm:$0xff]  ;;  %v1157_v1 = vmul.f32 %v3193_v52, %v3193_v52 }
 0x30e   :  { %1235 = vmatpush.msra.mxu0 %v1158_v33  ;;  %2716 = vmatpush.msrb.mxu3 %v1174_v46  ;;  %v3968_v52 = vld [vmem:[%s4708_s6 + $0x238] sm:$0xff] }
 0x30f   :  { %968 = vmatmul.f32.gmra.mxu3 %v166_v39  ;;  %1187 = vmatpush.msra.mxu1 %v1116_v4  ;;  %v1133_v39 = vmul.f32 %v3363_v16, %v3363_v16  ;;  %v1131_v16 = vmul.f32 %v4764_v56, %v4764_v56  ;;  %v1130_v4 = vmul.f32 %v3404_v30, %v3404_v30 }
 0x310   :  { %1211 = vmatpush.msra.mxu2 %v1137_v44  ;;  %1099 = vmatmul.f32.vlgmr.msrb.gmra.mxu0 %v3933_v51  ;;  %v1173_v44 = vmul.f32 %v3605_v18, %v3605_v18  ;;  %v1129_v30 = vmul.f32 %v4766_v59, %v4766_v59  ;;  %v1172_v18 = vmul.f32 %v3610_v12, %v3610_v12  ;;  %v3988_v12 = vpop.f32.mrf.mxu2 }
 0x311   :  { %1188 = vmatpush.msra.mxu1 %v1115_v35  ;;  %1236 = vmatpush.msra.mxu0 %v1157_v1 }
 0x312   :  { %v3895_v34 = vpop.f32.mrf.mxu3  ;;  %1212 = vmatpush.msra.mxu2 %v1136_v32  ;;  %v4767_v32 = vld [vmem:[#allocation12_spill] sm:$0xff]  ;;  %2718 = vmatpush.msrb.mxu3 %v1173_v44 }
 0x313   :  { %4761 = vst [vmem:[#allocation38_spill] sm:$0xff] %v3895_v34  ;;  %1189 = vmatpush.msra.mxu1 %v1114_v7  ;;  %v3939_v63 = vpop.f32.mrf.mxu1  ;;  %v1154_v7 = vmul.f32 %v3223_v57, %v3223_v57  ;;  %v1153_v57 = vmul.f32 %v3247_v61, %v3247_v61  ;;  %v4008_v61 = vld [vmem:[%s4708_s6 + $0x258] sm:$0xff] }
 0x314   :  { %1213 = vmatpush.msra.mxu2 %v1135_v60  ;;  %v178_v60 = vld [vmem:[%s4708_s6 + $0x158] sm:$0xff]  ;;  %2720 = vmatpush.msrb.mxu3 %v1172_v18 }
 0x315   :  { %1190 = vmatpush.msra.mxu1 %v1113_v48 }
 0x316   :  { %1214 = vmatpush.msra.mxu2 %v1134_v8  ;;  %v1170_v8 = vmul.f32 %v3628_v3, %v3628_v3  ;;  %v1151_v3 = vmul.f32 %v3265_v0, %v3265_v0  ;;  %v1150_v0 = vmul.f32 %v3278_v2, %v3278_v2 }
 0x317   :  { %971 = vmatmul.f32.gmra.mxu3 %v170_v47  ;;  %1191 = vmatpush.msra.mxu1 %v1112_v10  ;;  %v1128_v47 = vmul.f32 %v4767_v32, %v4767_v32  ;;  %v4000_v10 = vmul.f32 %v3635_v13, %v3635_v13  ;;  %v182_v13 = vld [vmem:[%s4708_s6 + $0x178] sm:$0xff] }
 0x318   :  { %1215 = vmatpush.msra.mxu2 %v1133_v39  ;;  %1192 = vmatmul.f32.vlgmr.msra.gmra.mxu1 %v3811_v19  ;;  %v1156_v19 = vmul.f32 %v3205_v54, %v3205_v54  ;;  %v1155_v54 = vmul.f32 %v3210_v55, %v3210_v55  ;;  %v1171_v55 = vmul.f32 %v3620_v24, %v3620_v24  ;;  %v4035_v2 = vpop.f32.mrf.mxu2  ;;  %v198_v32 = vld [vmem:[%s4708_s6 + $0x1f8] sm:$0xff] }
 0x319   :  { %1263 = vmatpush.msrb.mxu1 %v3771_v11  ;;  %1102 = vmatmul.f32.gmra.mxu0 %v3968_v52  ;;  %v1152_v24 = vmul.f32 %v3255_v62, %v3255_v62  ;;  %v4014_v62 = vmul.f32 %v3642_v36, %v3642_v36  ;;  %v1167_v36 = vmul.f32 %v3652_v27, %v3652_v27 }
 0x31a   :  { %v3928_v31 = vpop.f32.mrf.mxu3  ;;  %1216 = vmatpush.msra.mxu2 %v1132_v14  ;;  %1237 = vmatpush.msra.mxu0 %v1156_v19  ;;  %v1148_v27 = vmul.f32 %v3356_v15, %v3356_v15  ;;  %v1164_v15 = vmul.f32 %v3674_v21, %v3674_v21  ;;  %v1145_v21 = vmul.f32 %v3395_v23, %v3395_v23  ;;  %v201_v19 = vld [vmem:[%s4708_s6 + $0x210] sm:$0xff] }
 0x31b   :  { %4762 = vst [vmem:[#allocation39_spill] sm:$0xff] %v3928_v31  ;;  %1264 = vmatpush.msrb.mxu1 %v1174_v46  ;;  %v3986_v48 = vpop.f32.mrf.mxu1  ;;  %2722 = vmatpush.msrb.mxu3 %v1171_v55 }
 0x31c   :  { %1217 = vmatpush.msra.mxu2 %v1131_v16  ;;  %1238 = vmatpush.msra.mxu0 %v1155_v54  ;;  %4768 = vst [vmem:[#allocation9_spill] sm:$0xff] %v3986_v48  ;;  %v4774_v16 = vld [vmem:[#allocation18_spill] sm:$0xff]  ;;  %v194_v54 = vld [vmem:[%s4708_s6 + $0x1d8] sm:$0xff] }
 0x31d   :  { %1265 = vmatpush.msrb.mxu1 %v1173_v44  ;;  %2724 = vmatpush.msrb.mxu3 %v1170_v8  ;;  %v1161_v1 = vmul.f32 %v4774_v16, %v4774_v16 }
 0x31e   :  { %1218 = vmatpush.msra.mxu2 %v1130_v4  ;;  %1239 = vmatpush.msra.mxu0 %v1154_v7  ;;  %v209_v7 = vld [vmem:[%s4708_s6 + $0x250] sm:$0xff] }
 0x31f   :  { %974 = vmatmul.f32.gmra.mxu3 %v174_v40  ;;  %1266 = vmatpush.msrb.mxu1 %v1172_v18  ;;  %v1162_v40 = vmul.f32 %v3694_v25, %v3694_v25  ;;  %v190_v25 = vld [vmem:[%s4708_s6 + $0x1b8] sm:$0xff] }
 0x320   :  { %1219 = vmatpush.msra.mxu2 %v1129_v30  ;;  %1195 = vmatmul.f32.gmra.mxu1 %v3836_v26  ;;  %v4076_v23 = vpop.f32.mrf.mxu2 }
 0x321   :  { %1267 = vmatpush.msrb.mxu1 %v1171_v55  ;;  %1240 = vmatpush.msra.mxu0 %v1153_v57  ;;  %v213_v57 = vld [vmem:[%s4708_s6 + $0x270] sm:$0xff] }
 0x322   :  { %v3963_v35 = vpop.f32.mrf.mxu3  ;;  %1220 = vmatpush.msra.mxu2 %v1128_v47  ;;  %1105 = vmatmul.f32.gmra.mxu0 %v4008_v61 }
 0x323   :  { %4765 = vst [vmem:[#allocation8_spill] sm:$0xff] %v3963_v35  ;;  %1221 = vmatmul.f32.vlgmr.msra.gmra.mxu2 %v3817_v50  ;;  %1268 = vmatpush.msrb.mxu1 %v1170_v8  ;;  %v1149_v50 = vmul.f32 %v3302_v6, %v3302_v6  ;;  %v4030_v39 = vpop.f32.mrf.mxu1  ;;  %v1165_v6 = vmul.f32 %v3667_v9, %v3667_v9  ;;  %v186_v9 = vld [vmem:[%s4708_s6 + $0x198] sm:$0xff] }
 0x324   :  { %2713 = vmatpush.msrb.mxu2 %v3771_v11  ;;  %1241 = vmatpush.msra.mxu0 %v1152_v24  ;;  %v4019_v11 = vpop.f32.mrf.mxu0  ;;  %4770 = vst [vmem:[#allocation12_spill] sm:$0xff] %v4030_v39 }
 0x325   :  { %1269 = vmatpush.msrb.mxu1 %v4000_v10  ;;  %2726 = vmatpush.msrb.mxu3 %v4000_v10 }
 0x326   :  { %2715 = vmatpush.msrb.mxu2 %v1174_v46  ;;  %1242 = vmatpush.msra.mxu0 %v1151_v3 }
 0x327   :  { %977 = vmatmul.f32.gmra.mxu3 %v178_v60  ;;  %1270 = vmatpush.msrb.mxu1 %v4014_v62 }
 0x328   :  { %2717 = vmatpush.msrb.mxu2 %v1173_v44  ;;  %1198 = vmatmul.f32.gmra.mxu1 %v3865_v49  ;;  %v1147_v49 = vmul.f32 %v3368_v17, %v3368_v17  ;;  %v1163_v17 = vmul.f32 %v3686_v43, %v3686_v43  ;;  %v4099_v30 = vpop.f32.mrf.mxu2 }
 0x329   :  { %1243 = vmatpush.msra.mxu0 %v1150_v0  ;;  %1271 = vmatpush.msrb.mxu1 %v1167_v36 }
 0x32a   :  { %v4003_v26 = vpop.f32.mrf.mxu3  ;;  %2719 = vmatpush.msrb.mxu2 %v1172_v18  ;;  %1108 = vmatmul.f32.gmra.mxu0 %v4047_v42 }
 0x32b   :  { %4769 = vst [vmem:[#allocation11_spill] sm:$0xff] %v4003_v26  ;;  %1224 = vmatmul.f32.gmra.mxu2 %v3844_v28  ;;  %1244 = vmatpush.msra.mxu0 %v1149_v50  ;;  %v1146_v28 = vmul.f32 %v3380_v20, %v3380_v20  ;;  %v4772_v20 = vld [vmem:[#allocation10_spill] sm:$0xff]  ;;  %v4071_v43 = vpop.f32.mrf.mxu1 }
 0x32c   :  { %2721 = vmatpush.msrb.mxu2 %v1171_v55  ;;  %1272 = vmatpush.msrb.mxu1 %v1166_v53  ;;  %v4061_v33 = vpop.f32.mrf.mxu0  ;;  %v1144_v56 = vmul.f32 %v4772_v20, %v4772_v20  ;;  %4773 = vst [vmem:[#allocation10_spill] sm:$0xff] %v4071_v43 }
 0x32d   :  { %1245 = vmatpush.msra.mxu0 %v1148_v27  ;;  %2728 = vmatpush.msrb.mxu3 %v4014_v62 }
 0x32e   :  { %2723 = vmatpush.msrb.mxu2 %v1170_v8  ;;  %1273 = vmatpush.msrb.mxu1 %v1165_v6 }
 0x32f   :  { %980 = vmatmul.f32.gmra.mxu3 %v182_v13  ;;  %1246 = vmatpush.msra.mxu0 %v1147_v49 }
 0x330   :  { %2725 = vmatpush.msrb.mxu2 %v4000_v10  ;;  %1274 = vmatpush.msrb.mxu1 %v1164_v15 }
 0x331   :  { %1201 = vmatmul.f32.gmra.mxu1 %v3900_v41  ;;  %1247 = vmatpush.msra.mxu0 %v1146_v28  ;;  %v4776_v41 = vld [vmem:[#allocation19_spill] sm:$0xff] }
 0x332   :  { %v4042_v14 = vpop.f32.mrf.mxu3  ;;  %2727 = vmatpush.msrb.mxu2 %v4014_v62  ;;  %1275 = vmatpush.msrb.mxu1 %v1163_v17  ;;  %v1160_v4 = vmul.f32 %v4776_v41, %v4776_v41 }
 0x333   :  { %4771 = vst [vmem:[#allocation40_spill] sm:$0xff] %v4042_v14  ;;  %1227 = vmatmul.f32.gmra.mxu2 %v3875_v38  ;;  %1248 = vmatpush.msra.mxu0 %v1145_v21  ;;  %v4097_v59 = vpop.f32.mrf.mxu1 }
 0x334   :  { %2729 = vmatpush.msrb.mxu2 %v1167_v36  ;;  %1276 = vmatpush.msrb.mxu1 %v1162_v40  ;;  %v4091_v38 = vpop.f32.mrf.mxu0  ;;  %4778 = vst [vmem:[#allocation41_spill] sm:$0xff] %v4097_v59 }
 0x335   :  { %1249 = vmatpush.msra.mxu0 %v1144_v56  ;;  %2730 = vmatpush.msrb.mxu3 %v1167_v36 }
 0x336   :  { %2731 = vmatpush.msrb.mxu2 %v1166_v53  ;;  %1277 = vmatpush.msrb.mxu1 %v1161_v1 }
 0x337   :  { %983 = vmatmul.f32.gmra.mxu3 %v186_v9  ;;  %1250 = vmatmul.f32.vlgmr.msra.gmra.mxu0 %v201_v19 }
 0x338   :  { %2733 = vmatpush.msrb.mxu2 %v1165_v6  ;;  %1278 = vmatpush.msrb.mxu1 %v1160_v4 }
 0x339   :  { %1279 = vmatmul.f32.vlgmr.msrb.gmra.mxu1 %v3933_v51  ;;  %2732 = vmatpush.msrb.mxu3 %v1166_v53  ;;  %v205_v51 = vld [vmem:[%s4708_s6 + $0x230] sm:$0xff] }
 0x33a   :  { %v4078_v46 = vpop.f32.mrf.mxu3  ;;  %2735 = vmatpush.msrb.mxu2 %v1164_v15 }
 0x33b   :  { %4775 = vst [vmem:[#allocation18_spill] sm:$0xff] %v4078_v46  ;;  %1230 = vmatmul.f32.gmra.mxu2 %v3910_v5  ;;  %2734 = vmatpush.msrb.mxu3 %v1165_v6  ;;  %v4116_v47 = vpop.f32.mrf.mxu1 }
 0x33c   :  { %2737 = vmatpush.msrb.mxu2 %v1163_v17  ;;  %v4110_v18 = vpop.f32.mrf.mxu0  ;;  %4780 = vst [vmem:[#allocation43_spill] sm:$0xff] %v4116_v47 }
 0x33d   :  { %2736 = vmatpush.msrb.mxu3 %v1164_v15 }
 0x33e   :  { %2739 = vmatpush.msrb.mxu2 %v1162_v40 }
 0x33f   :  { %986 = vmatmul.f32.gmra.mxu3 %v190_v25  ;;  %1253 = vmatmul.f32.gmra.mxu0 %v205_v51 }
 0x340   :  { %2741 = vmatpush.msrb.mxu2 %v1161_v1  ;;  %2738 = vmatpush.msrb.mxu3 %v1163_v17 }
 0x341   :  { %1282 = vmatmul.f32.gmra.mxu1 %v3968_v52  ;;  %v4121_v52 = vpop.f32.mrf.mxu2 }
 0x342   :  { %v4094_v44 = vpop.f32.mrf.mxu3  ;;  %2743 = vmatpush.msrb.mxu2 %v1160_v4  ;;  %2740 = vmatpush.msrb.mxu3 %v1162_v40 }
 0x343   :  { %4777 = vst [vmem:[#allocation19_spill] sm:$0xff] %v4094_v44  ;;  %1285 = vmatmul.f32.vlgmr.msrb.gmra.mxu2 %v4008_v61  ;;  %v4130_v8 = vpop.f32.mrf.mxu1 }
 0x344   :  { %2742 = vmatpush.msrb.mxu3 %v1161_v1  ;;  %v4125_v55 = vpop.f32.mrf.mxu0  ;;  %4782 = vst [vmem:[#allocation45_spill] sm:$0xff] %v4130_v8 }
 0x346   :  { %2744 = vmatpush.msrb.mxu3 %v1160_v4 }
 0x347   :  { %989 = vmatmul.f32.gmra.mxu3 %v194_v54  ;;  %1256 = vmatmul.f32.gmra.mxu0 %v209_v7 }
 0x349   :  { %v4132_v24 = vpop.f32.mrf.mxu2 }
 0x34a   :  { %v4108_v5 = vpop.f32.mrf.mxu3  ;;  %4783 = vst [vmem:[#allocation46_spill] sm:$0xff] %v4132_v24 }
 0x34b   :  { %4779 = vst [vmem:[#allocation42_spill] sm:$0xff] %v4108_v5  ;;  %v4138_v3 = vpop.f32.mrf.mxu1 }
 0x34c   :  { %v4136_v61 = vpop.f32.mrf.mxu0  ;;  %4785 = vst [vmem:[#allocation48_spill] sm:$0xff] %v4138_v3 }
 0x34d   :  { %4784 = vst [vmem:[#allocation47_spill] sm:$0xff] %v4136_v61 }
 0x34f   :  { %992 = vmatmul.f32.gmra.mxu3 %v198_v32  ;;  %1259 = vmatmul.f32.gmra.mxu0 %v213_v57 }
 0x351   :  { %v4140_v62 = vpop.f32.mrf.mxu2 }
 0x352   :  { %v4123_v60 = vpop.f32.mrf.mxu3  ;;  %4786 = vst [vmem:[#allocation49_spill] sm:$0xff] %v4140_v62 }
 0x353   :  { %4781 = vst [vmem:[#allocation44_spill] sm:$0xff] %v4123_v60  ;;  %v4148_v50 = vpop.f32.mrf.mxu1 }
 0x354   :  { %v4144_v0 = vpop.f32.mrf.mxu0  ;;  %4788 = vst [vmem:[#allocation51_spill] sm:$0xff] %v4148_v50 }
 0x355   :  { %4787 = vst [vmem:[#allocation50_spill] sm:$0xff] %v4144_v0 }
 0x357   :  { %1070 = vmatmul.f32.vlgmr.msra.gmra.mxu3 %v201_v19 }
 0x359   :  { %v4150_v53 = vpop.f32.mrf.mxu2 }
 0x35a   :  { %v4134_v10 = vpop.f32.mrf.mxu3  ;;  %4789 = vst [vmem:[#allocation52_spill] sm:$0xff] %v4150_v53 }
 0x35b   :  { %v4156_v49 = vpop.f32.mrf.mxu1 }
 0x35c   :  { %v4152_v27 = vpop.f32.mrf.mxu0  ;;  %4791 = vst [vmem:[#allocation54_spill] sm:$0xff] %v4156_v49 }
 0x35d   :  { %4790 = vst [vmem:[#allocation53_spill] sm:$0xff] %v4152_v27 }
 0x35f   :  { %1073 = vmatmul.f32.gmra.mxu3 %v205_v51 }
 0x361   :  { %v4158_v15 = vpop.f32.mrf.mxu2 }
 0x362   :  { %v4142_v13 = vpop.f32.mrf.mxu3  ;;  %4792 = vst [vmem:[#allocation55_spill] sm:$0xff] %v4158_v15 }
 0x363   :  { %v4165_v17 = vpop.f32.mrf.mxu1 }
 0x364   :  { %v4163_v28 = vpop.f32.mrf.mxu0  ;;  %4794 = vst [vmem:[#allocation57_spill] sm:$0xff] %v4165_v17 }
 0x365   :  { %4793 = vst [vmem:[#allocation56_spill] sm:$0xff] %v4163_v28 }
 0x367   :  { %1076 = vmatmul.f32.gmra.mxu3 %v209_v7 }
 0x369   :  { %v4167_v21 = vpop.f32.mrf.mxu2 }
 0x36a   :  { %v4146_v36 = vpop.f32.mrf.mxu3  ;;  %4795 = vst [vmem:[#allocation58_spill] sm:$0xff] %v4167_v21 }
 0x36b   :  { %v4171_v56 = vpop.f32.mrf.mxu1 }
 0x36c   :  { %v1013_v20 = vpop.f32.mrf.mxu0  ;;  %4797 = vst [vmem:[#allocation60_spill] sm:$0xff] %v4171_v56 }
 0x36f   :  { %1079 = vmatmul.f32.gmra.mxu3 %v213_v57 }
 0x371   :  { %v4173_v16 = vpop.f32.mrf.mxu2 }
 0x372   :  { %v4154_v6 = vpop.f32.mrf.mxu3  ;;  %4798 = vst [vmem:[#allocation61_spill] sm:$0xff] %v4173_v16 }
 0x373   :  { %v1042_v41 = vpop.f32.mrf.mxu1 }
 0x374   :  { %v1043_v28 = vadd.f32 %v1042_v41, %v1013_v20 }
 0x375   :  { %v1016_v25 = vpop.f32.mrf.mxu0 }
 0x377   :  { %1288 = vmatmul.f32.vlgmr.msrb.gmra.mxu3 %v4047_v42 }
 0x379   :  { %v4179_v4 = vpop.f32.mrf.mxu2 }
 0x37a   :  { %v4161_v9 = vpop.f32.mrf.mxu3  ;;  %4801 = vst [vmem:[#allocation64_spill] sm:$0xff] %v4179_v4 }
 0x37b   :  { %v1045_v51 = vpop.f32.mrf.mxu1 }
 0x37c   :  { %v1046_v59 = vadd.f32 %v1045_v51, %v1016_v25 }
 0x37d   :  { %v1019_v19 = vpop.f32.mrf.mxu0 }
 0x381   :  { %v4183_v32 = vpop.f32.mrf.mxu2 }
 0x382   :  { %v4169_v40 = vpop.f32.mrf.mxu3  ;;  %4803 = vst [vmem:[#allocation66_spill] sm:$0xff] %v4183_v32 }
 0x383   :  { %4796 = vst [vmem:[#allocation59_spill] sm:$0xff] %v4169_v40  ;;  %v1048_v60 = vpop.f32.mrf.mxu1 }
 0x384   :  { %v1049_v27 = vadd.f32 %v1048_v60, %v1019_v19 }
 0x385   :  { %v1022_v57 = vpop.f32.mrf.mxu0 }
 0x389   :  { %v4187_v56 = vpop.f32.mrf.mxu2 }
 0x38a   :  { %v4175_v1 = vpop.f32.mrf.mxu3  ;;  %4805 = vst [vmem:[#allocation68_spill] sm:$0xff] %v4187_v56 }
 0x38b   :  { %4799 = vst [vmem:[#allocation62_spill] sm:$0xff] %v4175_v1  ;;  %v1051_v44 = vpop.f32.mrf.mxu1 }
 0x38d   :  { %v1100_v17 = vpop.f32.mrf.mxu0 }
 0x391   :  { %v4191_v49 = vpop.f32.mrf.mxu2 }
 0x392   :  { %v4177_v42 = vpop.f32.mrf.mxu3  ;;  %4807 = vst [vmem:[#allocation70_spill] sm:$0xff] %v4191_v49 }
 0x393   :  { %4800 = vst [vmem:[#allocation63_spill] sm:$0xff] %v4177_v42 }
 0x395   :  { %v1193_v4 = vpop.f32.mrf.mxu1 }
 0x396   :  { %v1103_v50 = vpop.f32.mrf.mxu0 }
 0x399   :  { %v4197_v3 = vpop.f32.mrf.mxu2 }
 0x39a   :  { %v4181_v54 = vpop.f32.mrf.mxu3  ;;  %4810 = vst [vmem:[#allocation73_spill] sm:$0xff] %v4197_v3 }
 0x39b   :  { %4802 = vst [vmem:[#allocation65_spill] sm:$0xff] %v4181_v54 }
 0x39d   :  { %v1196_v26 = vpop.f32.mrf.mxu1 }
 0x39f   :  { %v1106_v32 = vpop.f32.mrf.mxu0 }
 0x3a2   :  { %v4185_v7 = vpop.f32.mrf.mxu3 }
 0x3a3   :  { %4804 = vst [vmem:[#allocation67_spill] sm:$0xff] %v4185_v7 }
 0x3a5   :  { %v1199_v7 = vpop.f32.mrf.mxu1 }
 0x3a6   :  { %v1222_v8 = vpop.f32.mrf.mxu2 }
 0x3aa   :  { %v4189_v5 = vpop.f32.mrf.mxu3 }
 0x3ab   :  { %4806 = vst [vmem:[#allocation69_spill] sm:$0xff] %v4189_v5  ;;  %v1109_v5 = vpop.f32.mrf.mxu0 }
 0x3ae   :  { %v1225_v21 = vpop.f32.mrf.mxu2 }
 0x3af   :  { %v1226_v53 = vadd.f32 %v1225_v21, %v1196_v26 }
 0x3b2   :  { %v4193_v46 = vpop.f32.mrf.mxu3 }
 0x3b3   :  { %4808 = vst [vmem:[#allocation71_spill] sm:$0xff] %v4193_v46  ;;  %v1202_v46 = vpop.f32.mrf.mxu1 }
 0x3b4   :  { %v1251_v49 = vpop.f32.mrf.mxu0 }
 0x3b6   :  { %v1228_v47 = vpop.f32.mrf.mxu2 }
 0x3b7   :  { %v1229_v34 = vadd.f32 %v1228_v47, %v1199_v7  ;;  %v1052_v47 = vadd.f32 %v1051_v44, %v1022_v57 }
 0x3ba   :  { %v4195_v14 = vpop.f32.mrf.mxu3 }
 0x3bb   :  { %4809 = vst [vmem:[#allocation72_spill] sm:$0xff] %v4195_v14  ;;  %v1280_v14 = vpop.f32.mrf.mxu1 }
 0x3bc   :  { %v1254_v15 = vpop.f32.mrf.mxu0 }
 0x3bd   :  { %v1255_v45 = vadd.f32 %v1254_v15, %v1226_v53 }
 0x3be   :  { %v1231_v3 = vpop.f32.mrf.mxu2 }
 0x3bf   :  { %v1232_v53 = vadd.f32 %v1231_v3, %v1202_v46 }
 0x3c2   :  { %v4199_v16 = vpop.f32.mrf.mxu3 }
 0x3c3   :  { %4811 = vst [vmem:[#allocation74_spill] sm:$0xff] %v4199_v16  ;;  %v1283_v24 = vpop.f32.mrf.mxu1 }
 0x3c4   :  { %v1257_v43 = vpop.f32.mrf.mxu0  ;;  %v1284_v20 = vadd.f32 %v1283_v24, %v1255_v45 }
 0x3c5   :  { %v1258_v39 = vadd.f32 %v1257_v43, %v1229_v34 }
 0x3c6   :  { %v1286_v37 = vpop.f32.mrf.mxu2 }
 0x3ca   :  { %v4201_v56 = vpop.f32.mrf.mxu3 }
 0x3cb   :  { %4812 = vst [vmem:[#allocation75_spill] sm:$0xff] %v4201_v56  ;;  %v1223_v56 = vadd.f32 %v1222_v8, %v1193_v4 }
 0x3cc   :  { %v1260_v45 = vpop.f32.mrf.mxu0 }
 0x3cd   :  { %v1252_v40 = vadd.f32 %v1251_v49, %v1223_v56 }
 0x3cf   :  { %v1281_v26 = vadd.f32 %v1280_v14, %v1252_v40  ;;  %v1540_v14 = vld [vmem:[%s4704_s2 + $0x8] sm:$0xff] }
 0x3d2   :  { %v4203_v35 = vpop.f32.mrf.mxu3 }
 0x3d3   :  { %4813 = vst [vmem:[#allocation76_spill] sm:$0xff] %v4203_v35 }
 0x3da   :  { %v1071_v54 = vpop.f32.mrf.mxu3 }
 0x3db   :  { %v1072_v42 = vadd.f32 %v1071_v54, %v1043_v28 }
 0x3dd   :  { %v1101_v62 = vadd.f32 %v1100_v17, %v1072_v42 }
 0x3df   :  { %v1292_v25 = vmul.f32 %v1101_v62, %v1101_v62  ;;  %v2868_v62 = vld [vmem:[#allocation2 + $0x40] sm:$0xff] }
 0x3e1   :  { %v1296_v60 = vsub.f32 %v1281_v26, %v1292_v25 }
 0x3e2   :  { %v1074_v31 = vpop.f32.mrf.mxu3 }
 0x3e3   :  { %v1075_v16 = vadd.f32 %v1074_v31, %v1046_v59  ;;  %v1287_v59 = vadd.f32 %v1286_v37, %v1258_v39  ;;  %v4210_v43 = vadd.f32 1e-05, %v1296_v60  ;;  %v1261_v39 = vadd.f32 %v1260_v45, %v1232_v53  ;;  %v2871_v53 = vld [vmem:[#allocation2 + $0x58] sm:$0xff]  ;;  %v1768_v45 = vpop.permute.xlu2 %1767 }
 0x3e5   :  { %v1104_v1 = vadd.f32 %v1103_v50, %v1075_v16  ;;  %vm1310_vm9 = vweird.f32 %v4210_v43 }
 0x3e7   :  { %v1293_v48 = vmul.f32 %v1104_v1, %v1104_v1  ;;  %v2869_v1 = vld [vmem:[#allocation2 + $0x48] sm:$0xff] }
 0x3e9   :  { %v1297_v8 = vsub.f32 %v1284_v20, %v1293_v48  ;;  %v1541_v48 = vld [vmem:[%s4704_s2 + $0x10] sm:$0xff] }
 0x3ea   :  { %v1077_v35 = vpop.f32.mrf.mxu3  ;;  %v2870_v20 = vld [vmem:[#allocation2 + $0x50] sm:$0xff] }
 0x3eb   :  { %v1078_v0 = vadd.f32 %v1077_v35, %v1049_v27  ;;  %v4205_v34 = vadd.f32 1e-05, %v1297_v8  ;;  %v1542_v35 = vld [vmem:[%s4704_s2 + $0x18] sm:$0xff] }
 0x3ec   :  { %1555 = vmatpush.msra.mxu1 %v1542_v35 }
 0x3ed   :  { %v1107_v61 = vadd.f32 %v1106_v32, %v1078_v0  ;;  %vm1320_vm6 = vweird.f32 %v4205_v34 }
 0x3ee   :  { %1556 = vmatpush.msra.mxu1 %v1541_v48  ;;  %v1764_v48 = vpop.permute.xlu1 %1763 }
 0x3ef   :  { %v1294_v31 = vmul.f32 %v1107_v61, %v1107_v61 }
 0x3f0   :  { %1557 = vmatpush.msra.mxu1 %v1540_v14  ;;  %v2874_v14 = vld [vmem:[#allocation2 + $0x70] sm:$0xff] }
 0x3f1   :  { %v1298_v28 = vsub.f32 %v1287_v59, %v1294_v31 }
 0x3f2   :  { %v1080_v50 = vpop.f32.mrf.mxu3 }
 0x3f3   :  { %v1302_v17 = vadd.f32 1e-05, %v1298_v28  ;;  %v1081_v21 = vadd.f32 %v1080_v50, %v1052_v47 }
 0x3f5   :  { %2780 = vrsqrt.f32 %v1302_v17  ;;  %v1110_v37 = vadd.f32 %v1109_v5, %v1081_v21  ;;  %v1539_v5 = vld [vmem:[%s4704_s2] sm:$0xff]  ;;  %vm1330_vm3 = vweird.f32 %v1302_v17 }
 0x3f6   :  { %2782 = vrsqrt.f32 %v4205_v34  ;;  %1558 = vmatpush.msra.mxu1 %v1539_v5  ;;  %v2878_v5 = vld [vmem:[#allocation2 + $0x90] sm:$0xff] }
 0x3f7   :  { %2784 = vrsqrt.f32 %v4210_v43  ;;  %v1295_v44 = vmul.f32 %v1110_v37, %v1110_v37  ;;  %2625 = vmatmul.msk.f32.vlgmr.msra.gmra.mxu1 %vm219_vm0, %v2868_v62  ;;  %v1766_v37 = vpop.permute.xlu0 %1765 }
 0x3fa   :  { %v1289_v46 = vpop.f32.mrf.mxu3 }
 0x3fb   :  { %v1290_v24 = vadd.f32 %v1289_v46, %v1261_v39  ;;  %v2781_v61 = vpop.eup %2780  ;;  %v1762_v39 = vpop.permute.xlu2 %1761  ;;  %v2875_v46 = vld [vmem:[#allocation2 + $0x78] sm:$0xff] }
 0x3fc   :  { %v2783_v0 = vpop.eup %2782  ;;  %v1325_v15 = vmul.f32 %v2781_v61, %v1302_v17  ;;  %vm1331_vm1 = vweird.f32 %v2781_v61 }
 0x3fd   :  { %v1299_v3 = vsub.f32 %v1290_v24, %v1295_v44  ;;  %v2785_v49 = vpop.eup %2784  ;;  %v1315_v40 = vmul.f32 %v2783_v0, %v4205_v34  ;;  %vm1321_vm4 = vweird.f32 %v2783_v0  ;;  %vm1332_vm5 = vmor %vm1330_vm3, %vm1331_vm1  ;;  %v2872_v34 = vld [vmem:[#allocation2 + $0x60] sm:$0xff]  ;;  %v2877_v24 = vld [vmem:[#allocation2 + $0x88] sm:$0xff] }
 0x3fe   :  { %v1305_v56 = vmul.f32 %v2785_v49, %v4210_v43  ;;  %v1326_v16 = vmul.f32 %v2781_v61, %v1325_v15  ;;  %vm1311_vm7 = vweird.f32 %v2785_v49  ;;  %vm1322_vm8 = vmor %vm1320_vm6, %vm1321_vm4  ;;  %v2873_v43 = vld [vmem:[#allocation2 + $0x68] sm:$0xff]  ;;  %v2876_v44 = vld [vmem:[#allocation2 + $0x80] sm:$0xff] }
 0x3ff   :  { %v1303_v27 = vadd.f32 1e-05, %v1299_v3  ;;  %2626 = vmatmul.msk.f32.gmra.mxu1 %vm219_vm0, %v2869_v1  ;;  %v1316_v41 = vmul.f32 %v2783_v0, %v1315_v40  ;;  %vm1312_vm10 = vmor %vm1310_vm9, %vm1311_vm7  ;;  %v4814_v3 = vld [vmem:[#allocation20_spill] sm:$0xff]  ;;  %v4817_v15 = vld [vmem:[#allocation26_spill] sm:$0xff] }
 0x400   :  { %v1306_v4 = vmul.f32 %v2785_v49, %v1305_v56  ;;  %v1327_v54 = vmul.f32 0.5, %v1326_v16  ;;  %v2880_v40 = vld [vmem:[#allocation2 + $0xa0] sm:$0xff]  ;;  %v2881_v16 = vld [vmem:[#allocation2 + $0xa8] sm:$0xff] }
 0x401   :  { %2786 = vrsqrt.f32 %v1303_v27  ;;  %v1317_v32 = vmul.f32 0.5, %v1316_v41  ;;  %vm1340_vm15 = vweird.f32 %v1303_v27 }
 0x402   :  { %v1307_v7 = vmul.f32 0.5, %v1306_v4  ;;  %v1328_v25 = vsub.f32 1.5, %v1327_v54  ;;  %v80_v4 = vld [vmem:[#allocation2 + $0xc0] sm:$0xff] }
 0x403   :  { %v1318_v59 = vsub.f32 1.5, %v1317_v32 }
 0x404   :  { %v1308_v26 = vsub.f32 1.5, %v1307_v7  ;;  %v1329_v8 = vmul.f32 %v2781_v61, %v1328_v25 }
 0x405   :  { %v1319_v60 = vmul.f32 %v2783_v0, %v1318_v59  ;;  %v822_v59 = vadd.f32 %v3825_v29, %v4061_v33  ;;  %v4821_v33 = vld [vmem:[#allocation32_spill] sm:$0xff] }
 0x406   :  { %v1333_v50 = vsel %vm1332_vm5, %v2781_v61, %v1329_v8  ;;  %v1309_v21 = vmul.f32 %v2785_v49, %v1308_v26  ;;  %v2879_v61 = vld [vmem:[#allocation2 + $0x98] sm:$0xff] }
 0x407   :  { %v2787_v42 = vpop.eup %2786  ;;  %2627 = vmatmul.msk.f32.gmra.mxu1 %vm219_vm0, %v2870_v20  ;;  %v1323_v35 = vsel %vm1322_vm8, %v2783_v0, %v1319_v60  ;;  %v4816_v0 = vld [vmem:[#allocation24_spill] sm:$0xff] }
 0x408   :  { %v1335_v19 = vmul.f32 %v2787_v42, %v1303_v27  ;;  %vm1341_vm14 = vweird.f32 %v2787_v42  ;;  %v1313_v17 = vsel %vm1312_vm10, %v2785_v49, %v1309_v21  ;;  %v129_v27 = vld [vmem:[#allocation2 + $0x248] sm:$0xff]  ;;  %v128_v49 = vld [vmem:[#allocation2 + $0x240] sm:$0xff] }
 0x409   :  { %vm1342_vm2 = vmor %vm1340_vm15, %vm1341_vm14  ;;  %1670 = vmatpush.msra.mxu3 %v129_v27  ;;  %1488 = vmatpush.msrb.mxu0 %v129_v27 }
 0x40a   :  { %v1336_v51 = vmul.f32 %v2787_v42, %v1335_v19  ;;  %v4818_v19 = vld [vmem:[#allocation34_spill] sm:$0xff] }
 0x40b   :  { %1671 = vmatpush.msra.mxu3 %v128_v49  ;;  %1489 = vmatpush.msrb.mxu0 %v128_v49  ;;  %v819_v54 = vadd.f32 %v4818_v19, %v4019_v11  ;;  %v887_v11 = vadd.f32 %v4035_v2, %v822_v59  ;;  %v4828_v49 = vld [vmem:[#allocation59_spill] sm:$0xff]  ;;  %v4832_v19 = vld [vmem:[#allocation49_spill] sm:$0xff] }
 0x40c   :  { %v1337_v57 = vmul.f32 0.5, %v1336_v51  ;;  %v4819_v51 = vld [vmem:[#allocation28_spill] sm:$0xff] }
 0x40d   :  { %v656_v32 = vmul.f32 %v4819_v51, %v80_v4  ;;  %v884_v7 = vadd.f32 %v3988_v12, %v819_v54 }
 0x40e   :  { %v1338_v31 = vsub.f32 1.5, %v1337_v57 }
 0x40f   :  { %2628 = vmatmul.msk.f32.gmra.mxu1 %vm219_vm0, %v2871_v53  ;;  %v949_v25 = vadd.f32 %v4134_v10, %v884_v7  ;;  %v82_v10 = vld [vmem:[#allocation2 + $0xd0] sm:$0xff] }
 0x410   :  { %v1339_v47 = vmul.f32 %v2787_v42, %v1338_v31  ;;  %v658_v21 = vmul.f32 %v4821_v33, %v82_v10  ;;  %v4838_v10 = vld [vmem:[#allocation63_spill] sm:$0xff]  ;;  %v4839_v33 = vld [vmem:[#allocation56_spill] sm:$0xff] }
 0x412   :  { %v1343_v28 = vsel %vm1342_vm2, %v2787_v42, %v1339_v47  ;;  %v4820_v47 = vld [vmem:[#allocation30_spill] sm:$0xff] }
 0x413   :  { %1356 = vmatpush.msra.mxu2 %v1343_v28  ;;  %v952_v28 = vadd.f32 %v4142_v13, %v887_v11  ;;  %v83_v13 = vld [vmem:[#allocation2 + $0xd8] sm:$0xff] }
 0x414   :  { %v4837_v11 = vld [vmem:[#allocation52_spill] sm:$0xff] }
 0x415   :  { %1357 = vmatpush.msra.mxu2 %v1333_v50  ;;  %v825_v50 = vadd.f32 %v3854_v58, %v4091_v38  ;;  %v4822_v38 = vld [vmem:[#allocation33_spill] sm:$0xff] }
 0x417   :  { %1358 = vmatpush.msra.mxu2 %v1323_v35  ;;  %2629 = vmatmul.msk.f32.gmra.mxu1 %vm219_vm0, %v2872_v34 }
 0x419   :  { %1359 = vmatpush.msra.mxu2 %v1313_v17 }
 0x41a   :  { %2593 = vmatmul.msk.f32.vlgmr.msra.gmra.mxu2 %vm219_vm0, %v2868_v62  ;;  %v4815_v62 = vld [vmem:[#allocation22_spill] sm:$0xff] }
 0x41b   :  { %2657 = vmatpush.xpose.msk.msrb.mxu2 %vm219_vm0, %v1768_v45  ;;  %v828_v45 = vadd.f32 %v3893_v22, %v4110_v18  ;;  %v4823_v18 = vld [vmem:[#allocation35_spill] sm:$0xff] }
 0x41f   :  { %2658 = vmatpush.xpose.msk.msrb.mxu2 %vm219_vm0, %v1766_v37  ;;  %2630 = vmatmul.msk.f32.gmra.mxu1 %vm219_vm0, %v2873_v43  ;;  %v893_v37 = vadd.f32 %v4099_v30, %v828_v45 }
 0x422   :  { %2594 = vmatmul.msk.f32.gmra.mxu2 %vm219_vm0, %v2869_v1 }
 0x423   :  { %2659 = vmatpush.xpose.msk.msrb.mxu2 %vm219_vm0, %v1764_v48  ;;  %v958_v48 = vadd.f32 %v4154_v6, %v893_v37  ;;  %v85_v6 = vld [vmem:[#allocation2 + $0xe8] sm:$0xff] }
 0x424   :  { %v89_v37 = vld [vmem:[#allocation2 + $0x108] sm:$0xff] }
 0x427   :  { %2660 = vmatpush.xpose.msk.msrb.mxu2 %vm219_vm0, %v1762_v39  ;;  %2631 = vmatmul.msk.f32.gmra.mxu1 %vm219_vm0, %v2874_v14  ;;  %v831_v39 = vadd.f32 %v3939_v63, %v4125_v55  ;;  %v4826_v55 = vld [vmem:[#allocation36_spill] sm:$0xff] }
 0x42a   :  { %2595 = vmatmul.msk.f32.gmra.mxu2 %vm219_vm0, %v2870_v20  ;;  %v81_v20 = vld [vmem:[#allocation2 + $0xc8] sm:$0xff] }
 0x42b   :  { %v657_v8 = vmul.f32 %v4820_v47, %v81_v20  ;;  %v4834_v20 = vld [vmem:[#allocation53_spill] sm:$0xff]  ;;  %v4836_v47 = vld [vmem:[#allocation38_spill] sm:$0xff] }
 0x42f   :  { %2632 = vmatmul.msk.f32.gmra.mxu1 %vm219_vm0, %v2875_v46 }
 0x432   :  { %2596 = vmatmul.msk.f32.gmra.mxu2 %vm219_vm0, %v2871_v53  ;;  %v890_v53 = vadd.f32 %v4076_v23, %v825_v50  ;;  %v88_v50 = vld [vmem:[#allocation2 + $0x100] sm:$0xff] }
 0x434   :  { %v955_v35 = vadd.f32 %v4146_v36, %v890_v53  ;;  %v84_v36 = vld [vmem:[#allocation2 + $0xe0] sm:$0xff] }
 0x437   :  { %2633 = vmatmul.msk.f32.gmra.mxu1 %vm219_vm0, %v2876_v44 }
 0x43a   :  { %2597 = vmatmul.msk.f32.gmra.mxu2 %vm219_vm0, %v2872_v34  ;;  %v659_v34 = vmul.f32 %v4822_v38, %v83_v13  ;;  %v4843_v38 = vld [vmem:[#allocation65_spill] sm:$0xff] }
 0x43f   :  { %2634 = vmatmul.msk.f32.gmra.mxu1 %vm219_vm0, %v2877_v24 }
 0x442   :  { %2598 = vmatmul.msk.f32.gmra.mxu2 %vm219_vm0, %v2873_v43 }
 0x447   :  { %2635 = vmatmul.msk.f32.gmra.mxu1 %vm219_vm0, %v2878_v5 }
 0x44a   :  { %2599 = vmatmul.msk.f32.gmra.mxu2 %vm219_vm0, %v2874_v14  ;;  %v660_v14 = vmul.f32 %v4823_v18, %v84_v36  ;;  %v4845_v36 = vld [vmem:[#allocation43_spill] sm:$0xff] }
 0x44f   :  { %2636 = vmatmul.msk.f32.gmra.mxu1 %vm219_vm0, %v2879_v61 }
 0x452   :  { %2600 = vmatmul.msk.f32.gmra.mxu2 %vm219_vm0, %v2875_v46  ;;  %v896_v46 = vadd.f32 %v4121_v52, %v831_v39 }
 0x457   :  { %2637 = vmatmul.msk.f32.gmra.mxu1 %vm219_vm0, %v4814_v3 }
 0x45a   :  { %2601 = vmatmul.msk.f32.gmra.mxu2 %vm219_vm0, %v2876_v44  ;;  %v961_v44 = vadd.f32 %v4161_v9, %v896_v46  ;;  %v86_v9 = vld [vmem:[#allocation2 + $0xf0] sm:$0xff] }
 0x45f   :  { %2638 = vmatmul.msk.f32.gmra.mxu1 %vm219_vm0, %v4815_v62  ;;  %v661_v62 = vmul.f32 %v4826_v55, %v85_v6 }
 0x462   :  { %2602 = vmatmul.msk.f32.gmra.mxu2 %vm219_vm0, %v2877_v24 }
 0x467   :  { %2639 = vmatmul.msk.f32.gmra.mxu1 %vm219_vm0, %v4816_v0 }
 0x46a   :  { %2603 = vmatmul.msk.f32.gmra.mxu2 %vm219_vm0, %v2878_v5  ;;  %v4824_v5 = vld [vmem:[#allocation47_spill] sm:$0xff] }
 0x46f   :  { %2640 = vmatmul.msk.f32.gmra.mxu1 %vm219_vm0, %v4817_v15 }
 0x472   :  { %2604 = vmatmul.msk.f32.gmra.mxu2 %vm219_vm0, %v2879_v61  ;;  %v4825_v61 = vld [vmem:[#allocation9_spill] sm:$0xff] }
 0x473   :  { %v834_v3 = vadd.f32 %v4825_v61, %v4824_v5  ;;  %v4849_v61 = vld [vmem:[#allocation21_spill] sm:$0xff] }
 0x474   :  { %v1560_v56 = vpop.f32.mrf.mxu1 }
 0x475   :  { %2641 = vmatmul.msk.f32.vlgmr.msra.gmra.mxu3 %vm1425_vm11, %v1560_v56  ;;  %v4829_v56 = vld [vmem:[#allocation50_spill] sm:$0xff] }
 0x47a   :  { %2605 = vmatmul.msk.f32.gmra.mxu2 %vm219_vm0, %v2880_v40 }
 0x47c   :  { %v1563_v1 = vpop.f32.mrf.mxu1 }
 0x47d   :  { %2642 = vmatmul.msk.f32.gmra.mxu3 %vm1425_vm11, %v1563_v1 }
 0x482   :  { %2606 = vmatmul.msk.f32.gmra.mxu2 %vm219_vm0, %v2881_v16  ;;  %v4830_v16 = vld [vmem:[#allocation12_spill] sm:$0xff] }
 0x483   :  { %v837_v1 = vadd.f32 %v4830_v16, %v4829_v56  ;;  %v4854_v16 = vld [vmem:[#allocation23_spill] sm:$0xff] }
 0x484   :  { %v1566_v41 = vpop.f32.mrf.mxu1 }
 0x485   :  { %2643 = vmatmul.msk.f32.gmra.mxu3 %vm1425_vm11, %v1566_v41  ;;  %v902_v54 = vadd.f32 %v4832_v19, %v837_v1  ;;  %v4855_v1 = vld [vmem:[#allocation48_spill] sm:$0xff] }
 0x48a   :  { %2607 = vmatmul.msk.f32.gmra.mxu2 %vm219_vm0, %v4816_v0  ;;  %v4827_v0 = vld [vmem:[#allocation46_spill] sm:$0xff] }
 0x48b   :  { %v899_v27 = vadd.f32 %v4827_v0, %v834_v3  ;;  %v4850_v3 = vld [vmem:[#allocation45_spill] sm:$0xff] }
 0x48c   :  { %v1569_v42 = vpop.f32.mrf.mxu1 }
 0x48d   :  { %2644 = vmatmul.msk.f32.gmra.mxu3 %vm1425_vm11, %v1569_v42  ;;  %v4831_v42 = vld [vmem:[#allocation37_spill] sm:$0xff] }
 0x48e   :  { %v662_v4 = vmul.f32 %v4831_v42, %v86_v9 }
 0x492   :  { %2608 = vmatmul.msk.f32.gmra.mxu2 %vm219_vm0, %v4817_v15  ;;  %v964_v15 = vadd.f32 %v4828_v49, %v899_v27  ;;  %v4852_v27 = vld [vmem:[#allocation61_spill] sm:$0xff] }
 0x494   :  { %v1572_v57 = vpop.f32.mrf.mxu1 }
 0x495   :  { %2645 = vmatmul.msk.f32.gmra.mxu3 %vm1425_vm11, %v1572_v57  ;;  %v87_v57 = vld [vmem:[#allocation2 + $0xf8] sm:$0xff] }
 0x49a   :  { %2661 = vmatmul.msk.f32.vlgmr.msrb.gmra.mxu2 %vm219_vm0, %v656_v32  ;;  %v4833_v32 = vld [vmem:[#allocation62_spill] sm:$0xff] }
 0x49b   :  { %v967_v7 = vadd.f32 %v4833_v32, %v902_v54  ;;  %v4857_v54 = vld [vmem:[#allocation64_spill] sm:$0xff] }
 0x49c   :  { %v1575_v12 = vpop.f32.mrf.mxu1 }
 0x49d   :  { %v1361_v31 = vpop.f32.mrf.mxu2  ;;  %2646 = vmatmul.msk.f32.gmra.mxu3 %vm1425_vm11, %v1575_v12 }
 0x49e   :  { %v1409_v26 = vmul.f32 %v1361_v31, %v949_v25  ;;  %v4835_v31 = vld [vmem:[#allocation10_spill] sm:$0xff] }
 0x49f   :  { %v840_v59 = vadd.f32 %v4835_v31, %v4834_v20  ;;  %v4859_v31 = vld [vmem:[#allocation25_spill] sm:$0xff] }
 0x4a0   :  { %2609 = vmatmul.msk.f32.vlgmr.msrb.gmra.mxu0 %vm1425_vm11, %v1409_v26 }
 0x4a1   :  { %v905_v12 = vadd.f32 %v4837_v11, %v840_v59  ;;  %v4860_v59 = vld [vmem:[#allocation51_spill] sm:$0xff] }
 0x4a2   :  { %2662 = vmatmul.msk.f32.gmra.mxu2 %vm219_vm0, %v657_v8  ;;  %v663_v8 = vmul.f32 %v4836_v47, %v87_v57 }
 0x4a4   :  { %v1578_v2 = vpop.f32.mrf.mxu1 }
 0x4a5   :  { %v1364_v60 = vpop.f32.mrf.mxu2  ;;  %2647 = vmatmul.msk.f32.gmra.mxu3 %vm1425_vm11, %v1578_v2 }
 0x4a6   :  { %v1410_v29 = vmul.f32 %v1364_v60, %v952_v28  ;;  %v970_v60 = vadd.f32 %v4838_v10, %v905_v12  ;;  %v4862_v12 = vld [vmem:[#allocation66_spill] sm:$0xff]  ;;  %v4863_v10 = vld [vmem:[#allocation72_spill] sm:$0xff] }
 0x4a8   :  { %2610 = vmatmul.msk.f32.gmra.mxu0 %vm1425_vm11, %v1410_v29 }
 0x4aa   :  { %2663 = vmatmul.msk.f32.gmra.mxu2 %vm219_vm0, %v658_v21  ;;  %v4840_v21 = vld [vmem:[#allocation41_spill] sm:$0xff] }
 0x4ab   :  { %v843_v53 = vadd.f32 %v4840_v21, %v4839_v33  ;;  %v4864_v33 = vld [vmem:[#allocation27_spill] sm:$0xff]  ;;  %v4865_v21 = vld [vmem:[#allocation54_spill] sm:$0xff] }
 0x4ac   :  { %v1581_v23 = vpop.f32.mrf.mxu1 }
 0x4ad   :  { %v1367_v17 = vpop.f32.mrf.mxu2  ;;  %2648 = vmatmul.msk.f32.gmra.mxu3 %vm1425_vm11, %v1581_v23 }
 0x4ae   :  { %v1411_v58 = vmul.f32 %v1367_v17, %v955_v35  ;;  %v4841_v35 = vld [vmem:[#allocation39_spill] sm:$0xff] }
 0x4af   :  { %v664_v13 = vmul.f32 %v4841_v35, %v88_v50  ;;  %v4842_v17 = vld [vmem:[#allocation55_spill] sm:$0xff]  ;;  %v93_v50 = vld [vmem:[#allocation2 + $0x128] sm:$0xff] }
 0x4b0   :  { %2611 = vmatmul.msk.f32.gmra.mxu0 %vm1425_vm11, %v1411_v58  ;;  %v908_v45 = vadd.f32 %v4842_v17, %v843_v53  ;;  %v858_v53 = vadd.f32 %v4865_v21, %v4864_v33  ;;  %v114_v21 = vld [vmem:[#allocation2 + $0x1d0] sm:$0xff] }
 0x4b2   :  { %2664 = vmatmul.msk.f32.gmra.mxu2 %vm219_vm0, %v659_v34  ;;  %v973_v34 = vadd.f32 %v4843_v38, %v908_v45  ;;  %v4867_v45 = vld [vmem:[#allocation68_spill] sm:$0xff]  ;;  %v4868_v38 = vld [vmem:[#allocation74_spill] sm:$0xff] }
 0x4b4   :  { %v1584_v30 = vpop.f32.mrf.mxu1 }
 0x4b5   :  { %v1370_v43 = vpop.f32.mrf.mxu2  ;;  %2649 = vmatmul.msk.f32.gmra.mxu3 %vm1425_vm11, %v1584_v30 }
 0x4b6   :  { %v1412_v22 = vmul.f32 %v1370_v43, %v958_v48  ;;  %v4844_v48 = vld [vmem:[#allocation17_spill] sm:$0xff] }
 0x4b7   :  { %v846_v43 = vadd.f32 %v4845_v36, %v4844_v48  ;;  %v4869_v48 = vld [vmem:[#allocation29_spill] sm:$0xff] }
 0x4b8   :  { %2612 = vmatmul.msk.f32.gmra.mxu0 %vm1425_vm11, %v1412_v22  ;;  %v4846_v22 = vld [vmem:[#allocation8_spill] sm:$0xff]  ;;  %v4870_v36 = vld [vmem:[#allocation57_spill] sm:$0xff] }
 0x4b9   :  { %v665_v18 = vmul.f32 %v4846_v22, %v89_v37  ;;  %v94_v37 = vld [vmem:[#allocation2 + $0x130] sm:$0xff]  ;;  %v4871_v22 = vld [vmem:[#allocation42_spill] sm:$0xff] }
 0x4ba   :  { %2665 = vmatmul.msk.f32.gmra.mxu2 %vm219_vm0, %v660_v14  ;;  %v4847_v14 = vld [vmem:[#allocation58_spill] sm:$0xff] }
 0x4bb   :  { %v911_v46 = vadd.f32 %v4847_v14, %v846_v43  ;;  %v861_v43 = vadd.f32 %v4870_v36, %v4869_v48 }
 0x4bc   :  { %v1587_v52 = vpop.f32.mrf.mxu1 }
 0x4bd   :  { %v1373_v24 = vpop.f32.mrf.mxu2  ;;  %2650 = vmatmul.msk.f32.gmra.mxu3 %vm1425_vm11, %v1587_v52 }
 0x4be   :  { %v1413_v63 = vmul.f32 %v1373_v24, %v961_v44  ;;  %v4848_v44 = vld [vmem:[#allocation67_spill] sm:$0xff] }
 0x4bf   :  { %v976_v6 = vadd.f32 %v4848_v44, %v911_v46  ;;  %v90_v24 = vld [vmem:[#allocation2 + $0x110] sm:$0xff]  ;;  %v4872_v46 = vld [vmem:[#allocation70_spill] sm:$0xff] }
 0x4c0   :  { %2613 = vmatmul.msk.f32.gmra.mxu0 %vm1425_vm11, %v1413_v63  ;;  %v849_v63 = vadd.f32 %v4850_v3, %v4849_v61  ;;  %v4873_v44 = vld [vmem:[#allocation75_spill] sm:$0xff]  ;;  %v4875_v3 = vld [vmem:[#allocation60_spill] sm:$0xff] }
 0x4c1   :  { %v4874_v61 = vld [vmem:[#allocation31_spill] sm:$0xff] }
 0x4c2   :  { %2666 = vmatmul.msk.f32.gmra.mxu2 %vm219_vm0, %v661_v62  ;;  %v4851_v62 = vld [vmem:[#allocation11_spill] sm:$0xff]  ;;  %v914_v52 = vadd.f32 %v4852_v27, %v849_v63  ;;  %v864_v63 = vadd.f32 %v4875_v3, %v4874_v61  ;;  %v4877_v27 = vld [vmem:[#allocation73_spill] sm:$0xff] }
 0x4c3   :  { %v666_v0 = vmul.f32 %v4851_v62, %v90_v24  ;;  %v95_v24 = vld [vmem:[#allocation2 + $0x138] sm:$0xff] }
 0x4c4   :  { %v1590_v51 = vpop.f32.mrf.mxu1  ;;  %v4876_v62 = vld [vmem:[#allocation44_spill] sm:$0xff] }
 0x4c5   :  { %v1376_v40 = vpop.f32.mrf.mxu2  ;;  %2651 = vmatmul.msk.f32.gmra.mxu3 %vm1425_vm11, %v1590_v51 }
 0x4c6   :  { %v1414_v41 = vmul.f32 %v1376_v40, %v964_v15  ;;  %v4853_v15 = vld [vmem:[#allocation69_spill] sm:$0xff]  ;;  %v91_v40 = vld [vmem:[#allocation2 + $0x118] sm:$0xff] }
 0x4c7   :  { %v979_v9 = vadd.f32 %v4853_v15, %v914_v52  ;;  %v929_v52 = vadd.f32 %v4877_v27, %v864_v63  ;;  %v4878_v15 = vld [vmem:[#allocation76_spill] sm:$0xff]  ;;  %v101_v63 = vld [vmem:[#allocation2 + $0x168] sm:$0xff] }
 0x4c8   :  { %2614 = vmatmul.msk.f32.gmra.mxu0 %vm1425_vm11, %v1414_v41  ;;  %v852_v41 = vadd.f32 %v4855_v1, %v4854_v16  ;;  %v4399_v16 = vld [vmem:[%s4705_s3] ss:$0 sm:$0xff]  ;;  %s2955_s3 = smov 64  }
 0x4ca   :  { %2667 = vmatmul.msk.f32.gmra.mxu2 %vm219_vm0, %v662_v4  ;;  %v4856_v4 = vld [vmem:[#allocation40_spill] sm:$0xff]  ;;  %v917_v51 = vadd.f32 %v4857_v54, %v852_v41 }
 0x4cb   :  { %v667_v19 = vmul.f32 %v4856_v4, %v91_v40  ;;  %v96_v4 = vld [vmem:[#allocation2 + $0x140] sm:$0xff] }
 0x4cc   :  { %v1593_v28 = vpop.f32.mrf.mxu1 }
 0x4cd   :  { %v1379_v25 = vpop.f32.mrf.mxu2  ;;  %2652 = vmatmul.msk.f32.gmra.mxu3 %vm1425_vm11, %v1593_v28 }
 0x4ce   :  { %v1415_v26 = vmul.f32 %v1379_v25, %v967_v7  ;;  %v4858_v7 = vld [vmem:[#allocation71_spill] sm:$0xff]  ;;  %v92_v25 = vld [vmem:[#allocation2 + $0x120] sm:$0xff] }
 0x4cf   :  { %v982_v57 = vadd.f32 %v4858_v7, %v917_v51  ;;  %v112_v51 = vld [vmem:[#allocation2 + $0x1c0] sm:$0xff] }
 0x4d0   :  { %2615 = vmatmul.msk.f32.gmra.mxu0 %vm1425_vm11, %v1415_v26  ;;  %v855_v26 = vadd.f32 %v4860_v59, %v4859_v31  ;;  %v97_v31 = vld [vmem:[#allocation2 + $0x148] sm:$0xff] }
 0x4d2   :  { %2668 = vmatmul.msk.f32.gmra.mxu2 %vm219_vm0, %v663_v8  ;;  %v4861_v8 = vld [vmem:[#allocation18_spill] sm:$0xff]  ;;  %v920_v28 = vadd.f32 %v4862_v12, %v855_v26 }
 0x4d3   :  { %v668_v11 = vmul.f32 %v4861_v8, %v92_v25  ;;  %v113_v8 = vld [vmem:[#allocation2 + $0x1c8] sm:$0xff] }
 0x4d4   :  { %v1596_v58 = vpop.f32.mrf.mxu1 }
 0x4d5   :  { %v1382_v29 = vpop.f32.mrf.mxu2  ;;  %2653 = vmatmul.msk.f32.gmra.mxu3 %vm1425_vm11, %v1596_v58  ;;  %v923_v58 = vadd.f32 %v4867_v45, %v858_v53 }
 0x4d6   :  { %v1416_v2 = vmul.f32 %v1382_v29, %v970_v60  ;;  %v985_v60 = vadd.f32 %v4863_v10, %v920_v28 }
 0x4d8   :  { %2616 = vmatmul.msk.f32.gmra.mxu0 %vm1425_vm11, %v1416_v2 }
 0x4da   :  { %2669 = vmatmul.msk.f32.gmra.mxu2 %vm219_vm0, %v664_v13  ;;  %v4866_v13 = vld [vmem:[#allocation19_spill] sm:$0xff] }
 0x4db   :  { %v669_v17 = vmul.f32 %v4866_v13, %v93_v50  ;;  %v98_v50 = vld [vmem:[#allocation2 + $0x150] sm:$0xff] }
 0x4dc   :  { %v1599_v30 = vpop.f32.mrf.mxu1 }
 0x4dd   :  { %v1385_v23 = vpop.f32.mrf.mxu2  ;;  %2654 = vmatmul.msk.f32.gmra.mxu3 %vm1425_vm11, %v1599_v30  ;;  %v926_v30 = vadd.f32 %v4872_v46, %v861_v43 }
 0x4de   :  { %v1417_v39 = vmul.f32 %v1385_v23, %v973_v34  ;;  %v988_v34 = vadd.f32 %v4868_v38, %v923_v58  ;;  %v99_v58 = vld [vmem:[#allocation2 + $0x158] sm:$0xff] }
 0x4e0   :  { %2617 = vmatmul.msk.f32.gmra.mxu0 %vm1425_vm11, %v1417_v39 }
 0x4e2   :  { %2670 = vmatmul.msk.f32.gmra.mxu2 %vm219_vm0, %v665_v18  ;;  %v670_v18 = vmul.f32 %v4871_v22, %v94_v37  ;;  %v115_v37 = vld [vmem:[#allocation2 + $0x1d8] sm:$0xff] }
 0x4e4   :  { %v1602_v49 = vpop.f32.mrf.mxu1 }
 0x4e5   :  { %v1388_v5 = vpop.f32.mrf.mxu2  ;;  %2655 = vmatmul.msk.f32.gmra.mxu3 %vm1425_vm11, %v1602_v49 }
 0x4e6   :  { %v1418_v55 = vmul.f32 %v1388_v5, %v976_v6  ;;  %v991_v6 = vadd.f32 %v4873_v44, %v926_v30  ;;  %v116_v30 = vld [vmem:[#allocation2 + $0x1e0] sm:$0xff] }
 0x4e8   :  { %2618 = vmatmul.msk.f32.gmra.mxu0 %vm1425_vm11, %v1418_v55 }
 0x4ea   :  { %2671 = vmatmul.msk.f32.gmra.mxu2 %vm219_vm0, %v666_v0  ;;  %v671_v0 = vmul.f32 %v4876_v62, %v95_v24 }
 0x4ec   :  { %v1605_v32 = vpop.f32.mrf.mxu1 }
 0x4ed   :  { %v1391_v56 = vpop.f32.mrf.mxu2  ;;  %2656 = vmatmul.msk.f32.gmra.mxu3 %vm1425_vm11, %v1605_v32 }
 0x4ee   :  { %v1419_v42 = vmul.f32 %v1391_v56, %v979_v9  ;;  %v994_v9 = vadd.f32 %v4878_v15, %v929_v52 }
 0x4f0   :  { %2619 = vmatmul.msk.f32.gmra.mxu0 %vm1425_vm11, %v1419_v42 }
 0x4f2   :  { %2672 = vmatmul.msk.f32.gmra.mxu2 %vm219_vm0, %v667_v19 }
 0x4f5   :  { %v1394_v20 = vpop.f32.mrf.mxu2 }
 0x4f6   :  { %v1420_v47 = vmul.f32 %v1394_v20, %v982_v57 }
 0x4f8   :  { %2620 = vmatmul.msk.f32.gmra.mxu0 %vm1425_vm11, %v1420_v47  ;;  %v1673_v35 = vpop.f32.mrf.mxu3 }
 0x4f9   :  { %v1725_v1 = vmul.f32 %v4399_v16, %v1673_v35 }
 0x4fa   :  { %2673 = vmatmul.msk.f32.gmra.mxu2 %vm219_vm0, %v668_v11 }
 0x4fb   :  { %vm1741_vm12 = vcmp.gt.f32.partialorder %v1725_v1, 0.5 }
 0x4fd   :  { %v1397_v29 = vpop.f32.mrf.mxu2 }
 0x4fe   :  { %v1421_v2 = vmul.f32 %v1397_v29, %v985_v60 }
 0x500   :  { %2621 = vmatmul.msk.f32.gmra.mxu0 %vm1425_vm11, %v1421_v2  ;;  %v1676_v14 = vpop.f32.mrf.mxu3 }
 0x501   :  { %v1726_v25 = vmul.f32 %v4399_v16, %v1676_v14 }
 0x502   :  { %2674 = vmatmul.msk.f32.gmra.mxu2 %vm219_vm0, %v669_v17 }
 0x503   :  { %vm1742_vm13 = vcmp.gt.f32.partialorder %v1726_v25, 0.5 }
 0x505   :  { %v1400_v23 = vpop.f32.mrf.mxu2 }
 0x506   :  { %v1422_v39 = vmul.f32 %v1400_v23, %v988_v34 }
 0x508   :  { %2622 = vmatmul.msk.f32.gmra.mxu0 %vm1425_vm11, %v1422_v39  ;;  %v1679_v49 = vpop.f32.mrf.mxu3 }
 0x509   :  { %v1727_v10 = vmul.f32 %v4399_v16, %v1679_v49 }
 0x50a   :  { %2675 = vmatmul.msk.f32.gmra.mxu2 %vm219_vm0, %v670_v18  ;;  %v100_v18 = vld [vmem:[#allocation2 + $0x160] sm:$0xff] }
 0x50b   :  { %vm1743_vm14 = vcmp.gt.f32.partialorder %v1727_v10, 0.5  ;;  %v104_v10 = vld [vmem:[#allocation2 + $0x180] sm:$0xff] }
 0x50d   :  { %v1403_v5 = vpop.f32.mrf.mxu2 }
 0x50e   :  { %v1423_v55 = vmul.f32 %v1403_v5, %v991_v6 }
 0x510   :  { %2623 = vmatmul.msk.f32.gmra.mxu0 %vm1425_vm11, %v1423_v55  ;;  %v1682_v41 = vpop.f32.mrf.mxu3 }
 0x511   :  { %v1728_v17 = vmul.f32 %v4399_v16, %v1682_v41 }
 0x512   :  { %2676 = vmatmul.msk.f32.gmra.mxu2 %vm219_vm0, %v671_v0  ;;  %v117_v0 = vld [vmem:[#allocation2 + $0x1e8] sm:$0xff] }
 0x513   :  { %vm1744_vm15 = vcmp.gt.f32.partialorder %v1728_v17, 0.5 }
 0x515   :  { %v1406_v40 = vpop.f32.mrf.mxu2 }
 0x516   :  { %v1424_v56 = vmul.f32 %v1406_v40, %v994_v9  ;;  %v102_v40 = vld [vmem:[#allocation2 + $0x170] sm:$0xff] }
 0x518   :  { %2624 = vmatmul.msk.f32.gmra.mxu0 %vm1425_vm11, %v1424_v56  ;;  %v1685_v47 = vpop.f32.mrf.mxu3 }
 0x519   :  { %v1729_v39 = vmul.f32 %v4399_v16, %v1685_v47 }
 0x51b   :  { %vm1745_vm1 = vcmp.gt.f32.partialorder %v1729_v39, 0.5 }
 0x51d   :  { %v1491_v42 = vpop.f32.mrf.mxu0  ;;  %v1842_v19 = vpop.f32.mrf.mxu2 }
 0x51e   :  { %v1843_v54 = vadd.f32 %v1842_v19, %v1491_v42  ;;  %v118_v42 = vld [vmem:[#allocation2 + $0x1f0] sm:$0xff] }
 0x520   :  { %v1890_v32 = vadd.f32 %v1843_v54, %v96_v4  ;;  %v1688_v2 = vpop.f32.mrf.mxu3 }
 0x521   :  { %v1730_v5 = vmul.f32 %v4399_v16, %v1688_v2 }
 0x522   :  { %v4403_v7 = vsel %vm1741_vm12, %v1890_v32, %v112_v51 }
 0x523   :  { %v1922_v57 = vsel %vm219_vm0, %v4403_v7, -inf  ;;  %vm1746_vm2 = vcmp.gt.f32.partialorder %v1730_v5, 0.5 }
 0x524   :  { %1923 = vmax.xlane.f32.xlu0 %v1922_v57  ;;  %v103_v57 = vld [vmem:[#allocation2 + $0x178] sm:$0xff] }
 0x525   :  { %v1494_v20 = vpop.f32.mrf.mxu0  ;;  %v1845_v59 = vpop.f32.mrf.mxu2 }
 0x526   :  { %v1846_v26 = vadd.f32 %v1845_v59, %v1494_v20 }
 0x528   :  { %v1891_v11 = vadd.f32 %v1846_v26, %v97_v31  ;;  %v1691_v36 = vpop.f32.mrf.mxu3  ;;  %v119_v31 = vld [vmem:[#allocation2 + $0x1f8] sm:$0xff] }
 0x529   :  { %v1731_v15 = vmul.f32 %v4399_v16, %v1691_v36 }
 0x52a   :  { %v4408_v12 = vsel %vm1742_vm13, %v1891_v11, %v113_v8 }
 0x52b   :  { %v1925_v28 = vsel %vm219_vm0, %v4408_v12, -inf  ;;  %vm1747_vm3 = vcmp.gt.f32.partialorder %v1731_v15, 0.5 }
 0x52c   :  { %1926 = vmax.xlane.f32.xlu2 %v1925_v28 }
 0x52d   :  { %v1497_v60 = vpop.f32.mrf.mxu0  ;;  %v1848_v29 = vpop.f32.mrf.mxu2 }
 0x52e   :  { %v1849_v33 = vadd.f32 %v1848_v29, %v1497_v60  ;;  %v120_v29 = vld [vmem:[#allocation2 + $0x200] sm:$0xff] }
 0x530   :  { %v1892_v53 = vadd.f32 %v1849_v33, %v98_v50  ;;  %v1694_v61 = vpop.f32.mrf.mxu3 }
 0x531   :  { %v1732_v51 = vmul.f32 %v4399_v16, %v1694_v61 }
 0x532   :  { %v4413_v35 = vsel %vm1743_vm14, %v1892_v53, %v114_v21 }
 0x533   :  { %v1928_v13 = vsel %vm219_vm0, %v4413_v35, -inf  ;;  %vm1748_vm4 = vcmp.gt.f32.partialorder %v1732_v51, 0.5  ;;  %v109_v51 = vld [vmem:[#allocation2 + $0x1a8] sm:$0xff] }
 0x534   :  { %1929 = vmax.xlane.f32.xlu1 %v1928_v13 }
 0x535   :  { %v1500_v45 = vpop.f32.mrf.mxu0  ;;  %v1851_v38 = vpop.f32.mrf.mxu2 }
 0x536   :  { %v1852_v34 = vadd.f32 %v1851_v38, %v1500_v45  ;;  %v105_v45 = vld [vmem:[#allocation2 + $0x188] sm:$0xff] }
 0x538   :  { %v1893_v23 = vadd.f32 %v1852_v34, %v99_v58  ;;  %v1697_v41 = vpop.f32.mrf.mxu3  ;;  %v121_v34 = vld [vmem:[#allocation2 + $0x208] sm:$0xff] }
 0x539   :  { %v1733_v11 = vmul.f32 %v4399_v16, %v1697_v41 }
 0x53a   :  { %v4418_v48 = vsel %vm1744_vm15, %v1893_v23, %v115_v37 }
 0x53b   :  { %v1931_v43 = vsel %vm219_vm0, %v4418_v48, -inf  ;;  %vm1749_vm5 = vcmp.gt.f32.partialorder %v1733_v11, 0.5 }
 0x53c   :  { %1932 = vmax.xlane.f32.xlu0 %v1931_v43 }
 0x53d   :  { %v1503_v22 = vpop.f32.mrf.mxu0  ;;  %v1854_v14 = vpop.f32.mrf.mxu2 }
 0x53e   :  { %v1855_v46 = vadd.f32 %v1854_v14, %v1503_v22 }
 0x540   :  { %v1894_v44 = vadd.f32 %v1855_v46, %v100_v18  ;;  %v1700_v26 = vpop.f32.mrf.mxu3  ;;  %v4879_v46 = vld [vmem:[#allocation15_spill] sm:$0xff] }
 0x541   :  { %v1734_v13 = vmul.f32 %v4399_v16, %v1700_v26 }
 0x542   :  { %v4423_v6 = vsel %vm1745_vm1, %v1894_v44, %v116_v30  ;;  %v4880_v30 = vld [vmem:[#allocation16_spill] sm:$0xff] }
 0x543   :  { %v1934_v24 = vsel %vm219_vm0, %v4423_v6, -inf  ;;  %vm1750_vm6 = vcmp.gt.f32.partialorder %v1734_v13, 0.5  ;;  %v4881_v44 = vpack.i.bf16 %v4879_v46, %v4880_v30 }
 0x544   :  { %1935 = vmax.xlane.f32.xlu2 %v1934_v24  ;;  %v107_v24 = vld [vmem:[#allocation2 + $0x198] sm:$0xff] }
 0x545   :  { %v1506_v3 = vpop.f32.mrf.mxu0  ;;  %v1857_v55 = vpop.f32.mrf.mxu2 }
 0x546   :  { %v1858_v62 = vadd.f32 %v1857_v55, %v1506_v3 }
 0x548   :  { %v1895_v27 = vadd.f32 %v1858_v62, %v101_v63  ;;  %v1703_v53 = vpop.f32.mrf.mxu3  ;;  %v123_v63 = vld [vmem:[#allocation2 + $0x218] sm:$0xff] }
 0x549   :  { %v1735_v11 = vmul.f32 %v4399_v16, %v1703_v53 }
 0x54a   :  { %v4428_v52 = vsel %vm1746_vm2, %v1895_v27, %v117_v0 }
 0x54b   :  { %v1937_v49 = vsel %vm219_vm0, %v4428_v52, -inf  ;;  %vm1751_vm10 = vcmp.gt.f32.partialorder %v1735_v11, 0.5 }
 0x54c   :  { %1938 = vmax.xlane.f32.xlu1 %v1937_v49  ;;  %v108_v49 = vld [vmem:[#allocation2 + $0x1a0] sm:$0xff] }
 0x54d   :  { %v1509_v9 = vpop.f32.mrf.mxu0  ;;  %v1860_v56 = vpop.f32.mrf.mxu2 }
 0x54e   :  { %v1861_v1 = vadd.f32 %v1860_v56, %v1509_v9 }
 0x550   :  { %v1896_v4 = vadd.f32 %v1861_v1, %v102_v40  ;;  %v1706_v43 = vpop.f32.mrf.mxu3  ;;  %v124_v40 = vld [vmem:[#allocation2 + $0x220] sm:$0xff] }
 0x551   :  { %v1736_v18 = vmul.f32 %v4399_v16, %v1706_v43 }
 0x552   :  { %v4433_v19 = vsel %vm1747_vm3, %v1896_v4, %v118_v42 }
 0x553   :  { %v1940_v54 = vsel %vm219_vm0, %v4433_v19, -inf  ;;  %vm1752_vm7 = vcmp.gt.f32.partialorder %v1736_v18, 0.5 }
 0x554   :  { %1941 = vmax.xlane.f32.xlu0 %v1940_v54 }
 0x555   :  { %v1512_v32 = vpop.f32.mrf.mxu0  ;;  %v1863_v25 = vpop.f32.mrf.mxu2 }
 0x556   :  { %v1864_v20 = vadd.f32 %v1863_v25, %v1512_v32  ;;  %v125_v25 = vld [vmem:[#allocation2 + $0x228] sm:$0xff] }
 0x558   :  { %v1897_v59 = vadd.f32 %v1864_v20, %v103_v57  ;;  %v1709_v3 = vpop.f32.mrf.mxu3 }
 0x559   :  { %v1737_v0 = vmul.f32 %v4399_v16, %v1709_v3 }
 0x55a   :  { %v4438_v47 = vsel %vm1748_vm4, %v1897_v59, %v119_v31 }
 0x55b   :  { %v1943_v8 = vsel %vm219_vm0, %v4438_v47, -inf  ;;  %vm1753_vm8 = vcmp.gt.f32.partialorder %v1737_v0, 0.5 }
 0x55c   :  { %1944 = vmax.xlane.f32.xlu1 %v1943_v8  ;;  %v106_v8 = vld [vmem:[#allocation2 + $0x190] sm:$0xff] }
 0x55d   :  { %v1515_v28 = vpop.f32.mrf.mxu0  ;;  %v1866_v60 = vpop.f32.mrf.mxu2 }
 0x55e   :  { %v1867_v50 = vadd.f32 %v1866_v60, %v1515_v28 }
 0x560   :  { %v1898_v33 = vadd.f32 %v1867_v50, %v104_v10  ;;  %v1712_v1 = vpop.f32.mrf.mxu3 }
 0x561   :  { %v1738_v4 = vmul.f32 %v4399_v16, %v1712_v1 }
 0x562   :  { %v4443_v21 = vsel %vm1749_vm5, %v1898_v33, %v120_v29  ;;  %v122_v33 = vld [vmem:[#allocation2 + $0x210] sm:$0xff] }
 0x563   :  { %v1946_v2 = vsel %vm219_vm0, %v4443_v21, -inf  ;;  %vm1754_vm9 = vcmp.gt.f32.partialorder %v1738_v4, 0.5 }
 0x564   :  { %1947 = vmax.xlane.f32.xlu2 %v1946_v2 }
 0x565   :  { %v1518_v17 = vpop.f32.mrf.mxu0  ;;  %v1869_v58 = vpop.f32.mrf.mxu2 }
 0x566   :  { %v1870_v38 = vadd.f32 %v1869_v58, %v1518_v17  ;;  %v110_v58 = vld [vmem:[#allocation2 + $0x1b0] sm:$0xff] }
 0x568   :  { %v1899_v37 = vadd.f32 %v1870_v38, %v105_v45  ;;  %v1715_v2 = vpop.f32.mrf.mxu3 }
 0x569   :  { %v1739_v38 = vmul.f32 %v4399_v16, %v1715_v2 }
 0x56a   :  { %v4448_v23 = vsel %vm1750_vm6, %v1899_v37, %v121_v34 }
 0x56b   :  { %v1949_v36 = vsel %vm219_vm0, %v4448_v23, -inf  ;;  %vm1755_vm11 = vcmp.gt.f32.partialorder %v1739_v38, 0.5  ;;  %v127_v38 = vld [vmem:[#allocation2 + $0x238] sm:$0xff] }
 0x56c   :  { %1950 = vmax.xlane.f32.xlu0 %v1949_v36 }
 0x56d   :  { %v1521_v39 = vpop.f32.mrf.mxu0  ;;  %v1872_v22 = vpop.f32.mrf.mxu2 }
 0x56e   :  { %v1873_v26 = vadd.f32 %v1872_v22, %v1521_v39 }
 0x570   :  { %v1900_v28 = vadd.f32 %v1873_v26, %v106_v8 }
 0x572   :  { %v4471_v45 = vsel %vm1751_vm10, %v1900_v28, %v122_v33  ;;  %v111_v33 = vld [vmem:[#allocation2 + $0x1b8] sm:$0xff] }
 0x573   :  { %v1952_v53 = vsel %vm219_vm0, %v4471_v45, -inf }
 0x575   :  { %v1875_v14 = vpop.f32.mrf.mxu2  ;;  %2754 = vrot.lane.b32.xlu1 %v4881_v44, %s2955_s3  ;;  %v1524_v5 = vpop.f32.mrf.mxu0 }
 0x576   :  { %v1876_v61 = vadd.f32 %v1875_v14, %v1524_v5 }
 0x578   :  { %v1901_v55 = vadd.f32 %v1876_v61, %v107_v24 }
 0x57a   :  { %v4457_v62 = vsel %vm1752_vm7, %v1901_v55, %v123_v63 }
 0x57d   :  { %v1527_v27 = vpop.f32.mrf.mxu0  ;;  %v1878_v15 = vpop.f32.mrf.mxu2 }
 0x57e   :  { %v1879_v9 = vadd.f32 %v1878_v15, %v1527_v27 }
 0x580   :  { %v1902_v56 = vadd.f32 %v1879_v9, %v108_v49 }
 0x582   :  { %v4460_v41 = vsel %vm1753_vm8, %v1902_v56, %v124_v40  ;;  %v4883_v56 = vld [vmem:[#allocation14_spill] sm:$0xff] }
 0x583   :  { %v1958_v42 = vsel %vm219_vm0, %v4460_v41, -inf }
 0x584   :  { %1959 = vmax.xlane.f32.xlu0 %v1958_v42 }
 0x585   :  { %v1530_v54 = vpop.f32.mrf.mxu0  ;;  %v1881_v32 = vpop.f32.mrf.mxu2 }
 0x586   :  { %v1882_v57 = vadd.f32 %v1881_v32, %v1530_v54 }
 0x588   :  { %v1903_v20 = vadd.f32 %v1882_v57, %v109_v51 }
 0x58a   :  { %v4465_v31 = vsel %vm1754_vm9, %v1903_v20, %v125_v25 }
 0x58b   :  { %v1961_v59 = vsel %vm219_vm0, %v4465_v31, -inf }
 0x58c   :  { %1962 = vmax.xlane.f32.xlu0 %v1961_v59 }
 0x58d   :  { %v1533_v60 = vpop.f32.mrf.mxu0  ;;  %v1884_v50 = vpop.f32.mrf.mxu2 }
 0x58e   :  { %v1885_v17 = vadd.f32 %v1884_v50, %v1533_v60  ;;  %v1718_v60 = vpop.f32.mrf.mxu3 }
 0x58f   :  { %v1740_v2 = vmul.f32 %v4399_v16, %v1718_v60 }
 0x590   :  { %v1904_v34 = vadd.f32 %v1885_v17, %v110_v58 }
 0x591   :  { %vm1756_vm12 = vcmp.gt.f32.partialorder %v1740_v2, 0.5 }
 0x597   :  { %v1924_v10 = vpop.xlane.xlu0 %1923 }
 0x598   :  { %v1970_v29 = vsub.f32 %v4403_v7, %v1924_v10  ;;  %v126_v7 = vld [vmem:[#allocation2 + $0x230] sm:$0xff]  ;;  %v1887_v10 = vpop.f32.mrf.mxu2 }
 0x599   :  { %v4481_v18 = vsel %vm1755_vm11, %v1904_v34, %v126_v7 }
 0x59a   :  { %v1986_v13 = vmul.f32 1.442695, %v1970_v29  ;;  %v1964_v14 = vsel %vm219_vm0, %v4481_v18, -inf }
 0x59c   :  { %2788 = vpow2.f32 %v1986_v13 }
 0x59f   :  { %v1927_v37 = vpop.xlane.xlu2 %1926  ;;  %1953 = vmax.xlane.f32.xlu1 %v1952_v53 }
 0x5a0   :  { %v1971_v36 = vsub.f32 %v4408_v12, %v1927_v37 }
 0x5a2   :  { %v4477_v43 = vpop.eup %2788  ;;  %v1988_v39 = vmul.f32 1.442695, %v1971_v36 }
 0x5a3   :  { %v2018_v22 = vsel %vm219_vm0, %v4477_v43, 0.0 }
 0x5a4   :  { %2790 = vpow2.f32 %v1988_v39  ;;  %2019 = vadd.xlane.f32.xlu2 %v2018_v22 }
 0x5a7   :  { %v1930_v44 = vpop.xlane.xlu1 %1929  ;;  %1965 = vmax.xlane.f32.xlu1 %v1964_v14 }
 0x5a8   :  { %v1972_v24 = vsub.f32 %v4413_v35, %v1930_v44 }
 0x5aa   :  { %v4486_v5 = vpop.eup %2790  ;;  %v1990_v12 = vmul.f32 1.442695, %v1972_v24 }
 0x5ab   :  { %v2021_v61 = vsel %vm219_vm0, %v4486_v5, 0.0 }
 0x5ac   :  { %2792 = vpow2.f32 %v1990_v12  ;;  %2022 = vadd.xlane.f32.xlu0 %v2021_v61 }
 0x5af   :  { %v1933_v3 = vpop.xlane.xlu0 %1932 }
 0x5b0   :  { %v1973_v63 = vsub.f32 %v4418_v48, %v1933_v3  ;;  %v4882_v48 = vld [vmem:[#allocation13_spill] sm:$0xff] }
 0x5b1   :  { %v4884_v1 = vpack.i.bf16 %v4882_v48, %v4883_v56 }
 0x5b2   :  { %v4491_v55 = vpop.eup %2792  ;;  %v1992_v0 = vmul.f32 1.442695, %v1973_v63 }
 0x5b3   :  { %v2024_v27 = vsel %vm219_vm0, %v4491_v55, 0.0 }
 0x5b4   :  { %2794 = vpow2.f32 %v1992_v0  ;;  %2025 = vadd.xlane.f32.xlu0 %v2024_v27 }
 0x5b7   :  { %v1936_v35 = vpop.xlane.xlu2 %1935 }
 0x5b8   :  { %v1974_v49 = vsub.f32 %v4423_v6, %v1936_v35  ;;  %v2573_v35 = vmul.f32 -1.442695, %v4882_v48 }
 0x5ba   :  { %v4496_v15 = vpop.eup %2794  ;;  %v1994_v9 = vmul.f32 1.442695, %v1974_v49 }
 0x5bb   :  { %v2027_v40 = vsel %vm219_vm0, %v4496_v15, 0.0 }
 0x5bc   :  { %2796 = vpow2.f32 %v1994_v9  ;;  %2759 = vrot.lane.b32.xlu2 %v4884_v1, %s2955_s3  ;;  %2028 = vadd.xlane.f32.xlu0 %v2027_v40 }
 0x5bf   :  { %v1939_v42 = vpop.xlane.xlu1 %1938 }
 0x5c0   :  { %v1975_v4 = vsub.f32 %v4428_v52, %v1939_v42 }
 0x5c2   :  { %v4505_v54 = vpop.eup %2796  ;;  %v1996_v51 = vmul.f32 1.442695, %v1975_v4 }
 0x5c3   :  { %v2030_v6 = vsel %vm219_vm0, %v4505_v54, 0.0 }
 0x5c4   :  { %2798 = vpow2.f32 %v1996_v51  ;;  %2031 = vadd.xlane.f32.xlu0 %v2030_v6 }
 0x5c7   :  { %v1942_v32 = vpop.xlane.xlu0 %1941 }
 0x5c8   :  { %v1976_v57 = vsub.f32 %v4433_v19, %v1942_v32  ;;  %v1536_v19 = vpop.f32.mrf.mxu0 }
 0x5c9   :  { %v1888_v50 = vadd.f32 %v1887_v10, %v1536_v19 }
 0x5ca   :  { %v4510_v25 = vpop.eup %2798  ;;  %v1998_v20 = vmul.f32 1.442695, %v1976_v57 }
 0x5cb   :  { %v2033_v59 = vsel %vm219_vm0, %v4510_v25, 0.0  ;;  %v1905_v58 = vadd.f32 %v1888_v50, %v111_v33 }
 0x5cc   :  { %2800 = vpow2.f32 %v1998_v20  ;;  %2034 = vadd.xlane.f32.xlu0 %v2033_v59 }
 0x5cd   :  { %v4526_v36 = vsel %vm1756_vm12, %v1905_v58, %v127_v38 }
 0x5ce   :  { %v1967_v16 = vsel %vm219_vm0, %v4526_v36, -inf }
 0x5cf   :  { %v1945_v52 = vpop.xlane.xlu1 %1944 }
 0x5d0   :  { %v1977_v26 = vsub.f32 %v4438_v47, %v1945_v52 }
 0x5d2   :  { %v4515_v8 = vpop.eup %2800  ;;  %v2000_v11 = vmul.f32 1.442695, %v1977_v26 }
 0x5d3   :  { %v2036_v28 = vsel %vm219_vm0, %v4515_v8, 0.0 }
 0x5d4   :  { %2802 = vpow2.f32 %v2000_v11  ;;  %2037 = vadd.xlane.f32.xlu0 %v2036_v28 }
 0x5d7   :  { %v1948_v29 = vpop.xlane.xlu2 %1947 }
 0x5d8   :  { %v1978_v47 = vsub.f32 %v4443_v21, %v1948_v29  ;;  %v1955_v21 = vsel %vm219_vm0, %v4457_v62, -inf }
 0x5da   :  { %v4520_v13 = vpop.eup %2802  ;;  %v2002_v53 = vmul.f32 1.442695, %v1978_v47 }
 0x5db   :  { %v2039_v17 = vsel %vm219_vm0, %v4520_v13, 0.0 }
 0x5dc   :  { %2040 = vadd.xlane.f32.xlu0 %v2039_v17  ;;  %2804 = vpow2.f32 %v2002_v53 }
 0x5df   :  { %v1951_v34 = vpop.xlane.xlu0 %1950 }
 0x5e0   :  { %v1979_v37 = vsub.f32 %v4448_v23, %v1951_v34 }
 0x5e2   :  { %v2004_v7 = vmul.f32 1.442695, %v1979_v37  ;;  %v4532_v14 = vpop.eup %2804 }
 0x5e3   :  { %v2042_v12 = vsel %vm219_vm0, %v4532_v14, 0.0 }
 0x5e4   :  { %2806 = vpow2.f32 %v2004_v7  ;;  %1968 = vmax.xlane.f32.xlu0 %v1967_v16 }
 0x5e5   :  { %1956 = vmax.xlane.f32.xlu2 %v1955_v21 }
 0x5e7   :  { %v2755_v39 = vpop.permute.xlu1 %2754 }
 0x5e8   :  { %v2756_v22 = vunpack.i.l.bf16 %v2755_v39  ;;  %v2757_v23 = vunpack.i.h.bf16 %v2755_v39 }
 0x5ea   :  { %v4534_v44 = vpop.eup %2806  ;;  %2378 = vmatpush.msra.mxu0 %v2756_v22 }
 0x5eb   :  { %v2045_v24 = vsel %vm219_vm0, %v4534_v44, 0.0 }
 0x5ec   :  { %2379 = vmatpush.msra.mxu0 %v2757_v23  ;;  %2046 = vadd.xlane.f32.xlu1 %v2045_v24 }
 0x5ed   :  { %2043 = vadd.xlane.f32.xlu2 %v2042_v12 }
 0x5f7   :  { %v1960_v61 = vpop.xlane.xlu0 %1959 }
 0x5f8   :  { %v1982_v3 = vsub.f32 %v4460_v41, %v1960_v61 }
 0x5fa   :  { %v2010_v63 = vmul.f32 1.442695, %v1982_v3 }
 0x5fc   :  { %2808 = vpow2.f32 %v2010_v63 }
 0x5fd   :  { %2810 = vpow2.f32 %v2573_v35 }
 0x5ff   :  { %v1963_v49 = vpop.xlane.xlu0 %1962 }
 0x600   :  { %v1983_v1 = vsub.f32 %v4465_v31, %v1963_v49 }
 0x602   :  { %v4541_v0 = vpop.eup %2808  ;;  %v2012_v4 = vmul.f32 1.442695, %v1983_v1 }
 0x603   :  { %v2054_v27 = vsel %vm219_vm0, %v4541_v0, 0.0  ;;  %v2811_v51 = vpop.eup %2810 }
 0x604   :  { %2055 = vadd.xlane.f32.xlu1 %v2054_v27  ;;  %v4550_v57 = vadd.f32 1.0, %v2811_v51 }
 0x606   :  { %vm488_vm11 = vweird.f32 %v4550_v57 }
 0x612   :  { %v1954_v9 = vpop.xlane.xlu1 %1953 }
 0x613   :  { %v1980_v40 = vsub.f32 %v4471_v45, %v1954_v9 }
 0x615   :  { %v2006_v42 = vmul.f32 1.442695, %v1980_v40 }
 0x617   :  { %2812 = vpow2.f32 %v2006_v42  ;;  %v2020_v41 = vpop.xlane.xlu2 %2019 }
 0x618   :  { %2814 = vrcp.f32 %v2020_v41  ;;  %v2077_v26 = vand.u32 2147483648, %v2020_v41  ;;  %v2075_v10 = vand.u32 2147483647, %v2020_v41  ;;  %vm2071_vm14 = vweird.f32 %v2020_v41 }
 0x619   :  { %2816 = vpow2.f32 %v2012_v4 }
 0x61a   :  { %v2078_v29 = vor.u32 1.1754944e-38, %v2077_v26  ;;  %vm2076_vm1 = vcmp.eq.f32.partialorder %v2075_v10, 8.507059e+37 }
 0x61d   :  { %v4548_v6 = vpop.eup %2812 }
 0x61e   :  { %v2815_v32 = vpop.eup %2814  ;;  %v2048_v48 = vsel %vm219_vm0, %v4548_v6, 0.0 }
 0x61f   :  { %v2067_v20 = vmul.f32 %v2815_v32, %v2020_v41  ;;  %v2760_v45 = vpop.permute.xlu2 %2759  ;;  %2049 = vadd.xlane.f32.xlu2 %v2048_v48  ;;  %v2023_v59 = vpop.xlane.xlu0 %2022  ;;  %vm2072_vm13 = vweird.f32 %v2815_v32  ;;  %v494_v48 = vand.u32 2147483648, %v4550_v57 }
 0x620   :  { %v2761_v31 = vunpack.i.l.bf16 %v2760_v45  ;;  %2818 = vrcp.f32 %v2023_v59  ;;  %v2762_v11 = vunpack.i.h.bf16 %v2760_v45  ;;  %v4555_v28 = vpop.eup %2816  ;;  %vm2073_vm15 = vmor %vm2071_vm14, %vm2072_vm13  ;;  %v2091_v7 = vand.u32 2147483648, %v2023_v59 }
 0x621   :  { %v2068_v52 = vsub.f32 1.0, %v2067_v20  ;;  %2820 = vrcp.f32 %v4550_v57  ;;  %v2057_v33 = vsel %vm219_vm0, %v4555_v28, 0.0  ;;  %v2089_v21 = vand.u32 2147483647, %v2023_v59 }
 0x622   :  { %2380 = vmatpush.msra.mxu0 %v2761_v31  ;;  %vm2085_vm3 = vweird.f32 %v2023_v59  ;;  %v2092_v23 = vor.u32 1.1754944e-38, %v2091_v7  ;;  %v495_v10 = vor.u32 1.1754944e-38, %v494_v48 }
 0x623   :  { %v2069_v19 = vmul.f32 %v2815_v32, %v2068_v52  ;;  %vm2090_vm5 = vcmp.eq.f32.partialorder %v2089_v21, 8.507059e+37 }
 0x624   :  { %2381 = vmatpush.msra.mxu0 %v2762_v11 }
 0x625   :  { %v2070_v60 = vadd.f32 %v2815_v32, %v2069_v19 }
 0x626   :  { %v2819_v50 = vpop.eup %2818 }
 0x627   :  { %v2074_v2 = vsel %vm2073_vm15, %v2815_v32, %v2070_v60  ;;  %v2081_v47 = vmul.f32 %v2819_v50, %v2023_v59  ;;  %2058 = vadd.xlane.f32.xlu2 %v2057_v33  ;;  %v2026_v17 = vpop.xlane.xlu0 %2025  ;;  %v4559_v58 = vpop.eup %2820  ;;  %vm2086_vm2 = vweird.f32 %v2819_v50  ;;  %v492_v59 = vand.u32 2147483647, %v4550_v57 }
 0x628   :  { %v2079_v38 = vsel %vm2076_vm1, %v2078_v29, %v2074_v2  ;;  %2822 = vrcp.f32 %v2026_v17  ;;  %v484_v16 = vmul.f32 %v4559_v58, %v4550_v57  ;;  %vm2087_vm4 = vmor %vm2085_vm3, %vm2086_vm2  ;;  %v2105_v49 = vand.u32 2147483648, %v2026_v17 }
 0x629   :  { %v2290_v53 = vmul.f32 %v4477_v43, %v2079_v38  ;;  %v2082_v34 = vsub.f32 1.0, %v2081_v47  ;;  %v2103_v40 = vand.u32 2147483647, %v2026_v17  ;;  %vm2099_vm7 = vweird.f32 %v2026_v17 }
 0x62a   :  { %v485_v3 = vsub.f32 1.0, %v484_v16  ;;  %vm489_vm9 = vweird.f32 %v4559_v58  ;;  %v2106_v41 = vor.u32 1.1754944e-38, %v2105_v49  ;;  %vm493_vm15 = vcmp.eq.f32.partialorder %v492_v59, 8.507059e+37 }
 0x62b   :  { %v2083_v37 = vmul.f32 %v2819_v50, %v2082_v34  ;;  %2677 = vmatmul.msk.f32.vlgmr.msra.gmra.mxu0 %vm219_vm0, %v2290_v53  ;;  %vm2104_vm10 = vcmp.eq.f32.partialorder %v2103_v40, 8.507059e+37  ;;  %vm490_vm12 = vmor %vm488_vm11, %vm489_vm9 }
 0x62c   :  { %v486_v9 = vmul.f32 %v4559_v58, %v485_v3 }
 0x62d   :  { %v2084_v39 = vadd.f32 %v2819_v50, %v2083_v37 }
 0x62e   :  { %v2823_v22 = vpop.eup %2822 }
 0x62f   :  { %v2095_v24 = vmul.f32 %v2823_v22, %v2026_v17  ;;  %v2029_v12 = vpop.xlane.xlu0 %2028  ;;  %v2088_v61 = vsel %vm2087_vm4, %v2819_v50, %v2084_v39  ;;  %vm2100_vm6 = vweird.f32 %v2823_v22 }
 0x630   :  { %2824 = vrcp.f32 %v2029_v12  ;;  %v2093_v63 = vsel %vm2090_vm5, %v2092_v23, %v2088_v61  ;;  %vm2101_vm8 = vmor %vm2099_vm7, %vm2100_vm6  ;;  %v2119_v26 = vand.u32 2147483648, %v2029_v12  ;;  %v2117_v19 = vand.u32 2147483647, %v2029_v12 }
 0x631   :  { %v2096_v43 = vsub.f32 1.0, %v2095_v24  ;;  %v2291_v27 = vmul.f32 %v4486_v5, %v2093_v63  ;;  %v487_v5 = vadd.f32 %v4559_v58, %v486_v9  ;;  %vm2113_vm14 = vweird.f32 %v2029_v12 }
 0x632   :  { %v2120_v33 = vor.u32 1.1754944e-38, %v2119_v26  ;;  %vm2118_vm2 = vcmp.eq.f32.partialorder %v2117_v19, 8.507059e+37  ;;  %v2574_v23 = vmul.f32 -1.442695, %v4883_v56 }
 0x633   :  { %v2097_v35 = vmul.f32 %v2823_v22, %v2096_v43  ;;  %2678 = vmatmul.msk.f32.gmra.mxu0 %vm219_vm0, %v2291_v27  ;;  %v491_v11 = vsel %vm490_vm12, %v4559_v58, %v487_v5 }
 0x634   :  { %v496_v29 = vsel %vm493_vm15, %v495_v10, %v491_v11 }
 0x635   :  { %v2098_v1 = vadd.f32 %v2823_v22, %v2097_v35  ;;  %v2575_v35 = vmul.f32 -1.442695, %v4879_v46 }
 0x636   :  { %v2825_v42 = vpop.eup %2824 }
 0x637   :  { %v2109_v4 = vmul.f32 %v2825_v42, %v2029_v12  ;;  %v2032_v51 = vpop.xlane.xlu0 %2031  ;;  %v2102_v32 = vsel %vm2101_vm8, %v2823_v22, %v2098_v1  ;;  %vm2114_vm13 = vweird.f32 %v2825_v42 }
 0x638   :  { %2826 = vrcp.f32 %v2032_v51  ;;  %v2107_v45 = vsel %vm2104_vm10, %v2106_v41, %v2102_v32  ;;  %vm2115_vm1 = vmor %vm2113_vm14, %vm2114_vm13  ;;  %v2133_v53 = vand.u32 2147483648, %v2032_v51  ;;  %v2131_v34 = vand.u32 2147483647, %v2032_v51 }
 0x639   :  { %v2110_v20 = vsub.f32 1.0, %v2109_v4  ;;  %v2292_v31 = vmul.f32 %v4491_v55, %v2107_v45  ;;  %vm2127_vm4 = vweird.f32 %v2032_v51  ;;  %v1966_v45 = vpop.xlane.xlu1 %1965 }
 0x63a   :  { %v2134_v16 = vor.u32 1.1754944e-38, %v2133_v53  ;;  %vm2132_vm6 = vcmp.eq.f32.partialorder %v2131_v34, 8.507059e+37 }
 0x63b   :  { %v2111_v52 = vmul.f32 %v2825_v42, %v2110_v20  ;;  %2679 = vmatmul.msk.f32.gmra.mxu0 %vm219_vm0, %v2292_v31 }
 0x63d   :  { %v2112_v60 = vadd.f32 %v2825_v42, %v2111_v52 }
 0x63e   :  { %v2827_v50 = vpop.eup %2826 }
 0x63f   :  { %v2123_v57 = vmul.f32 %v2827_v50, %v2032_v51  ;;  %2480 = vrot.lane.b32.xlu2 %v496_v29, %s2956_s26  ;;  %v2035_v55 = vpop.xlane.xlu0 %2034  ;;  %v2116_v2 = vsel %vm2115_vm1, %v2825_v42, %v2112_v60  ;;  %vm2128_vm3 = vweird.f32 %v2827_v50  ;;  %v2576_v29 = vmul.f32 -1.442695, %v4880_v30 }
 0x640   :  { %2828 = vrcp.f32 %v2035_v55  ;;  %v2121_v17 = vsel %vm2118_vm2, %v2120_v33, %v2116_v2  ;;  %vm2129_vm5 = vmor %vm2127_vm4, %vm2128_vm3  ;;  %v2147_v3 = vand.u32 2147483648, %v2035_v55  ;;  %v2145_v43 = vand.u32 2147483647, %v2035_v55 }
 0x641   :  { %v2124_v47 = vsub.f32 1.0, %v2123_v57  ;;  %v2293_v58 = vmul.f32 %v4496_v15, %v2121_v17  ;;  %vm2141_vm8 = vweird.f32 %v2035_v55  ;;  %v1984_v33 = vsub.f32 %v4481_v18, %v1966_v45 }
 0x642   :  { %v2148_v49 = vor.u32 1.1754944e-38, %v2147_v3  ;;  %vm2146_vm10 = vcmp.eq.f32.partialorder %v2145_v43, 8.507059e+37 }
 0x643   :  { %v2125_v38 = vmul.f32 %v2827_v50, %v2124_v47  ;;  %2680 = vmatmul.msk.f32.gmra.mxu0 %vm219_vm0, %v2293_v58 }
 0x645   :  { %v2126_v37 = vadd.f32 %v2827_v50, %v2125_v38 }
 0x646   :  { %v2829_v7 = vpop.eup %2828 }
 0x647   :  { %v2137_v21 = vmul.f32 %v2829_v7, %v2035_v55  ;;  %v2038_v39 = vpop.xlane.xlu0 %2037  ;;  %v2130_v22 = vsel %vm2129_vm5, %v2827_v50, %v2126_v37  ;;  %vm2142_vm7 = vweird.f32 %v2829_v7 }
 0x648   :  { %2830 = vrcp.f32 %v2038_v39  ;;  %v2135_v15 = vsel %vm2132_vm6, %v2134_v16, %v2130_v22  ;;  %vm2143_vm9 = vmor %vm2141_vm8, %vm2142_vm7  ;;  %v2161_v42 = vand.u32 2147483648, %v2038_v39  ;;  %v2159_v32 = vand.u32 2147483647, %v2038_v39 }
 0x649   :  { %v2138_v24 = vsub.f32 1.0, %v2137_v21  ;;  %v2294_v12 = vmul.f32 %v4505_v54, %v2135_v15  ;;  %2832 = vpow2.f32 %v2574_v23  ;;  %vm2155_vm12 = vweird.f32 %v2038_v39 }
 0x64a   :  { %v2162_v20 = vor.u32 1.1754944e-38, %v2161_v42  ;;  %vm2160_vm14 = vcmp.eq.f32.partialorder %v2159_v32, 8.507059e+37 }
 0x64b   :  { %v2139_v61 = vmul.f32 %v2829_v7, %v2138_v24  ;;  %2681 = vmatmul.msk.f32.gmra.mxu0 %vm219_vm0, %v2294_v12 }
 0x64d   :  { %v2140_v63 = vadd.f32 %v2829_v7, %v2139_v61 }
 0x64e   :  { %v2831_v27 = vpop.eup %2830 }
 0x64f   :  { %v2151_v9 = vmul.f32 %v2831_v27, %v2038_v39  ;;  %v2041_v56 = vpop.xlane.xlu0 %2040  ;;  %v2144_v40 = vsel %vm2143_vm9, %v2829_v7, %v2140_v63  ;;  %v2833_v4 = vpop.eup %2832  ;;  %vm2156_vm11 = vweird.f32 %v2831_v27 }
 0x650   :  { %2834 = vrcp.f32 %v2041_v56  ;;  %v2149_v1 = vsel %vm2146_vm10, %v2148_v49, %v2144_v40  ;;  %v4585_v48 = vadd.f32 1.0, %v2833_v4  ;;  %vm2157_vm13 = vmor %vm2155_vm12, %vm2156_vm11  ;;  %vm2169_vm1 = vweird.f32 %v2041_v56 }
 0x651   :  { %v2152_v54 = vsub.f32 1.0, %v2151_v9  ;;  %2836 = vpow2.f32 %v2575_v35  ;;  %v2295_v41 = vmul.f32 %v4510_v25, %v2149_v1 }
 0x652   :  { %2838 = vrcp.f32 %v4585_v48 }
 0x653   :  { %v2153_v51 = vmul.f32 %v2831_v27, %v2152_v54  ;;  %2682 = vmatmul.msk.f32.gmra.mxu0 %vm219_vm0, %v2295_v41 }
 0x655   :  { %v2154_v46 = vadd.f32 %v2831_v27, %v2153_v51 }
 0x656   :  { %v2835_v5 = vpop.eup %2834 }
 0x657   :  { %v2165_v59 = vmul.f32 %v2835_v5, %v2041_v56  ;;  %v1969_v31 = vpop.xlane.xlu0 %1968  ;;  %v2158_v52 = vsel %vm2157_vm13, %v2831_v27, %v2154_v46  ;;  %v2837_v26 = vpop.eup %2836  ;;  %vm2170_vm15 = vweird.f32 %v2835_v5 }
 0x658   :  { %v1985_v25 = vsub.f32 %v4526_v36, %v1969_v31  ;;  %v1957_v11 = vpop.xlane.xlu2 %1956  ;;  %v2163_v19 = vsel %vm2160_vm14, %v2162_v20, %v2158_v52  ;;  %v4593_v55 = vadd.f32 1.0, %v2837_v26  ;;  %v2175_v36 = vand.u32 2147483648, %v2041_v56  ;;  %vm2171_vm2 = vmor %vm2169_vm1, %vm2170_vm15  ;;  %v4599_v58 = vpop.eup %2838 }
 0x659   :  { %v2166_v10 = vsub.f32 1.0, %v2165_v59  ;;  %v1981_v60 = vsub.f32 %v4457_v62, %v1957_v11  ;;  %v2296_v50 = vmul.f32 %v4515_v8, %v2163_v19  ;;  %v2173_v62 = vand.u32 2147483647, %v2041_v56 }
 0x65a   :  { %v2016_v57 = vmul.f32 1.442695, %v1985_v25  ;;  %v2014_v8 = vmul.f32 1.442695, %v1984_v33  ;;  %v2176_v38 = vor.u32 1.1754944e-38, %v2175_v36  ;;  %v499_v9 = vmul.f32 %v4599_v58, %v4585_v48 }
 0x65b   :  { %v2167_v2 = vmul.f32 %v2835_v5, %v2166_v10  ;;  %v2008_v47 = vmul.f32 1.442695, %v1981_v60  ;;  %2683 = vmatmul.msk.f32.gmra.mxu0 %vm219_vm0, %v2296_v50  ;;  %vm2174_vm3 = vcmp.eq.f32.partialorder %v2173_v62, 8.507059e+37  ;;  %v524_v10 = vand.u32 2147483648, %v4593_v55 }
 0x65c   :  { %2840 = vpow2.f32 %v2016_v57  ;;  %v500_v4 = vsub.f32 1.0, %v499_v9  ;;  %vm518_vm13 = vweird.f32 %v4593_v55  ;;  %vm504_vm15 = vweird.f32 %v4599_v58 }
 0x65d   :  { %v2168_v17 = vadd.f32 %v2835_v5, %v2167_v2  ;;  %2842 = vpow2.f32 %v2008_v47  ;;  %v525_v2 = vor.u32 1.1754944e-38, %v524_v10  ;;  %v509_v47 = vand.u32 2147483648, %v4585_v48 }
 0x65e   :  { %2844 = vpow2.f32 %v2576_v29  ;;  %v501_v26 = vmul.f32 %v4599_v58, %v500_v4  ;;  %v507_v36 = vand.u32 2147483647, %v4585_v48 }
 0x65f   :  { %2846 = vrcp.f32 %v4593_v55  ;;  %v4597_v30 = vpop.xlane.xlu1 %2046  ;;  %v2172_v18 = vsel %vm2171_vm2, %v2835_v5, %v2168_v17  ;;  %vm503_vm2 = vweird.f32 %v4585_v48 }
 0x660   :  { %2848 = vrcp.f32 %v4597_v30  ;;  %v2044_v53 = vpop.xlane.xlu2 %2043  ;;  %v2177_v37 = vsel %vm2174_vm3, %v2176_v38, %v2172_v18  ;;  %v2203_v5 = vand.u32 2147483648, %v4597_v30  ;;  %vm2197_vm9 = vweird.f32 %v4597_v30  ;;  %vm505_vm3 = vmor %vm503_vm2, %vm504_vm15 }
 0x661   :  { %2850 = vrcp.f32 %v2044_v53  ;;  %v2297_v16 = vmul.f32 %v4520_v13, %v2177_v37  ;;  %v2189_v35 = vand.u32 2147483648, %v2044_v53  ;;  %v2187_v54 = vand.u32 2147483647, %v2044_v53 }
 0x662   :  { %v4602_v34 = vpop.eup %2840  ;;  %2852 = vpow2.f32 %v2014_v8  ;;  %vm2183_vm5 = vweird.f32 %v2044_v53  ;;  %v2201_v59 = vand.u32 2147483647, %v4597_v30  ;;  %v2204_v25 = vor.u32 1.1754944e-38, %v2203_v5 }
 0x663   :  { %v4604_v7 = vpop.eup %2842  ;;  %v2063_v21 = vsel %vm219_vm0, %v4602_v34, 0.0  ;;  %2684 = vmatmul.msk.f32.gmra.mxu0 %vm219_vm0, %v2297_v16  ;;  %v2190_v41 = vor.u32 1.1754944e-38, %v2189_v35  ;;  %vm2188_vm8 = vcmp.eq.f32.partialorder %v2187_v54, 8.507059e+37  ;;  %v502_v29 = vadd.f32 %v4599_v58, %v501_v26 }
 0x664   :  { %v2845_v39 = vpop.eup %2844  ;;  %2064 = vadd.xlane.f32.xlu1 %v2063_v21  ;;  %v2051_v22 = vsel %vm219_vm0, %v4604_v7, 0.0  ;;  %vm2202_vm12 = vcmp.eq.f32.partialorder %v2201_v59, 8.507059e+37  ;;  %v510_v8 = vor.u32 1.1754944e-38, %v509_v47 }
 0x665   :  { %v4611_v23 = vpop.eup %2846  ;;  %2052 = vadd.xlane.f32.xlu0 %v2051_v22  ;;  %v4614_v12 = vadd.f32 1.0, %v2845_v39  ;;  %v506_v17 = vsel %vm505_vm3, %v4599_v58, %v502_v29 }
 0x666   :  { %v2849_v24 = vpop.eup %2848  ;;  %v514_v63 = vmul.f32 %v4611_v23, %v4593_v55  ;;  %vm519_vm11 = vweird.f32 %v4611_v23 }
 0x667   :  { %v2851_v15 = vpop.eup %2850  ;;  %v2193_v61 = vmul.f32 %v2849_v24, %v4597_v30  ;;  %2854 = vrcp.f32 %v4614_v12  ;;  %vm2198_vm7 = vweird.f32 %v2849_v24  ;;  %vm520_vm14 = vmor %vm518_vm13, %vm519_vm11  ;;  %v539_v18 = vand.u32 2147483648, %v4614_v12 }
 0x668   :  { %v4617_v13 = vpop.eup %2852  ;;  %v2179_v3 = vmul.f32 %v2851_v15, %v2044_v53  ;;  %vm2184_vm4 = vweird.f32 %v2851_v15  ;;  %v515_v1 = vsub.f32 1.0, %v514_v63  ;;  %vm2199_vm10 = vmor %vm2197_vm9, %vm2198_vm7  ;;  %v537_v48 = vand.u32 2147483647, %v4614_v12 }
 0x669   :  { %v2194_v43 = vsub.f32 1.0, %v2193_v61  ;;  %v2060_v49 = vsel %vm219_vm0, %v4617_v13, 0.0  ;;  %vm2185_vm6 = vmor %vm2183_vm5, %vm2184_vm4  ;;  %vm508_vm4 = vcmp.eq.f32.partialorder %v507_v36, 8.507059e+37  ;;  %v540_v53 = vor.u32 1.1754944e-38, %v539_v18 }
 0x66a   :  { %v2180_v27 = vsub.f32 1.0, %v2179_v3  ;;  %v516_v45 = vmul.f32 %v4611_v23, %v515_v1 }
 0x66b   :  { %v2195_v56 = vmul.f32 %v2849_v24, %v2194_v43 }
 0x66c   :  { %v2181_v40 = vmul.f32 %v2851_v15, %v2180_v27  ;;  %v517_v11 = vadd.f32 %v4611_v23, %v516_v45 }
 0x66d   :  { %2061 = vadd.xlane.f32.xlu0 %v2060_v49  ;;  %v2196_v51 = vadd.f32 %v2849_v24, %v2195_v56  ;;  %v2855_v46 = vpop.eup %2854 }
 0x66e   :  { %v2182_v42 = vadd.f32 %v2851_v15, %v2181_v40  ;;  %v529_v19 = vmul.f32 %v2855_v46, %v4614_v12  ;;  %v521_v50 = vsel %vm520_vm14, %v4611_v23, %v517_v11  ;;  %vm534_vm5 = vweird.f32 %v2855_v46 }
 0x66f   :  { %v2200_v52 = vsel %vm2199_vm10, %v2849_v24, %v2196_v51 }
 0x670   :  { %v2186_v32 = vsel %vm2185_vm6, %v2851_v15, %v2182_v42  ;;  %v2205_v60 = vsel %vm2202_vm12, %v2204_v25, %v2200_v52  ;;  %v530_v33 = vsub.f32 1.0, %v529_v19  ;;  %vm533_vm6 = vweird.f32 %v4614_v12 }
 0x671   :  { %v2191_v20 = vsel %vm2188_vm8, %v2190_v41, %v2186_v32  ;;  %v2299_v57 = vmul.f32 %v4534_v44, %v2205_v60  ;;  %v511_v44 = vsel %vm508_vm4, %v510_v8, %v506_v17  ;;  %vm535_vm7 = vmor %vm533_vm6, %vm534_vm5  ;;  %vm538_vm8 = vcmp.eq.f32.partialorder %v537_v48, 8.507059e+37 }
 0x672   :  { %v2298_v31 = vmul.f32 %v4532_v14, %v2191_v20  ;;  %v522_v14 = vand.u32 2147483647, %v4593_v55  ;;  %v531_v62 = vmul.f32 %v2855_v46, %v530_v33 }
 0x674   :  { %2685 = vmatmul.msk.f32.gmra.mxu0 %vm219_vm0, %v2298_v31  ;;  %vm523_vm1 = vcmp.eq.f32.partialorder %v522_v14, 8.507059e+37  ;;  %v532_v30 = vadd.f32 %v2855_v46, %v531_v62 }
 0x675   :  { %v526_v55 = vsel %vm523_vm1, %v525_v2, %v521_v50 }
 0x676   :  { %v536_v38 = vsel %vm535_vm7, %v2855_v46, %v532_v30 }
 0x677   :  { %v541_v37 = vsel %vm538_vm8, %v540_v53, %v536_v38  ;;  %v2056_v63 = vpop.xlane.xlu1 %2055 }
 0x678   :  { %v2245_v25 = vand.u32 2147483648, %v2056_v63  ;;  %vm2239_vm3 = vweird.f32 %v2056_v63  ;;  %v2243_v19 = vand.u32 2147483647, %v2056_v63 }
 0x67a   :  { %v2246_v29 = vor.u32 1.1754944e-38, %v2245_v25  ;;  %vm2244_vm5 = vcmp.eq.f32.partialorder %v2243_v19, 8.507059e+37 }
 0x67c   :  { %2686 = vmatmul.msk.f32.gmra.mxu0 %vm219_vm0, %v2299_v57 }
 0x67d   :  { %2484 = vrot.lane.b32.xlu1 %v526_v55, %s2956_s26 }
 0x681   :  { %2482 = vrot.lane.b32.xlu0 %v511_v44, %s2956_s26 }
 0x689   :  { %2486 = vrot.lane.b32.xlu0 %v541_v37, %s2956_s26 }
 0x692   :  { %v2050_v58 = vpop.xlane.xlu2 %2049 }
 0x693   :  { %2856 = vrcp.f32 %v2050_v58  ;;  %v2217_v22 = vand.u32 2147483648, %v2050_v58  ;;  %v2215_v24 = vand.u32 2147483647, %v2050_v58  ;;  %vm2211_vm10 = vweird.f32 %v2050_v58 }
 0x694   :  { %2858 = vrcp.f32 %v2056_v63 }
 0x695   :  { %v2218_v12 = vor.u32 1.1754944e-38, %v2217_v22  ;;  %vm2216_vm12 = vcmp.eq.f32.partialorder %v2215_v24, 8.507059e+37 }
 0x699   :  { %v2857_v16 = vpop.eup %2856 }
 0x69a   :  { %v2207_v21 = vmul.f32 %v2857_v16, %v2050_v58  ;;  %vm2212_vm9 = vweird.f32 %v2857_v16  ;;  %v2859_v27 = vpop.eup %2858  ;;  %v2059_v35 = vpop.xlane.xlu2 %2058 }
 0x69b   :  { %vm2213_vm11 = vmor %vm2211_vm10, %vm2212_vm9  ;;  %v2235_v9 = vmul.f32 %v2859_v27, %v2056_v63  ;;  %vm2240_vm15 = vweird.f32 %v2859_v27  ;;  %v2259_v36 = vand.u32 2147483648, %v2059_v35  ;;  %vm2253_vm7 = vweird.f32 %v2059_v35 }
 0x69c   :  { %v2208_v39 = vsub.f32 1.0, %v2207_v21  ;;  %vm2241_vm4 = vmor %vm2239_vm3, %vm2240_vm15  ;;  %v2257_v55 = vand.u32 2147483647, %v2059_v35 }
 0x69d   :  { %v2236_v40 = vsub.f32 1.0, %v2235_v9  ;;  %v2260_v44 = vor.u32 1.1754944e-38, %v2259_v36 }
 0x69e   :  { %v2209_v23 = vmul.f32 %v2857_v16, %v2208_v39  ;;  %vm2258_vm9 = vcmp.eq.f32.partialorder %v2257_v55, 8.507059e+37  ;;  %v2894_v55 = vld [vmem:[#allocation2 + $0xd8] sm:$0xff] }
 0x69f   :  { %v2237_v4 = vmul.f32 %v2859_v27, %v2236_v40 }
 0x6a0   :  { %v2210_v15 = vadd.f32 %v2857_v16, %v2209_v23 }
 0x6a1   :  { %v2238_v45 = vadd.f32 %v2859_v27, %v2237_v4 }
 0x6a2   :  { %v2214_v61 = vsel %vm2213_vm11, %v2857_v16, %v2210_v15 }
 0x6a3   :  { %v2219_v3 = vsel %vm2216_vm12, %v2218_v12, %v2214_v61  ;;  %v2242_v50 = vsel %vm2241_vm4, %v2859_v27, %v2238_v45  ;;  %v2885_v45 = vld [vmem:[#allocation2 + $0x120] sm:$0xff] }
 0x6a4   :  { %v2300_v43 = vmul.f32 %v4548_v6, %v2219_v3  ;;  %v2247_v33 = vsel %vm2244_vm5, %v2246_v29, %v2242_v50  ;;  %v2891_v29 = vld [vmem:[#allocation2 + $0xf0] sm:$0xff] }
 0x6a6   :  { %2687 = vmatmul.msk.f32.gmra.mxu0 %vm219_vm0, %v2300_v43 }
 0x6a8   :  { %v4669_v22 = vpop.f32.mrf.mxu0 }
 0x6b0   :  { %v2386_v43 = vpop.f32.mrf.mxu0 }
 0x6b8   :  { %v2389_v63 = vpop.f32.mrf.mxu0 }
 0x6c0   :  { %v2392_v27 = vpop.f32.mrf.mxu0 }
 0x6d7   :  { %v2065_v31 = vpop.xlane.xlu1 %2064 }
 0x6d8   :  { %v2053_v49 = vpop.xlane.xlu0 %2052  ;;  %v2287_v23 = vand.u32 2147483648, %v2065_v31  ;;  %vm2281_vm15 = vweird.f32 %v2065_v31  ;;  %v2285_v24 = vand.u32 2147483647, %v2065_v31 }
 0x6d9   :  { %2860 = vrcp.f32 %v2053_v49  ;;  %v2231_v51 = vand.u32 2147483648, %v2053_v49  ;;  %v2229_v46 = vand.u32 2147483647, %v2053_v49  ;;  %vm2225_vm14 = vweird.f32 %v2053_v49 }
 0x6da   :  { %2862 = vrcp.f32 %v2059_v35  ;;  %v2288_v12 = vor.u32 1.1754944e-38, %v2287_v23 }
 0x6db   :  { %v2232_v20 = vor.u32 1.1754944e-38, %v2231_v51  ;;  %vm2230_vm2 = vcmp.eq.f32.partialorder %v2229_v46, 8.507059e+37 }
 0x6df   :  { %v2861_v56 = vpop.eup %2860 }
 0x6e0   :  { %v2221_v54 = vmul.f32 %v2861_v56, %v2053_v49  ;;  %v4656_v1 = vpop.xlane.xlu0 %2061  ;;  %v2863_v42 = vpop.eup %2862  ;;  %vm2226_vm13 = vweird.f32 %v2861_v56 }
 0x6e1   :  { %2864 = vrcp.f32 %v4656_v1  ;;  %v2249_v6 = vmul.f32 %v2863_v42, %v2059_v35  ;;  %vm2227_vm1 = vmor %vm2225_vm14, %vm2226_vm13  ;;  %vm2254_vm6 = vweird.f32 %v2863_v42  ;;  %v2273_v38 = vand.u32 2147483648, %v4656_v1  ;;  %v2395_v35 = vpop.f32.mrf.mxu0 }
 0x6e2   :  { %v2222_v41 = vsub.f32 1.0, %v2221_v54  ;;  %2866 = vrcp.f32 %v2065_v31  ;;  %vm2255_vm8 = vmor %vm2253_vm7, %vm2254_vm6  ;;  %vm2267_vm11 = vweird.f32 %v4656_v1  ;;  %v2271_v53 = vand.u32 2147483647, %v4656_v1 }
 0x6e3   :  { %v2250_v59 = vsub.f32 1.0, %v2249_v6  ;;  %v2274_v16 = vor.u32 1.1754944e-38, %v2273_v38  ;;  %v2882_v6 = vld [vmem:[#allocation2 + $0x138] sm:$0xff] }
 0x6e4   :  { %v2223_v32 = vmul.f32 %v2861_v56, %v2222_v41  ;;  %vm2272_vm13 = vcmp.eq.f32.partialorder %v2271_v53, 8.507059e+37  ;;  %v47_v53 = vld [vmem:[%s4706_s4 + $0x20] sm:$0xff] }
 0x6e5   :  { %v2251_v60 = vmul.f32 %v2863_v42, %v2250_v59 }
 0x6e6   :  { %v2224_v5 = vadd.f32 %v2861_v56, %v2223_v32 }
 0x6e7   :  { %v2865_v26 = vpop.eup %2864  ;;  %v2252_v57 = vadd.f32 %v2863_v42, %v2251_v60 }
 0x6e8   :  { %v2228_v52 = vsel %vm2227_vm1, %v2861_v56, %v2224_v5  ;;  %v2263_v14 = vmul.f32 %v2865_v26, %v4656_v1  ;;  %v2867_v47 = vpop.eup %2866  ;;  %vm2268_vm10 = vweird.f32 %v2865_v26  ;;  %v2884_v5 = vld [vmem:[#allocation2 + $0x128] sm:$0xff] }
 0x6e9   :  { %v2233_v11 = vsel %vm2230_vm2, %v2232_v20, %v2228_v52  ;;  %v2277_v17 = vmul.f32 %v2867_v47, %v2065_v31  ;;  %v2256_v8 = vsel %vm2255_vm8, %v2863_v42, %v2252_v57  ;;  %vm2269_vm12 = vmor %vm2267_vm11, %vm2268_vm10  ;;  %vm2282_vm14 = vweird.f32 %v2867_v47  ;;  %v2398_v49 = vpop.f32.mrf.mxu0  ;;  %v2886_v31 = vld [vmem:[#allocation2 + $0x118] sm:$0xff]  ;;  %v2892_v57 = vld [vmem:[#allocation2 + $0xe8] sm:$0xff] }
 0x6ea   :  { %v2301_v10 = vmul.f32 %v4604_v7, %v2233_v11  ;;  %v2264_v2 = vsub.f32 1.0, %v2263_v14  ;;  %v2302_v7 = vmul.f32 %v4541_v0, %v2247_v33  ;;  %v2261_v30 = vsel %vm2258_vm9, %v2260_v44, %v2256_v8  ;;  %vm2283_vm1 = vmor %vm2281_vm15, %vm2282_vm14  ;;  %v2888_v11 = vld [vmem:[#allocation2 + $0x108] sm:$0xff]  ;;  %v2890_v14 = vld [vmem:[#allocation2 + $0xf8] sm:$0xff] }
 0x6eb   :  { %v2278_v18 = vsub.f32 1.0, %v2277_v17  ;;  %v2303_v0 = vmul.f32 %v4555_v28, %v2261_v30  ;;  %vm2286_vm2 = vcmp.eq.f32.partialorder %v2285_v24, 8.507059e+37  ;;  %v133_v17 = vld [vmem:[#allocation2 + $0x268] sm:$0xff]  ;;  %v2895_v8 = vld [vmem:[#allocation2 + $0xd0] sm:$0xff] }
 0x6ec   :  { %2688 = vmatmul.msk.f32.gmra.mxu0 %vm219_vm0, %v2301_v10  ;;  %v2265_v62 = vmul.f32 %v2865_v26, %v2264_v2  ;;  %v2889_v10 = vld [vmem:[#allocation2 + $0x100] sm:$0xff]  ;;  %v2436_v2 = vmul.f32 %v2892_v57, %v2398_v49  ;;  %v2433_v44 = vmul.f32 %v2895_v8, %v2389_v63  ;;  %2521 = vmatpush.msrb.mxu3 %v133_v17  ;;  %v2896_v30 = vld [vmem:[#allocation2 + $0xc8] sm:$0xff] }
 0x6ed   :  { %v2279_v37 = vmul.f32 %v2867_v47, %v2278_v18  ;;  %v2432_v18 = vmul.f32 %v2896_v30, %v2386_v43 }
 0x6ee   :  { %v2266_v48 = vadd.f32 %v2865_v26, %v2265_v62  ;;  %v132_v62 = vld [vmem:[#allocation2 + $0x260] sm:$0xff] }
 0x6ef   :  { %v2280_v39 = vadd.f32 %v2867_v47, %v2279_v37  ;;  %2522 = vmatpush.msrb.mxu3 %v132_v62  ;;  %v49_v37 = vld [vmem:[%s4706_s4 + $0x30] sm:$0xff] }
 0x6f0   :  { %v2270_v58 = vsel %vm2269_vm12, %v2865_v26, %v2266_v48  ;;  %v2887_v26 = vld [vmem:[#allocation2 + $0x110] sm:$0xff]  ;;  %v2897_v48 = vld [vmem:[#allocation2 + $0xc0] sm:$0xff] }
 0x6f1   :  { %v2275_v21 = vsel %vm2272_vm13, %v2274_v16, %v2270_v58  ;;  %v2284_v28 = vsel %vm2283_vm1, %v2867_v47, %v2280_v39  ;;  %v2401_v9 = vpop.f32.mrf.mxu0  ;;  %v2893_v47 = vld [vmem:[#allocation2 + $0xe0] sm:$0xff]  ;;  %v2431_v38 = vmul.f32 %v2897_v48, %v4669_v22  ;;  %v50_v58 = vld [vmem:[%s4706_s4 + $0x38] sm:$0xff]  ;;  %v2481_v39 = vpop.permute.xlu2 %2480 }
 0x6f2   :  { %v2304_v15 = vmul.f32 %v4617_v13, %v2275_v21  ;;  %v2289_v61 = vsel %vm2286_vm2, %v2288_v12, %v2284_v28  ;;  %v2437_v33 = vmul.f32 %v2891_v29, %v2401_v9  ;;  %v2435_v36 = vmul.f32 %v2893_v47, %v2395_v35  ;;  %v131_v16 = vld [vmem:[#allocation2 + $0x258] sm:$0xff]  ;;  %v130_v21 = vld [vmem:[#allocation2 + $0x250] sm:$0xff]  ;;  %v2485_v12 = vpop.permute.xlu1 %2484 }
 0x6f3   :  { %v2305_v3 = vmul.f32 %v4602_v34, %v2289_v61  ;;  %v2883_v34 = vld [vmem:[#allocation2 + $0x130] sm:$0xff]  ;;  %2523 = vmatpush.msrb.mxu3 %v131_v16  ;;  %v2483_v24 = vpop.permute.xlu0 %2482 }
 0x6f4   :  { %2689 = vmatmul.msk.f32.gmra.mxu0 %vm219_vm0, %v2302_v7  ;;  %v2434_v7 = vmul.f32 %v2894_v55, %v2392_v27  ;;  %v2769_v35 = vld [vmem:[#allocation2 + $0x270] ss:$0 sm:$0xff] }
 0x6f5   :  { %2524 = vmatpush.msrb.mxu3 %v130_v21 }
 0x6f9   :  { %v2404_v56 = vpop.f32.mrf.mxu0 }
 0x6fa   :  { %v2438_v50 = vmul.f32 %v2890_v14, %v2404_v56 }
 0x6fb   :  { %v2487_v43 = vpop.permute.xlu0 %2486 }
 0x6fc   :  { %2690 = vmatmul.msk.f32.gmra.mxu0 %vm219_vm0, %v2303_v0  ;;  %v48_v0 = vld [vmem:[%s4706_s4 + $0x28] sm:$0xff]  ;;  %s2957_s4 = smov [#allocation5]  }
 0x6fd   :  { %s2546_s13 = sshll.u32 %s2957_s4, 4  ;;  %s2547_s13 = int_to_ptr.vmem [resolvable:$true] %s2546_s13 }
 0x701   :  { %v2407_v40 = vpop.f32.mrf.mxu0 }
 0x702   :  { %v2439_v60 = vmul.f32 %v2889_v10, %v2407_v40 }
 0x704   :  { %2691 = vmatmul.msk.f32.gmra.mxu0 %vm219_vm0, %v2304_v15 }
 0x709   :  { %v2410_v13 = vpop.f32.mrf.mxu0 }
 0x70a   :  { %v2440_v19 = vmul.f32 %v2888_v11, %v2410_v13 }
 0x70c   :  { %2692 = vmatmul.msk.f32.gmra.mxu0 %vm219_vm0, %v2305_v3 }
 0x723   :  { %v2413_v54 = vpop.f32.mrf.mxu0 }
 0x724   :  { %v2441_v25 = vmul.f32 %v2887_v26, %v2413_v54 }
 0x769   :  { %v2416_v1 = vpop.f32.mrf.mxu0 }
 0x76a   :  { %v2442_v52 = vmul.f32 %v2886_v31, %v2416_v1 }
 0x771   :  { %v2419_v42 = vpop.f32.mrf.mxu0 }
 0x772   :  { %v2443_v59 = vmul.f32 %v2885_v45, %v2419_v42 }
 0x779   :  { %v2422_v41 = vpop.f32.mrf.mxu0 }
 0x77a   :  { %v2444_v20 = vmul.f32 %v2884_v5, %v2422_v41 }
 0x781   :  { %v2425_v4 = vpop.f32.mrf.mxu0 }
 0x782   :  { %v2445_v46 = vmul.f32 %v2883_v34, %v2425_v4 }
 0x789   :  { %v2428_v51 = vpop.f32.mrf.mxu0 }
 0x78a   :  { %v2446_v32 = vmul.f32 %v2882_v6, %v2428_v51 }
 0x78c   :  { %2447 = vmatpush.msrb.mxu1 %v2446_v32 }
 0x78e   :  { %2448 = vmatpush.msrb.mxu1 %v2445_v46 }
 0x790   :  { %2449 = vmatpush.msrb.mxu1 %v2444_v20 }
 0x792   :  { %2450 = vmatpush.msrb.mxu1 %v2443_v59 }
 0x794   :  { %2451 = vmatpush.msrb.mxu1 %v2442_v52 }
 0x796   :  { %2452 = vmatpush.msrb.mxu1 %v2441_v25 }
 0x798   :  { %2453 = vmatpush.msrb.mxu1 %v2440_v19 }
 0x79a   :  { %2454 = vmatpush.msrb.mxu1 %v2439_v60 }
 0x79c   :  { %2455 = vmatpush.msrb.mxu1 %v2438_v50 }
 0x79e   :  { %2456 = vmatpush.msrb.mxu1 %v2437_v33 }
 0x7a0   :  { %2457 = vmatpush.msrb.mxu1 %v2436_v2 }
 0x7a2   :  { %2458 = vmatpush.msrb.mxu1 %v2435_v36 }
 0x7a4   :  { %2459 = vmatpush.msrb.mxu1 %v2434_v7 }
 0x7a6   :  { %2460 = vmatpush.msrb.mxu1 %v2433_v44 }
 0x7a8   :  { %2461 = vmatpush.msrb.mxu1 %v2432_v18 }
 0x7aa   :  { %2462 = vmatpush.msrb.mxu1 %v2431_v38 }
 0x7ab   :  { %2463 = vmatmul.f32.vlgmr.msrb.gmra.mxu1 %v47_v53 }
 0x7b3   :  { %2466 = vmatmul.f32.gmra.mxu1 %v48_v0 }
 0x7bb   :  { %2469 = vmatmul.f32.gmra.mxu1 %v49_v37 }
 0x7c3   :  { %2472 = vmatmul.f32.gmra.mxu1 %v50_v58 }
 0x828   :  { %v2464_v22 = vpop.f32.mrf.mxu1 }
 0x829   :  { %v2492_v23 = vmul.f32 %v2481_v39, %v2464_v22 }
 0x82b   :  { %2693 = vmatmul.msk.f32.vlgmr.msrb.gmra.mxu3 %vm219_vm0, %v2492_v23 }
 0x830   :  { %v2467_v15 = vpop.f32.mrf.mxu1 }
 0x831   :  { %v2493_v28 = vmul.f32 %v2483_v24, %v2467_v15 }
 0x833   :  { %2694 = vmatmul.msk.f32.gmra.mxu3 %vm219_vm0, %v2493_v28 }
 0x838   :  { %v2470_v61 = vpop.f32.mrf.mxu1 }
 0x839   :  { %v2494_v3 = vmul.f32 %v2485_v12, %v2470_v61 }
 0x83b   :  { %2695 = vmatmul.msk.f32.gmra.mxu3 %vm219_vm0, %v2494_v3 }
 0x840   :  { %v2473_v63 = vpop.f32.mrf.mxu1 }
 0x841   :  { %v2495_v27 = vmul.f32 %v2487_v43, %v2473_v63 }
 0x843   :  { %2696 = vmatmul.msk.f32.gmra.mxu3 %vm219_vm0, %v2495_v27 }
 0x8ae   :  { %v2526_v49 = vpop.f32.mrf.mxu3 }
 0x8af   :  { %v2527_v9 = vadd.f32 %v2769_v35, %v2526_v49 }
 0x8b1   :  { %2538 = vst.msk [vmem:[#allocation5] sm:$0xff] %vm219_vm0, %v2527_v9 }
 0x8b6   :  { %v2529_v56 = vpop.f32.mrf.mxu3 }
 0x8b7   :  { %v2530_v40 = vadd.f32 %v2769_v35, %v2529_v56 }
 0x8b9   :  { %2539 = vst.msk [vmem:[#allocation5 + $0x8] sm:$0xff] %vm219_vm0, %v2530_v40 }
 0x8be   :  { %v2532_v13 = vpop.f32.mrf.mxu3 }
 0x8bf   :  { %v2533_v54 = vadd.f32 %v2769_v35, %v2532_v13 }
 0x8c1   :  { %2540 = vst.msk [vmem:[#allocation5 + $0x10] sm:$0xff] %vm219_vm0, %v2533_v54 }
 0x8c6   :  { %v2535_v1 = vpop.f32.mrf.mxu3 }
 0x8c7   :  { %v2536_v42 = vadd.f32 %v2769_v35, %v2535_v1 }
 0x8c9   :  { %2541 = vst.msk [vmem:[#allocation5 + $0x18] sm:$0xff] %vm219_vm0, %v2536_v42 }
 0x8ca   :  { %2554 = dma.vmem_to_hbm [thread:$0]  %s2547_s13, 512, %s2549_s15, [#allocation4], %s2951_s29, %s2951_s29, %s2952_s30  }
 0x8cb   :  { %2948 = dma.done.wait [#allocation4], 512  }
 0x8cc   :  { %2949 = vsyncadd [#allocation4], 4294966784 }
 0x8cd   :  { %2559 = vsyncpa [#allocation3], 1 }
 0x8ce   :  { %2560 = vsyncpa [#allocation4], 1 }

</bundles_post_ra>
